<compile_context>
chip_gen: v5e
topology: v5e:2x2
jax: 0.10.0
libtpu: 0.0.40
codegen_flags: <defaults>
</compile_context>

<pallas_src>
import math
import jax
import jax.numpy as jnp
from jax.experimental import pallas as pl
from jax.experimental.pallas import tpu as pltpu

D_MODEL = 512
H = 8
D_K = D_MODEL // H


# ------------------------- fused Q/K/V projection kernels ---------------------
def _qkv_kernel(xq_ref, xk_ref, xv_ref, w_ref, b_ref, q_ref, k_ref, v_ref):
    # xq/xk/xv: (tm, 512) f32, w: (3, 512, 512) bf16 (already (in, out)),
    # b: (3, 1, 512) f32, outputs: (tm, 512) bf16.
    xq = xq_ref[...].astype(jnp.bfloat16)
    xk = xk_ref[...].astype(jnp.bfloat16)
    xv = xv_ref[...].astype(jnp.bfloat16)
    q = jnp.dot(xq, w_ref[0], preferred_element_type=jnp.float32) + b_ref[0]
    k = jnp.dot(xk, w_ref[1], preferred_element_type=jnp.float32) + b_ref[1]
    v = jnp.dot(xv, w_ref[2], preferred_element_type=jnp.float32) + b_ref[2]
    q_ref[...] = q.astype(q_ref.dtype)
    k_ref[...] = k.astype(k_ref.dtype)
    v_ref[...] = v.astype(v_ref.dtype)


def _qkv_self_kernel(x_ref, w_ref, b_ref, q_ref, k_ref, v_ref):
    # Self-attention: one activation DMA feeds all three projections.
    x = x_ref[...].astype(jnp.bfloat16)
    q = jnp.dot(x, w_ref[0], preferred_element_type=jnp.float32) + b_ref[0]
    k = jnp.dot(x, w_ref[1], preferred_element_type=jnp.float32) + b_ref[1]
    v = jnp.dot(x, w_ref[2], preferred_element_type=jnp.float32) + b_ref[2]
    q_ref[...] = q.astype(q_ref.dtype)
    k_ref[...] = k.astype(k_ref.dtype)
    v_ref[...] = v.astype(v_ref.dtype)


def _row_tile(m):
    if m <= 512:
        return m                      # single full-extent tile (always legal)
    for t in (512, 256, 128, 64, 32, 16):
        if m % t == 0:
            return t
    # TODO(synk): pad M up to a multiple of 16 for ragged row counts > 512.
    raise ValueError(f"rows={m} > 512 must be divisible by 16")


def _qkv_call(kernel, xs, w_qkv_t, b_qkv, tm, M, D):
    x_spec = pl.BlockSpec((tm, D), lambda i: (i, 0))
    out_spec = pl.BlockSpec((tm, D), lambda i: (i, 0))
    out_sd = jax.ShapeDtypeStruct((M, D), jnp.bfloat16)
    return pl.pallas_call(
        kernel,
        out_shape=(out_sd, out_sd, out_sd),
        grid_spec=pltpu.PrefetchScalarGridSpec(
            num_scalar_prefetch=0,
            grid=(M // tm,),
            in_specs=[x_spec] * len(xs) + [
                pl.BlockSpec((3, D, D), lambda i: (0, 0, 0)),   # constant -> DMA'd once
                pl.BlockSpec((3, 1, D), lambda i: (0, 0, 0)),
            ],
            out_specs=[out_spec, out_spec, out_spec],
        ),
        compiler_params=pltpu.CompilerParams(dimension_semantics=("parallel",)),
    )(*xs, w_qkv_t, b_qkv)


def qkv_projection(xq, xk, xv, w_qkv_t, b_qkv):
    """xq/xk/xv: (M, 512) f32.  Returns q, k, v as (M, 512) bf16."""
    M, D = xq.shape
    tm = _row_tile(M)
    return _qkv_call(_qkv_kernel, (xq, xk, xv), w_qkv_t, b_qkv, tm, M, D)


def qkv_projection_self(x, w_qkv_t, b_qkv):
    """Self-attention variant: the activation tile is DMA'd once, not 3x."""
    M, D = x.shape
    tm = _row_tile(M)
    return _qkv_call(_qkv_self_kernel, (x,), w_qkv_t, b_qkv, tm, M, D)


# ---------------- attention (+ fused output projection) kernel ----------------
def _attn_out_kernel(q_ref, k_ref, v_ref, m_ref, w_ref, b_ref, o_ref, p_ref,
                     ctx_ref):
    # q: (1, TQ, 512) bf16 (scale folded into q weights)
    # k/v: (1, S, 512) bf16, m: (1, TQ, S) bf16 additive mask (0 keep, -inf mask)
    # w: (512, 512) bf16 (in, out), b: (1, 512) f32
    # o: (1, TQ, 512) f32 (lane-dense), p: (1, H, TQ, S) bf16
    # ctx_ref scratch: (TQ, 512) bf16
    q = q_ref[0]
    k = k_ref[0]
    v = v_ref[0]
    add_mask = m_ref[0].astype(jnp.float32)          # precomputed {0, -inf}

    nt_dims = (((1,), (1,)), ((), ()))                # contract last dims: qd,kd->qk
    for h in range(H):
        sl = slice(h * D_K, (h + 1) * D_K)
        s = jax.lax.dot_general(q[:, sl], k[:, sl], nt_dims,
                                preferred_element_type=jnp.float32) + add_mask
        m = jnp.max(s, axis=-1, keepdims=True)
        e = jnp.exp(s - m)                            # softmax math stays f32 (v5e)
        p = e * pl.reciprocal(jnp.sum(e, axis=-1, keepdims=True), approx=True)
        p_ref[0, h] = p.astype(p_ref.dtype)
        ctx_ref[:, sl] = jnp.dot(p.astype(jnp.bfloat16), v[:, sl],
                                 preferred_element_type=jnp.float32
                                 ).astype(ctx_ref.dtype)

    y = jnp.dot(ctx_ref[...], w_ref[...], preferred_element_type=jnp.float32) \
        + b_ref[...]
    o_ref[0] = y.astype(o_ref.dtype)


def _attn_vmem_limit_bytes(B, S, D, tq):
    """Explicit scoped-VMEM budget for the attention call (double-buffered)."""
    bf2, f4 = 2, 4
    need = 0
    need += 2 * tq * D * bf2          # q blocks
    need += 2 * 2 * S * D * bf2       # k + v blocks
    need += 2 * tq * S * bf2          # additive mask blocks
    need += 2 * H * tq * S * bf2      # p output blocks
    need += 2 * tq * D * f4           # o output blocks
    need += 2 * (D * D * bf2 + D * f4)  # w3 / b3 (constant but double-buffered)
    need += tq * D * bf2              # ctx scratch
    try:
        cap = pltpu.get_tpu_info().vmem_capacity_bytes
    except Exception:                 # pragma: no cover - conservative fallback
        cap = 64 << 20                # v7x physical VMEM
    return int(min(max(need * 5 // 4 + (2 << 20), 32 << 20), cap * 7 // 8))


def attention_and_output(q, k, v, add_mask, w3_t, b3):
    """q/k/v: (B, S, 512) bf16, add_mask: (B, S, S) bf16 {0,-inf}.
    Returns (out (B,S,512) f32, p (B,H,S,S) bf16)."""
    B, S, D = q.shape
    tq = S if S <= 128 else 128
    assert S % tq == 0, "S > 128 must be a multiple of 128"
    return pl.pallas_call(
        _attn_out_kernel,
        out_shape=(
            jax.ShapeDtypeStruct((B, S, D), jnp.float32),
            jax.ShapeDtypeStruct((B, H, S, S), jnp.bfloat16),
        ),
        grid_spec=pltpu.PrefetchScalarGridSpec(
            num_scalar_prefetch=0,
            grid=(B, S // tq),
            in_specs=[
                pl.BlockSpec((1, tq, D), lambda b, i: (b, i, 0)),
                pl.BlockSpec((1, S, D), lambda b, i: (b, 0, 0)),
                pl.BlockSpec((1, S, D), lambda b, i: (b, 0, 0)),
                pl.BlockSpec((1, tq, S), lambda b, i: (b, i, 0)),
                pl.BlockSpec((D, D), lambda b, i: (0, 0)),       # constant -> DMA'd once
                pl.BlockSpec((1, D), lambda b, i: (0, 0)),
            ],
            out_specs=[
                pl.BlockSpec((1, tq, D), lambda b, i: (b, i, 0)),
                pl.BlockSpec((1, H, tq, S), lambda b, i: (b, 0, i, 0)),
            ],
            scratch_shapes=[pltpu.VMEM((tq, D), jnp.bfloat16)],
        ),
        compiler_params=pltpu.CompilerParams(
            dimension_semantics=("parallel", "parallel"),
            vmem_limit_bytes=_attn_vmem_limit_bytes(B, S, D, tq)),
    )(q, k, v, add_mask, w3_t, b3)


# ------------------------------ parameter prep --------------------------------
def prepare_params(raw):
    """One-time prep (hoisted out of the forward): transpose to (in, out), stack
    q/k/v weights, fold 1/sqrt(d_k) into the q projection (exact: 0.125), cast
    weights to bf16 for half the weight DMA and full MXU rate on v6e/v7x."""
    scale = 1.0 / math.sqrt(D_K)                     # 0.125 -> lossless folding
    w_q = (raw["w0"] * scale).T
    b_q = raw["b0"] * scale
    w_qkv_t = jnp.stack([w_q, raw["w1"].T, raw["w2"].T]).astype(jnp.bfloat16)
    b_qkv = jnp.stack([b_q, raw["b1"], raw["b2"]]).reshape(3, 1, D_MODEL).astype(jnp.float32)
    return {
        "w_qkv_t": w_qkv_t,                              # (3, 512, 512) bf16
        "b_qkv": b_qkv,                                  # (3, 1, 512)   f32
        "w3_t": raw["w3"].T.astype(jnp.bfloat16),        # (512, 512)    bf16
        "b3": raw["b3"].reshape(1, D_MODEL).astype(jnp.float32),
    }


# ------------------------------ full forward ----------------------------------
def _forward_common(params, q2, k2, v2, mask, B, S, D):
    # masked_fill(mask == -inf, -inf) == additive {0,-inf} mask; computed once
    # here (cheap XLA elementwise) and streamed bf16 -> half the mask DMA and
    # no per-tile compare/select on the VPU.
    add_mask = jnp.where(mask == -jnp.inf,
                         jnp.float32(-jnp.inf), jnp.float32(0.0)
                         ).astype(jnp.bfloat16)
    # (M,512)->(B,S,512) is a leading-dim split: no transpose / HBM shuffle.
    return attention_and_output(q2.reshape(B, S, D), k2.reshape(B, S, D),
                                v2.reshape(B, S, D), add_mask,
                                params["w3_t"], params["b3"])


def _mha_forward_cross(params, query, key, value, mask):
    B, S, D = query.shape
    assert D == D_MODEL
    M = B * S
    q2, k2, v2 = qkv_projection(query.reshape(M, D), key.reshape(M, D),
                                value.reshape(M, D),
                                params["w_qkv_t"], params["b_qkv"])
    return _forward_common(params, q2, k2, v2, mask, B, S, D)


def _mha_forward_self(params, x, mask):
    B, S, D = x.shape
    assert D == D_MODEL
    M = B * S
    q2, k2, v2 = qkv_projection_self(x.reshape(M, D),
                                     params["w_qkv_t"], params["b_qkv"])
    return _forward_common(params, q2, k2, v2, mask, B, S, D)


_mha_forward_cross_jit = jax.jit(_mha_forward_cross)
_mha_forward_self_jit = jax.jit(_mha_forward_self)


def multi_headed_attention(params, query, key, value, mask):
    """Pallas MultiHeadedAttention.forward (eval mode, compress_attention=False).
    Mask convention: positions equal to -inf are masked (torch masked_fill)."""
    if query is key and key is value:
        return _mha_forward_self_jit(params, query, mask)
    return _mha_forward_cross_jit(params, query, key, value, mask)


# ------------------------------ reference (pure JAX, f32) ----------------------
def reference_forward(raw, query, key, value, mask):
    B, S, D = query.shape

    def lin(x, w, b):
        return x @ w.T + b

    def proj(x, w, b):
        return lin(x, w, b).reshape(B, S, H, D_K).transpose(0, 2, 1, 3)

    q = proj(query, raw["w0"], raw["b0"])
    k = proj(key, raw["w1"], raw["b1"])
    v = proj(value, raw["w2"], raw["b2"])
    scores = jnp.einsum("bhqd,bhkd->bhqk", q, k) / math.sqrt(D_K)
    m4 = jnp.broadcast_to(mask[:, None, :, :], scores.shape)
    scores = jnp.where(m4 == -jnp.inf, -jnp.inf, scores)
    p = jax.nn.softmax(scores, axis=-1)
    x = jnp.einsum("bhqk,bhkd->bhqd", p, v)
    x = x.transpose(0, 2, 1, 3).reshape(B, S, D)
    return lin(x, raw["w3"], raw["b3"]), p


# --------------------------------- main ----------------------------------------
if __name__ == "__main__":
    B, S = 2, 8
    key0 = jax.random.PRNGKey(0)
    ks = jax.random.split(key0, 12)

    bound = 1.0 / math.sqrt(D_MODEL)
    raw = {}
    for i in range(4):
        raw[f"w{i}"] = jax.random.uniform(
            ks[2 * i], (D_MODEL, D_MODEL), jnp.float32, -bound, bound)
        raw[f"b{i}"] = jax.random.uniform(
            ks[2 * i + 1], (D_MODEL,), jnp.float32, -bound, bound)

    query = jax.random.normal(ks[8], (B, S, D_MODEL), jnp.float32)
    key_t = jax.random.normal(ks[9], (B, S, D_MODEL), jnp.float32)
    value = jax.random.normal(ks[10], (B, S, D_MODEL), jnp.float32)

    # causal mask: 0 where allowed, -inf where masked (torch masked_fill convention)
    causal = jnp.tril(jnp.ones((S, S), jnp.float32))
    mask = jnp.where(causal > 0, 0.0, -jnp.inf)
    mask = jnp.broadcast_to(mask[None, :, :], (B, S, S))

    params = prepare_params(raw)                 # one-time transpose/stack/cast

    # --- cross-attention path ---
    out, attn_map = multi_headed_attention(params, query, key_t, value, mask)
    out = jax.block_until_ready(out)
    attn_map = jax.block_until_ready(attn_map)

    ref_out, ref_p = reference_forward(raw, query, key_t, value, mask)
    assert out.shape == (B, S, D_MODEL)
    assert attn_map.shape == (B, H, S, S)
    # bf16 MXU inputs (f32 accumulate), bf16 attn map, approx-EUP reciprocal ->
    # relaxed tolerance vs. the pure-f32 reference.
    assert jnp.allclose(out, ref_out, atol=2e-2, rtol=2e-2), \
        float(jnp.max(jnp.abs(out - ref_out)))
    assert jnp.allclose(attn_map.astype(jnp.float32), ref_p, atol=2e-2, rtol=2e-2), \
        float(jnp.max(jnp.abs(attn_map.astype(jnp.float32) - ref_p)))

    # --- self-attention path (activation DMA'd once) ---
    out_s, attn_s = multi_headed_attention(params, query, query, query, mask)
    out_s = jax.block_until_ready(out_s)
    attn_s = jax.block_until_ready(attn_s)
    ref_out_s, ref_p_s = reference_forward(raw, query, query, query, mask)
    assert jnp.allclose(out_s, ref_out_s, atol=2e-2, rtol=2e-2), \
        float(jnp.max(jnp.abs(out_s - ref_out_s)))
    assert jnp.allclose(attn_s.astype(jnp.float32), ref_p_s, atol=2e-2, rtol=2e-2), \
        float(jnp.max(jnp.abs(attn_s.astype(jnp.float32) - ref_p_s)))

    print("KERNEL_OK")
</pallas_src>

<mosaic_0001>
module attributes {stable_mosaic.version = 11 : i64} {
  func.func @_qkv_kernel(%arg0: i32, %arg1: memref<16x512xf32, #tpu.memory_space<vmem>>, %arg2: memref<16x512xf32, #tpu.memory_space<vmem>>, %arg3: memref<16x512xf32, #tpu.memory_space<vmem>>, %arg4: memref<3x512x512xbf16, #tpu.memory_space<vmem>>, %arg5: memref<3x1x512xf32, #tpu.memory_space<vmem>>, %arg6: memref<16x512xbf16, #tpu.memory_space<vmem>>, %arg7: memref<16x512xbf16, #tpu.memory_space<vmem>>, %arg8: memref<16x512xbf16, #tpu.memory_space<vmem>>) attributes {dimension_semantics = [#tpu.dimension_semantics<parallel>], iteration_bounds = array<i64: 1>, scalar_prefetch = 0 : i64, scratch_operands = 0 : i64, tpu.core_type = #tpu.core_type<tc>, window_params = [{transform_indices = @transform_0, window_bounds = array<i64: 16, 512>}, {transform_indices = @transform_1, window_bounds = array<i64: 16, 512>}, {transform_indices = @transform_2, window_bounds = array<i64: 16, 512>}, {pipeline_mode = #tpu.pipeline_mode<synchronous>, transform_indices = @transform_3, window_bounds = array<i64: 3, 512, 512>}, {pipeline_mode = #tpu.pipeline_mode<synchronous>, transform_indices = @transform_4, window_bounds = array<i64: 3, 1, 512>}, {transform_indices = @transform_5, window_bounds = array<i64: 16, 512>}, {transform_indices = @transform_6, window_bounds = array<i64: 16, 512>}, {transform_indices = @transform_7, window_bounds = array<i64: 16, 512>}]} {
    %c0 = arith.constant 0 : index
    %c0_0 = arith.constant 0 : index
    %0 = vector.load %arg1[%c0, %c0_0] : memref<16x512xf32, #tpu.memory_space<vmem>>, vector<16x512xf32>
    %1 = arith.truncf %0 : vector<16x512xf32> to vector<16x512xbf16>
    %c0_1 = arith.constant 0 : index
    %c0_2 = arith.constant 0 : index
    %2 = vector.load %arg2[%c0_1, %c0_2] : memref<16x512xf32, #tpu.memory_space<vmem>>, vector<16x512xf32>
    %3 = arith.truncf %2 : vector<16x512xf32> to vector<16x512xbf16>
    %c0_3 = arith.constant 0 : index
    %c0_4 = arith.constant 0 : index
    %4 = vector.load %arg3[%c0_3, %c0_4] : memref<16x512xf32, #tpu.memory_space<vmem>>, vector<16x512xf32>
    %5 = arith.truncf %4 : vector<16x512xf32> to vector<16x512xbf16>
    %c0_5 = arith.constant 0 : index
    %c0_6 = arith.constant 0 : index
    %c0_7 = arith.constant 0 : index
    %6 = vector.load %arg4[%c0_5, %c0_6, %c0_7] : memref<3x512x512xbf16, #tpu.memory_space<vmem>>, vector<1x512x512xbf16>
    %7 = vector.shape_cast %6 : vector<1x512x512xbf16> to vector<512x512xbf16>
    %cst = arith.constant dense<0.000000e+00> : vector<16x512xf32>
    %8 = tpu.matmul %1, %7, %cst {dimension_numbers = #tpu.dot_dimension_numbers<[1], [0], [0], [1], [0, 0, 1, 1], [], []>} : vector<16x512xbf16>, vector<512x512xbf16>, vector<16x512xf32> -> vector<16x512xf32>
    %c0_8 = arith.constant 0 : index
    %c0_9 = arith.constant 0 : index
    %c0_10 = arith.constant 0 : index
    %9 = vector.load %arg5[%c0_8, %c0_9, %c0_10] : memref<3x1x512xf32, #tpu.memory_space<vmem>>, vector<1x1x512xf32>
    %10 = vector.shape_cast %9 : vector<1x1x512xf32> to vector<1x512xf32>
    %11 = vector.broadcast %10 : vector<1x512xf32> to vector<16x512xf32>
    %12 = arith.addf %8, %11 : vector<16x512xf32>
    %c1 = arith.constant 1 : index
    %c0_11 = arith.constant 0 : index
    %c0_12 = arith.constant 0 : index
    %13 = vector.load %arg4[%c1, %c0_11, %c0_12] : memref<3x512x512xbf16, #tpu.memory_space<vmem>>, vector<1x512x512xbf16>
    %14 = vector.shape_cast %13 : vector<1x512x512xbf16> to vector<512x512xbf16>
    %cst_13 = arith.constant dense<0.000000e+00> : vector<16x512xf32>
    %15 = tpu.matmul %3, %14, %cst_13 {dimension_numbers = #tpu.dot_dimension_numbers<[1], [0], [0], [1], [0, 0, 1, 1], [], []>} : vector<16x512xbf16>, vector<512x512xbf16>, vector<16x512xf32> -> vector<16x512xf32>
    %c1_14 = arith.constant 1 : index
    %c0_15 = arith.constant 0 : index
    %c0_16 = arith.constant 0 : index
    %16 = vector.load %arg5[%c1_14, %c0_15, %c0_16] : memref<3x1x512xf32, #tpu.memory_space<vmem>>, vector<1x1x512xf32>
    %17 = vector.shape_cast %16 : vector<1x1x512xf32> to vector<1x512xf32>
    %18 = vector.broadcast %17 : vector<1x512xf32> to vector<16x512xf32>
    %19 = arith.addf %15, %18 : vector<16x512xf32>
    %c2 = arith.constant 2 : index
    %c0_17 = arith.constant 0 : index
    %c0_18 = arith.constant 0 : index
    %20 = vector.load %arg4[%c2, %c0_17, %c0_18] : memref<3x512x512xbf16, #tpu.memory_space<vmem>>, vector<1x512x512xbf16>
    %21 = vector.shape_cast %20 : vector<1x512x512xbf16> to vector<512x512xbf16>
    %cst_19 = arith.constant dense<0.000000e+00> : vector<16x512xf32>
    %22 = tpu.matmul %5, %21, %cst_19 {dimension_numbers = #tpu.dot_dimension_numbers<[1], [0], [0], [1], [0, 0, 1, 1], [], []>} : vector<16x512xbf16>, vector<512x512xbf16>, vector<16x512xf32> -> vector<16x512xf32>
    %c2_20 = arith.constant 2 : index
    %c0_21 = arith.constant 0 : index
    %c0_22 = arith.constant 0 : index
    %23 = vector.load %arg5[%c2_20, %c0_21, %c0_22] : memref<3x1x512xf32, #tpu.memory_space<vmem>>, vector<1x1x512xf32>
    %24 = vector.shape_cast %23 : vector<1x1x512xf32> to vector<1x512xf32>
    %25 = vector.broadcast %24 : vector<1x512xf32> to vector<16x512xf32>
    %26 = arith.addf %22, %25 : vector<16x512xf32>
    %27 = arith.truncf %12 : vector<16x512xf32> to vector<16x512xbf16>
    %c0_23 = arith.constant 0 : index
    %c0_24 = arith.constant 0 : index
    %28 = vector.load %arg6[%c0_23, %c0_24] : memref<16x512xbf16, #tpu.memory_space<vmem>>, vector<16x512xbf16>
    tpu.vector_store %arg6[%c0_23, %c0_24], %27 {strides = array<i32>} : memref<16x512xbf16, #tpu.memory_space<vmem>>, vector<16x512xbf16>,
    %29 = arith.truncf %19 : vector<16x512xf32> to vector<16x512xbf16>
    %c0_25 = arith.constant 0 : index
    %c0_26 = arith.constant 0 : index
    %30 = vector.load %arg7[%c0_25, %c0_26] : memref<16x512xbf16, #tpu.memory_space<vmem>>, vector<16x512xbf16>
    tpu.vector_store %arg7[%c0_25, %c0_26], %29 {strides = array<i32>} : memref<16x512xbf16, #tpu.memory_space<vmem>>, vector<16x512xbf16>,
    %31 = arith.truncf %26 : vector<16x512xf32> to vector<16x512xbf16>
    %c0_27 = arith.constant 0 : index
    %c0_28 = arith.constant 0 : index
    %32 = vector.load %arg8[%c0_27, %c0_28] : memref<16x512xbf16, #tpu.memory_space<vmem>>, vector<16x512xbf16>
    tpu.vector_store %arg8[%c0_27, %c0_28], %31 {strides = array<i32>} : memref<16x512xbf16, #tpu.memory_space<vmem>>, vector<16x512xbf16>,
    return
  }
  func.func @transform_0(%arg0: i32) -> (i32, i32) {
    %c0_i32 = arith.constant 0 : i32
    %c0_i32_0 = arith.constant 0 : i32
    return %arg0, %c0_i32 : i32, i32
  }
  func.func @transform_1(%arg0: i32) -> (i32, i32) {
    %c0_i32 = arith.constant 0 : i32
    %c0_i32_0 = arith.constant 0 : i32
    return %arg0, %c0_i32 : i32, i32
  }
  func.func @transform_2(%arg0: i32) -> (i32, i32) {
    %c0_i32 = arith.constant 0 : i32
    %c0_i32_0 = arith.constant 0 : i32
    return %arg0, %c0_i32 : i32, i32
  }
  func.func @transform_3(%arg0: i32) -> (i32, i32, i32) {
    %c0_i32 = arith.constant 0 : i32
    %c0_i32_0 = arith.constant 0 : i32
    %c0_i32_1 = arith.constant 0 : i32
    %c0_i32_2 = arith.constant 0 : i32
    return %c0_i32, %c0_i32_0, %c0_i32_1 : i32, i32, i32
  }
  func.func @transform_4(%arg0: i32) -> (i32, i32, i32) {
    %c0_i32 = arith.constant 0 : i32
    %c0_i32_0 = arith.constant 0 : i32
    %c0_i32_1 = arith.constant 0 : i32
    %c0_i32_2 = arith.constant 0 : i32
    return %c0_i32, %c0_i32_0, %c0_i32_1 : i32, i32, i32
  }
  func.func @transform_5(%arg0: i32) -> (i32, i32) {
    %c0_i32 = arith.constant 0 : i32
    %c0_i32_0 = arith.constant 0 : i32
    return %arg0, %c0_i32 : i32, i32
  }
  func.func @transform_6(%arg0: i32) -> (i32, i32) {
    %c0_i32 = arith.constant 0 : i32
    %c0_i32_0 = arith.constant 0 : i32
    return %arg0, %c0_i32 : i32, i32
  }
  func.func @transform_7(%arg0: i32) -> (i32, i32) {
    %c0_i32 = arith.constant 0 : i32
    %c0_i32_0 = arith.constant 0 : i32
    return %arg0, %c0_i32 : i32, i32
  }
}

module attributes {stable_mosaic.version = 11 : i64} {
  func.func @_attn_out_kernel(%arg0: i32, %arg1: i32, %arg2: memref<1x8x512xbf16, #tpu.memory_space<vmem>>, %arg3: memref<1x8x512xbf16, #tpu.memory_space<vmem>>, %arg4: memref<1x8x512xbf16, #tpu.memory_space<vmem>>, %arg5: memref<1x8x8xbf16, #tpu.memory_space<vmem>>, %arg6: memref<512x512xbf16, #tpu.memory_space<vmem>>, %arg7: memref<1x512xf32, #tpu.memory_space<vmem>>, %arg8: memref<1x8x512xf32, #tpu.memory_space<vmem>>, %arg9: memref<1x8x8x8xbf16, #tpu.memory_space<vmem>>, %arg10: memref<8x512xbf16, #tpu.memory_space<vmem>>) attributes {dimension_semantics = [#tpu.dimension_semantics<parallel>, #tpu.dimension_semantics<parallel>], iteration_bounds = array<i64: 2, 1>, scalar_prefetch = 0 : i64, scratch_operands = 1 : i64, tpu.core_type = #tpu.core_type<tc>, window_params = [{transform_indices = @transform_0, window_bounds = array<i64: 1, 8, 512>}, {transform_indices = @transform_1, window_bounds = array<i64: 1, 8, 512>}, {transform_indices = @transform_2, window_bounds = array<i64: 1, 8, 512>}, {transform_indices = @transform_3, window_bounds = array<i64: 1, 8, 8>}, {pipeline_mode = #tpu.pipeline_mode<synchronous>, transform_indices = @transform_4, window_bounds = array<i64: 512, 512>}, {pipeline_mode = #tpu.pipeline_mode<synchronous>, transform_indices = @transform_5, window_bounds = array<i64: 1, 512>}, {transform_indices = @transform_6, window_bounds = array<i64: 1, 8, 512>}, {transform_indices = @transform_7, window_bounds = array<i64: 1, 8, 8, 8>}]} {
    %c0 = arith.constant 0 : index
    %c0_0 = arith.constant 0 : index
    %c0_1 = arith.constant 0 : index
    %0 = vector.load %arg2[%c0, %c0_0, %c0_1] : memref<1x8x512xbf16, #tpu.memory_space<vmem>>, vector<1x8x512xbf16>
    %1 = vector.shape_cast %0 : vector<1x8x512xbf16> to vector<8x512xbf16>
    %c0_2 = arith.constant 0 : index
    %c0_3 = arith.constant 0 : index
    %c0_4 = arith.constant 0 : index
    %2 = vector.load %arg3[%c0_2, %c0_3, %c0_4] : memref<1x8x512xbf16, #tpu.memory_space<vmem>>, vector<1x8x512xbf16>
    %3 = vector.shape_cast %2 : vector<1x8x512xbf16> to vector<8x512xbf16>
    %c0_5 = arith.constant 0 : index
    %c0_6 = arith.constant 0 : index
    %c0_7 = arith.constant 0 : index
    %4 = vector.load %arg4[%c0_5, %c0_6, %c0_7] : memref<1x8x512xbf16, #tpu.memory_space<vmem>>, vector<1x8x512xbf16>
    %5 = vector.shape_cast %4 : vector<1x8x512xbf16> to vector<8x512xbf16>
    %c0_8 = arith.constant 0 : index
    %c0_9 = arith.constant 0 : index
    %c0_10 = arith.constant 0 : index
    %6 = vector.load %arg5[%c0_8, %c0_9, %c0_10] : memref<1x8x8xbf16, #tpu.memory_space<vmem>>, vector<1x8x8xbf16>
    %7 = vector.shape_cast %6 : vector<1x8x8xbf16> to vector<8x8xbf16>
    %8 = arith.extf %7 : vector<8x8xbf16> to vector<8x8xf32>
    %9 = vector.extract_strided_slice %1 {offsets = [0, 0], sizes = [8, 64], strides = [1, 1]} : vector<8x512xbf16> to vector<8x64xbf16>
    %10 = vector.extract_strided_slice %3 {offsets = [0, 0], sizes = [8, 64], strides = [1, 1]} : vector<8x512xbf16> to vector<8x64xbf16>
    %cst = arith.constant dense<0.000000e+00> : vector<8x8xf32>
    %11 = tpu.matmul %9, %10, %cst {dimension_numbers = #tpu.dot_dimension_numbers<[1], [1], [0], [0], [0, 0, 1, 0], [], []>} : vector<8x64xbf16>, vector<8x64xbf16>, vector<8x8xf32> -> vector<8x8xf32>
    %12 = arith.addf %11, %8 : vector<8x8xf32>
    %cst_11 = arith.constant dense<0xFF800000> : vector<8xf32>
    %13 = vector.multi_reduction <maximumf>, %12, %cst_11 [1] : vector<8x8xf32> to vector<8xf32>
    %14 = vector.shape_cast %13 : vector<8xf32> to vector<8x1xf32>
    %15 = vector.broadcast %14 : vector<8x1xf32> to vector<8x8xf32>
    %16 = arith.subf %12, %15 : vector<8x8xf32>
    %17 = math.exp %16 : vector<8x8xf32>
    %cst_12 = arith.constant dense<0.000000e+00> : vector<8xf32>
    %18 = vector.multi_reduction <add>, %17, %cst_12 [1] : vector<8x8xf32> to vector<8xf32>
    %19 = vector.shape_cast %18 : vector<8xf32> to vector<8x1xf32>
    %20 = tpu.reciprocal %19 {approx = true} : vector<8x1xf32> -> vector<8x1xf32>
    %21 = vector.broadcast %20 : vector<8x1xf32> to vector<8x8xf32>
    %22 = arith.mulf %17, %21 : vector<8x8xf32>
    %23 = arith.truncf %22 : vector<8x8xf32> to vector<8x8xbf16>
    %c0_13 = arith.constant 0 : index
    %c0_14 = arith.constant 0 : index
    %c0_15 = arith.constant 0 : index
    %c0_16 = arith.constant 0 : index
    %24 = vector.load %arg9[%c0_13, %c0_14, %c0_15, %c0_16] : memref<1x8x8x8xbf16, #tpu.memory_space<vmem>>, vector<1x1x8x8xbf16>
    %25 = vector.shape_cast %24 : vector<1x1x8x8xbf16> to vector<8x8xbf16>
    %26 = vector.shape_cast %23 : vector<8x8xbf16> to vector<1x1x8x8xbf16>
    tpu.vector_store %arg9[%c0_13, %c0_14, %c0_15, %c0_16], %26 {strides = array<i32>} : memref<1x8x8x8xbf16, #tpu.memory_space<vmem>>, vector<1x1x8x8xbf16>,
    %27 = arith.truncf %22 : vector<8x8xf32> to vector<8x8xbf16>
    %28 = vector.extract_strided_slice %5 {offsets = [0, 0], sizes = [8, 64], strides = [1, 1]} : vector<8x512xbf16> to vector<8x64xbf16>
    %cst_17 = arith.constant dense<0.000000e+00> : vector<8x64xf32>
    %29 = tpu.matmul %27, %28, %cst_17 {dimension_numbers = #tpu.dot_dimension_numbers<[1], [0], [0], [1], [0, 0, 1, 1], [], []>} : vector<8x8xbf16>, vector<8x64xbf16>, vector<8x64xf32> -> vector<8x64xf32>
    %30 = arith.truncf %29 : vector<8x64xf32> to vector<8x64xbf16>
    %c0_18 = arith.constant 0 : index
    %c0_19 = arith.constant 0 : index
    %31 = vector.load %arg10[%c0_18, %c0_19] : memref<8x512xbf16, #tpu.memory_space<vmem>>, vector<8x64xbf16>
    tpu.vector_store %arg10[%c0_18, %c0_19], %30 {strides = array<i32>} : memref<8x512xbf16, #tpu.memory_space<vmem>>, vector<8x64xbf16>,
    %32 = vector.extract_strided_slice %1 {offsets = [0, 64], sizes = [8, 64], strides = [1, 1]} : vector<8x512xbf16> to vector<8x64xbf16>
    %33 = vector.extract_strided_slice %3 {offsets = [0, 64], sizes = [8, 64], strides = [1, 1]} : vector<8x512xbf16> to vector<8x64xbf16>
    %cst_20 = arith.constant dense<0.000000e+00> : vector<8x8xf32>
    %34 = tpu.matmul %32, %33, %cst_20 {dimension_numbers = #tpu.dot_dimension_numbers<[1], [1], [0], [0], [0, 0, 1, 0], [], []>} : vector<8x64xbf16>, vector<8x64xbf16>, vector<8x8xf32> -> vector<8x8xf32>
    %35 = arith.addf %34, %8 : vector<8x8xf32>
    %cst_21 = arith.constant dense<0xFF800000> : vector<8xf32>
    %36 = vector.multi_reduction <maximumf>, %35, %cst_21 [1] : vector<8x8xf32> to vector<8xf32>
    %37 = vector.shape_cast %36 : vector<8xf32> to vector<8x1xf32>
    %38 = vector.broadcast %37 : vector<8x1xf32> to vector<8x8xf32>
    %39 = arith.subf %35, %38 : vector<8x8xf32>
    %40 = math.exp %39 : vector<8x8xf32>
    %cst_22 = arith.constant dense<0.000000e+00> : vector<8xf32>
    %41 = vector.multi_reduction <add>, %40, %cst_22 [1] : vector<8x8xf32> to vector<8xf32>
    %42 = vector.shape_cast %41 : vector<8xf32> to vector<8x1xf32>
    %43 = tpu.reciprocal %42 {approx = true} : vector<8x1xf32> -> vector<8x1xf32>
    %44 = vector.broadcast %43 : vector<8x1xf32> to vector<8x8xf32>
    %45 = arith.mulf %40, %44 : vector<8x8xf32>
    %46 = arith.truncf %45 : vector<8x8xf32> to vector<8x8xbf16>
    %c0_23 = arith.constant 0 : index
    %c1 = arith.constant 1 : index
    %c0_24 = arith.constant 0 : index
    %c0_25 = arith.constant 0 : index
    %47 = vector.load %arg9[%c0_23, %c1, %c0_24, %c0_25] : memref<1x8x8x8xbf16, #tpu.memory_space<vmem>>, vector<1x1x8x8xbf16>
    %48 = vector.shape_cast %47 : vector<1x1x8x8xbf16> to vector<8x8xbf16>
    %49 = vector.shape_cast %46 : vector<8x8xbf16> to vector<1x1x8x8xbf16>
    tpu.vector_store %arg9[%c0_23, %c1, %c0_24, %c0_25], %49 {strides = array<i32>} : memref<1x8x8x8xbf16, #tpu.memory_space<vmem>>, vector<1x1x8x8xbf16>,
    %50 = arith.truncf %45 : vector<8x8xf32> to vector<8x8xbf16>
    %51 = vector.extract_strided_slice %5 {offsets = [0, 64], sizes = [8, 64], strides = [1, 1]} : vector<8x512xbf16> to vector<8x64xbf16>
    %cst_26 = arith.constant dense<0.000000e+00> : vector<8x64xf32>
    %52 = tpu.matmul %50, %51, %cst_26 {dimension_numbers = #tpu.dot_dimension_numbers<[1], [0], [0], [1], [0, 0, 1, 1], [], []>} : vector<8x8xbf16>, vector<8x64xbf16>, vector<8x64xf32> -> vector<8x64xf32>
    %53 = arith.truncf %52 : vector<8x64xf32> to vector<8x64xbf16>
    %c0_27 = arith.constant 0 : index
    %c64 = arith.constant 64 : index
    %54 = vector.load %arg10[%c0_27, %c64] : memref<8x512xbf16, #tpu.memory_space<vmem>>, vector<8x64xbf16>
    tpu.vector_store %arg10[%c0_27, %c64], %53 {strides = array<i32>} : memref<8x512xbf16, #tpu.memory_space<vmem>>, vector<8x64xbf16>,
    %55 = vector.extract_strided_slice %1 {offsets = [0, 128], sizes = [8, 64], strides = [1, 1]} : vector<8x512xbf16> to vector<8x64xbf16>
    %56 = vector.extract_strided_slice %3 {offsets = [0, 128], sizes = [8, 64], strides = [1, 1]} : vector<8x512xbf16> to vector<8x64xbf16>
    %cst_28 = arith.constant dense<0.000000e+00> : vector<8x8xf32>
    %57 = tpu.matmul %55, %56, %cst_28 {dimension_numbers = #tpu.dot_dimension_numbers<[1], [1], [0], [0], [0, 0, 1, 0], [], []>} : vector<8x64xbf16>, vector<8x64xbf16>, vector<8x8xf32> -> vector<8x8xf32>
    %58 = arith.addf %57, %8 : vector<8x8xf32>
    %cst_29 = arith.constant dense<0xFF800000> : vector<8xf32>
    %59 = vector.multi_reduction <maximumf>, %58, %cst_29 [1] : vector<8x8xf32> to vector<8xf32>
    %60 = vector.shape_cast %59 : vector<8xf32> to vector<8x1xf32>
    %61 = vector.broadcast %60 : vector<8x1xf32> to vector<8x8xf32>
    %62 = arith.subf %58, %61 : vector<8x8xf32>
    %63 = math.exp %62 : vector<8x8xf32>
    %cst_30 = arith.constant dense<0.000000e+00> : vector<8xf32>
    %64 = vector.multi_reduction <add>, %63, %cst_30 [1] : vector<8x8xf32> to vector<8xf32>
    %65 = vector.shape_cast %64 : vector<8xf32> to vector<8x1xf32>
    %66 = tpu.reciprocal %65 {approx = true} : vector<8x1xf32> -> vector<8x1xf32>
    %67 = vector.broadcast %66 : vector<8x1xf32> to vector<8x8xf32>
    %68 = arith.mulf %63, %67 : vector<8x8xf32>
    %69 = arith.truncf %68 : vector<8x8xf32> to vector<8x8xbf16>
    %c0_31 = arith.constant 0 : index
    %c2 = arith.constant 2 : index
    %c0_32 = arith.constant 0 : index
    %c0_33 = arith.constant 0 : index
    %70 = vector.load %arg9[%c0_31, %c2, %c0_32, %c0_33] : memref<1x8x8x8xbf16, #tpu.memory_space<vmem>>, vector<1x1x8x8xbf16>
    %71 = vector.shape_cast %70 : vector<1x1x8x8xbf16> to vector<8x8xbf16>
    %72 = vector.shape_cast %69 : vector<8x8xbf16> to vector<1x1x8x8xbf16>
    tpu.vector_store %arg9[%c0_31, %c2, %c0_32, %c0_33], %72 {strides = array<i32>} : memref<1x8x8x8xbf16, #tpu.memory_space<vmem>>, vector<1x1x8x8xbf16>,
    %73 = arith.truncf %68 : vector<8x8xf32> to vector<8x8xbf16>
    %74 = vector.extract_strided_slice %5 {offsets = [0, 128], sizes = [8, 64], strides = [1, 1]} : vector<8x512xbf16> to vector<8x64xbf16>
    %cst_34 = arith.constant dense<0.000000e+00> : vector<8x64xf32>
    %75 = tpu.matmul %73, %74, %cst_34 {dimension_numbers = #tpu.dot_dimension_numbers<[1], [0], [0], [1], [0, 0, 1, 1], [], []>} : vector<8x8xbf16>, vector<8x64xbf16>, vector<8x64xf32> -> vector<8x64xf32>
    %76 = arith.truncf %75 : vector<8x64xf32> to vector<8x64xbf16>
    %c0_35 = arith.constant 0 : index
    %c128 = arith.constant 128 : index
    %77 = vector.load %arg10[%c0_35, %c128] : memref<8x512xbf16, #tpu.memory_space<vmem>>, vector<8x64xbf16>
    tpu.vector_store %arg10[%c0_35, %c128], %76 {strides = array<i32>} : memref<8x512xbf16, #tpu.memory_space<vmem>>, vector<8x64xbf16>,
    %78 = vector.extract_strided_slice %1 {offsets = [0, 192], sizes = [8, 64], strides = [1, 1]} : vector<8x512xbf16> to vector<8x64xbf16>
    %79 = vector.extract_strided_slice %3 {offsets = [0, 192], sizes = [8, 64], strides = [1, 1]} : vector<8x512xbf16> to vector<8x64xbf16>
    %cst_36 = arith.constant dense<0.000000e+00> : vector<8x8xf32>
    %80 = tpu.matmul %78, %79, %cst_36 {dimension_numbers = #tpu.dot_dimension_numbers<[1], [1], [0], [0], [0, 0, 1, 0], [], []>} : vector<8x64xbf16>, vector<8x64xbf16>, vector<8x8xf32> -> vector<8x8xf32>
    %81 = arith.addf %80, %8 : vector<8x8xf32>
    %cst_37 = arith.constant dense<0xFF800000> : vector<8xf32>
    %82 = vector.multi_reduction <maximumf>, %81, %cst_37 [1] : vector<8x8xf32> to vector<8xf32>
    %83 = vector.shape_cast %82 : vector<8xf32> to vector<8x1xf32>
    %84 = vector.broadcast %83 : vector<8x1xf32> to vector<8x8xf32>
    %85 = arith.subf %81, %84 : vector<8x8xf32>
    %86 = math.exp %85 : vector<8x8xf32>
    %cst_38 = arith.constant dense<0.000000e+00> : vector<8xf32>
    %87 = vector.multi_reduction <add>, %86, %cst_38 [1] : vector<8x8xf32> to vector<8xf32>
    %88 = vector.shape_cast %87 : vector<8xf32> to vector<8x1xf32>
    %89 = tpu.reciprocal %88 {approx = true} : vector<8x1xf32> -> vector<8x1xf32>
    %90 = vector.broadcast %89 : vector<8x1xf32> to vector<8x8xf32>
    %91 = arith.mulf %86, %90 : vector<8x8xf32>
    %92 = arith.truncf %91 : vector<8x8xf32> to vector<8x8xbf16>
    %c0_39 = arith.constant 0 : index
    %c3 = arith.constant 3 : index
    %c0_40 = arith.constant 0 : index
    %c0_41 = arith.constant 0 : index
    %93 = vector.load %arg9[%c0_39, %c3, %c0_40, %c0_41] : memref<1x8x8x8xbf16, #tpu.memory_space<vmem>>, vector<1x1x8x8xbf16>
    %94 = vector.shape_cast %93 : vector<1x1x8x8xbf16> to vector<8x8xbf16>
    %95 = vector.shape_cast %92 : vector<8x8xbf16> to vector<1x1x8x8xbf16>
    tpu.vector_store %arg9[%c0_39, %c3, %c0_40, %c0_41], %95 {strides = array<i32>} : memref<1x8x8x8xbf16, #tpu.memory_space<vmem>>, vector<1x1x8x8xbf16>,
    %96 = arith.truncf %91 : vector<8x8xf32> to vector<8x8xbf16>
    %97 = vector.extract_strided_slice %5 {offsets = [0, 192], sizes = [8, 64], strides = [1, 1]} : vector<8x512xbf16> to vector<8x64xbf16>
    %cst_42 = arith.constant dense<0.000000e+00> : vector<8x64xf32>
    %98 = tpu.matmul %96, %97, %cst_42 {dimension_numbers = #tpu.dot_dimension_numbers<[1], [0], [0], [1], [0, 0, 1, 1], [], []>} : vector<8x8xbf16>, vector<8x64xbf16>, vector<8x64xf32> -> vector<8x64xf32>
    %99 = arith.truncf %98 : vector<8x64xf32> to vector<8x64xbf16>
    %c0_43 = arith.constant 0 : index
    %c192 = arith.constant 192 : index
    %100 = vector.load %arg10[%c0_43, %c192] : memref<8x512xbf16, #tpu.memory_space<vmem>>, vector<8x64xbf16>
    tpu.vector_store %arg10[%c0_43, %c192], %99 {strides = array<i32>} : memref<8x512xbf16, #tpu.memory_space<vmem>>, vector<8x64xbf16>,
    %101 = vector.extract_strided_slice %1 {offsets = [0, 256], sizes = [8, 64], strides = [1, 1]} : vector<8x512xbf16> to vector<8x64xbf16>
    %102 = vector.extract_strided_slice %3 {offsets = [0, 256], sizes = [8, 64], strides = [1, 1]} : vector<8x512xbf16> to vector<8x64xbf16>
    %cst_44 = arith.constant dense<0.000000e+00> : vector<8x8xf32>
    %103 = tpu.matmul %101, %102, %cst_44 {dimension_numbers = #tpu.dot_dimension_numbers<[1], [1], [0], [0], [0, 0, 1, 0], [], []>} : vector<8x64xbf16>, vector<8x64xbf16>, vector<8x8xf32> -> vector<8x8xf32>
    %104 = arith.addf %103, %8 : vector<8x8xf32>
    %cst_45 = arith.constant dense<0xFF800000> : vector<8xf32>
    %105 = vector.multi_reduction <maximumf>, %104, %cst_45 [1] : vector<8x8xf32> to vector<8xf32>
    %106 = vector.shape_cast %105 : vector<8xf32> to vector<8x1xf32>
    %107 = vector.broadcast %106 : vector<8x1xf32> to vector<8x8xf32>
    %108 = arith.subf %104, %107 : vector<8x8xf32>
    %109 = math.exp %108 : vector<8x8xf32>
    %cst_46 = arith.constant dense<0.000000e+00> : vector<8xf32>
    %110 = vector.multi_reduction <add>, %109, %cst_46 [1] : vector<8x8xf32> to vector<8xf32>
    %111 = vector.shape_cast %110 : vector<8xf32> to vector<8x1xf32>
    %112 = tpu.reciprocal %111 {approx = true} : vector<8x1xf32> -> vector<8x1xf32>
    %113 = vector.broadcast %112 : vector<8x1xf32> to vector<8x8xf32>
    %114 = arith.mulf %109, %113 : vector<8x8xf32>
    %115 = arith.truncf %114 : vector<8x8xf32> to vector<8x8xbf16>
    %c0_47 = arith.constant 0 : index
    %c4 = arith.constant 4 : index
    %c0_48 = arith.constant 0 : index
    %c0_49 = arith.constant 0 : index
    %116 = vector.load %arg9[%c0_47, %c4, %c0_48, %c0_49] : memref<1x8x8x8xbf16, #tpu.memory_space<vmem>>, vector<1x1x8x8xbf16>
    %117 = vector.shape_cast %116 : vector<1x1x8x8xbf16> to vector<8x8xbf16>
    %118 = vector.shape_cast %115 : vector<8x8xbf16> to vector<1x1x8x8xbf16>
    tpu.vector_store %arg9[%c0_47, %c4, %c0_48, %c0_49], %118 {strides = array<i32>} : memref<1x8x8x8xbf16, #tpu.memory_space<vmem>>, vector<1x1x8x8xbf16>,
    %119 = arith.truncf %114 : vector<8x8xf32> to vector<8x8xbf16>
    %120 = vector.extract_strided_slice %5 {offsets = [0, 256], sizes = [8, 64], strides = [1, 1]} : vector<8x512xbf16> to vector<8x64xbf16>
    %cst_50 = arith.constant dense<0.000000e+00> : vector<8x64xf32>
    %121 = tpu.matmul %119, %120, %cst_50 {dimension_numbers = #tpu.dot_dimension_numbers<[1], [0], [0], [1], [0, 0, 1, 1], [], []>} : vector<8x8xbf16>, vector<8x64xbf16>, vector<8x64xf32> -> vector<8x64xf32>
    %122 = arith.truncf %121 : vector<8x64xf32> to vector<8x64xbf16>
    %c0_51 = arith.constant 0 : index
    %c256 = arith.constant 256 : index
    %123 = vector.load %arg10[%c0_51, %c256] : memref<8x512xbf16, #tpu.memory_space<vmem>>, vector<8x64xbf16>
    tpu.vector_store %arg10[%c0_51, %c256], %122 {strides = array<i32>} : memref<8x512xbf16, #tpu.memory_space<vmem>>, vector<8x64xbf16>,
    %124 = vector.extract_strided_slice %1 {offsets = [0, 320], sizes = [8, 64], strides = [1, 1]} : vector<8x512xbf16> to vector<8x64xbf16>
    %125 = vector.extract_strided_slice %3 {offsets = [0, 320], sizes = [8, 64], strides = [1, 1]} : vector<8x512xbf16> to vector<8x64xbf16>
    %cst_52 = arith.constant dense<0.000000e+00> : vector<8x8xf32>
    %126 = tpu.matmul %124, %125, %cst_52 {dimension_numbers = #tpu.dot_dimension_numbers<[1], [1], [0], [0], [0, 0, 1, 0], [], []>} : vector<8x64xbf16>, vector<8x64xbf16>, vector<8x8xf32> -> vector<8x8xf32>
    %127 = arith.addf %126, %8 : vector<8x8xf32>
    %cst_53 = arith.constant dense<0xFF800000> : vector<8xf32>
    %128 = vector.multi_reduction <maximumf>, %127, %cst_53 [1] : vector<8x8xf32> to vector<8xf32>
    %129 = vector.shape_cast %128 : vector<8xf32> to vector<8x1xf32>
    %130 = vector.broadcast %129 : vector<8x1xf32> to vector<8x8xf32>
    %131 = arith.subf %127, %130 : vector<8x8xf32>
    %132 = math.exp %131 : vector<8x8xf32>
    %cst_54 = arith.constant dense<0.000000e+00> : vector<8xf32>
    %133 = vector.multi_reduction <add>, %132, %cst_54 [1] : vector<8x8xf32> to vector<8xf32>
    %134 = vector.shape_cast %133 : vector<8xf32> to vector<8x1xf32>
    %135 = tpu.reciprocal %134 {approx = true} : vector<8x1xf32> -> vector<8x1xf32>
    %136 = vector.broadcast %135 : vector<8x1xf32> to vector<8x8xf32>
    %137 = arith.mulf %132, %136 : vector<8x8xf32>
    %138 = arith.truncf %137 : vector<8x8xf32> to vector<8x8xbf16>
    %c0_55 = arith.constant 0 : index
    %c5 = arith.constant 5 : index
    %c0_56 = arith.constant 0 : index
    %c0_57 = arith.constant 0 : index
    %139 = vector.load %arg9[%c0_55, %c5, %c0_56, %c0_57] : memref<1x8x8x8xbf16, #tpu.memory_space<vmem>>, vector<1x1x8x8xbf16>
    %140 = vector.shape_cast %139 : vector<1x1x8x8xbf16> to vector<8x8xbf16>
    %141 = vector.shape_cast %138 : vector<8x8xbf16> to vector<1x1x8x8xbf16>
    tpu.vector_store %arg9[%c0_55, %c5, %c0_56, %c0_57], %141 {strides = array<i32>} : memref<1x8x8x8xbf16, #tpu.memory_space<vmem>>, vector<1x1x8x8xbf16>,
    %142 = arith.truncf %137 : vector<8x8xf32> to vector<8x8xbf16>
    %143 = vector.extract_strided_slice %5 {offsets = [0, 320], sizes = [8, 64], strides = [1, 1]} : vector<8x512xbf16> to vector<8x64xbf16>
    %cst_58 = arith.constant dense<0.000000e+00> : vector<8x64xf32>
    %144 = tpu.matmul %142, %143, %cst_58 {dimension_numbers = #tpu.dot_dimension_numbers<[1], [0], [0], [1], [0, 0, 1, 1], [], []>} : vector<8x8xbf16>, vector<8x64xbf16>, vector<8x64xf32> -> vector<8x64xf32>
    %145 = arith.truncf %144 : vector<8x64xf32> to vector<8x64xbf16>
    %c0_59 = arith.constant 0 : index
    %c320 = arith.constant 320 : index
    %146 = vector.load %arg10[%c0_59, %c320] : memref<8x512xbf16, #tpu.memory_space<vmem>>, vector<8x64xbf16>
    tpu.vector_store %arg10[%c0_59, %c320], %145 {strides = array<i32>} : memref<8x512xbf16, #tpu.memory_space<vmem>>, vector<8x64xbf16>,
    %147 = vector.extract_strided_slice %1 {offsets = [0, 384], sizes = [8, 64], strides = [1, 1]} : vector<8x512xbf16> to vector<8x64xbf16>
    %148 = vector.extract_strided_slice %3 {offsets = [0, 384], sizes = [8, 64], strides = [1, 1]} : vector<8x512xbf16> to vector<8x64xbf16>
    %cst_60 = arith.constant dense<0.000000e+00> : vector<8x8xf32>
    %149 = tpu.matmul %147, %148, %cst_60 {dimension_numbers = #tpu.dot_dimension_numbers<[1], [1], [0], [0], [0, 0, 1, 0], [], []>} : vector<8x64xbf16>, vector<8x64xbf16>, vector<8x8xf32> -> vector<8x8xf32>
    %150 = arith.addf %149, %8 : vector<8x8xf32>
    %cst_61 = arith.constant dense<0xFF800000> : vector<8xf32>
    %151 = vector.multi_reduction <maximumf>, %150, %cst_61 [1] : vector<8x8xf32> to vector<8xf32>
    %152 = vector.shape_cast %151 : vector<8xf32> to vector<8x1xf32>
    %153 = vector.broadcast %152 : vector<8x1xf32> to vector<8x8xf32>
    %154 = arith.subf %150, %153 : vector<8x8xf32>
    %155 = math.exp %154 : vector<8x8xf32>
    %cst_62 = arith.constant dense<0.000000e+00> : vector<8xf32>
    %156 = vector.multi_reduction <add>, %155, %cst_62 [1] : vector<8x8xf32> to vector<8xf32>
    %157 = vector.shape_cast %156 : vector<8xf32> to vector<8x1xf32>
    %158 = tpu.reciprocal %157 {approx = true} : vector<8x1xf32> -> vector<8x1xf32>
    %159 = vector.broadcast %158 : vector<8x1xf32> to vector<8x8xf32>
    %160 = arith.mulf %155, %159 : vector<8x8xf32>
    %161 = arith.truncf %160 : vector<8x8xf32> to vector<8x8xbf16>
    %c0_63 = arith.constant 0 : index
    %c6 = arith.constant 6 : index
    %c0_64 = arith.constant 0 : index
    %c0_65 = arith.constant 0 : index
    %162 = vector.load %arg9[%c0_63, %c6, %c0_64, %c0_65] : memref<1x8x8x8xbf16, #tpu.memory_space<vmem>>, vector<1x1x8x8xbf16>
    %163 = vector.shape_cast %162 : vector<1x1x8x8xbf16> to vector<8x8xbf16>
    %164 = vector.shape_cast %161 : vector<8x8xbf16> to vector<1x1x8x8xbf16>
    tpu.vector_store %arg9[%c0_63, %c6, %c0_64, %c0_65], %164 {strides = array<i32>} : memref<1x8x8x8xbf16, #tpu.memory_space<vmem>>, vector<1x1x8x8xbf16>,
    %165 = arith.truncf %160 : vector<8x8xf32> to vector<8x8xbf16>
    %166 = vector.extract_strided_slice %5 {offsets = [0, 384], sizes = [8, 64], strides = [1, 1]} : vector<8x512xbf16> to vector<8x64xbf16>
    %cst_66 = arith.constant dense<0.000000e+00> : vector<8x64xf32>
    %167 = tpu.matmul %165, %166, %cst_66 {dimension_numbers = #tpu.dot_dimension_numbers<[1], [0], [0], [1], [0, 0, 1, 1], [], []>} : vector<8x8xbf16>, vector<8x64xbf16>, vector<8x64xf32> -> vector<8x64xf32>
    %168 = arith.truncf %167 : vector<8x64xf32> to vector<8x64xbf16>
    %c0_67 = arith.constant 0 : index
    %c384 = arith.constant 384 : index
    %169 = vector.load %arg10[%c0_67, %c384] : memref<8x512xbf16, #tpu.memory_space<vmem>>, vector<8x64xbf16>
    tpu.vector_store %arg10[%c0_67, %c384], %168 {strides = array<i32>} : memref<8x512xbf16, #tpu.memory_space<vmem>>, vector<8x64xbf16>,
    %170 = vector.extract_strided_slice %1 {offsets = [0, 448], sizes = [8, 64], strides = [1, 1]} : vector<8x512xbf16> to vector<8x64xbf16>
    %171 = vector.extract_strided_slice %3 {offsets = [0, 448], sizes = [8, 64], strides = [1, 1]} : vector<8x512xbf16> to vector<8x64xbf16>
    %cst_68 = arith.constant dense<0.000000e+00> : vector<8x8xf32>
    %172 = tpu.matmul %170, %171, %cst_68 {dimension_numbers = #tpu.dot_dimension_numbers<[1], [1], [0], [0], [0, 0, 1, 0], [], []>} : vector<8x64xbf16>, vector<8x64xbf16>, vector<8x8xf32> -> vector<8x8xf32>
    %173 = arith.addf %172, %8 : vector<8x8xf32>
    %cst_69 = arith.constant dense<0xFF800000> : vector<8xf32>
    %174 = vector.multi_reduction <maximumf>, %173, %cst_69 [1] : vector<8x8xf32> to vector<8xf32>
    %175 = vector.shape_cast %174 : vector<8xf32> to vector<8x1xf32>
    %176 = vector.broadcast %175 : vector<8x1xf32> to vector<8x8xf32>
    %177 = arith.subf %173, %176 : vector<8x8xf32>
    %178 = math.exp %177 : vector<8x8xf32>
    %cst_70 = arith.constant dense<0.000000e+00> : vector<8xf32>
    %179 = vector.multi_reduction <add>, %178, %cst_70 [1] : vector<8x8xf32> to vector<8xf32>
    %180 = vector.shape_cast %179 : vector<8xf32> to vector<8x1xf32>
    %181 = tpu.reciprocal %180 {approx = true} : vector<8x1xf32> -> vector<8x1xf32>
    %182 = vector.broadcast %181 : vector<8x1xf32> to vector<8x8xf32>
    %183 = arith.mulf %178, %182 : vector<8x8xf32>
    %184 = arith.truncf %183 : vector<8x8xf32> to vector<8x8xbf16>
    %c0_71 = arith.constant 0 : index
    %c7 = arith.constant 7 : index
    %c0_72 = arith.constant 0 : index
    %c0_73 = arith.constant 0 : index
    %185 = vector.load %arg9[%c0_71, %c7, %c0_72, %c0_73] : memref<1x8x8x8xbf16, #tpu.memory_space<vmem>>, vector<1x1x8x8xbf16>
    %186 = vector.shape_cast %185 : vector<1x1x8x8xbf16> to vector<8x8xbf16>
    %187 = vector.shape_cast %184 : vector<8x8xbf16> to vector<1x1x8x8xbf16>
    tpu.vector_store %arg9[%c0_71, %c7, %c0_72, %c0_73], %187 {strides = array<i32>} : memref<1x8x8x8xbf16, #tpu.memory_space<vmem>>, vector<1x1x8x8xbf16>,
    %188 = arith.truncf %183 : vector<8x8xf32> to vector<8x8xbf16>
    %189 = vector.extract_strided_slice %5 {offsets = [0, 448], sizes = [8, 64], strides = [1, 1]} : vector<8x512xbf16> to vector<8x64xbf16>
    %cst_74 = arith.constant dense<0.000000e+00> : vector<8x64xf32>
    %190 = tpu.matmul %188, %189, %cst_74 {dimension_numbers = #tpu.dot_dimension_numbers<[1], [0], [0], [1], [0, 0, 1, 1], [], []>} : vector<8x8xbf16>, vector<8x64xbf16>, vector<8x64xf32> -> vector<8x64xf32>
    %191 = arith.truncf %190 : vector<8x64xf32> to vector<8x64xbf16>
    %c0_75 = arith.constant 0 : index
    %c448 = arith.constant 448 : index
    %192 = vector.load %arg10[%c0_75, %c448] : memref<8x512xbf16, #tpu.memory_space<vmem>>, vector<8x64xbf16>
    tpu.vector_store %arg10[%c0_75, %c448], %191 {strides = array<i32>} : memref<8x512xbf16, #tpu.memory_space<vmem>>, vector<8x64xbf16>,
    %c0_76 = arith.constant 0 : index
    %c0_77 = arith.constant 0 : index
    %193 = vector.load %arg10[%c0_76, %c0_77] : memref<8x512xbf16, #tpu.memory_space<vmem>>, vector<8x512xbf16>
    %c0_78 = arith.constant 0 : index
    %c0_79 = arith.constant 0 : index
    %194 = vector.load %arg6[%c0_78, %c0_79] : memref<512x512xbf16, #tpu.memory_space<vmem>>, vector<512x512xbf16>
    %cst_80 = arith.constant dense<0.000000e+00> : vector<8x512xf32>
    %195 = tpu.matmul %193, %194, %cst_80 {dimension_numbers = #tpu.dot_dimension_numbers<[1], [0], [0], [1], [0, 0, 1, 1], [], []>} : vector<8x512xbf16>, vector<512x512xbf16>, vector<8x512xf32> -> vector<8x512xf32>
    %c0_81 = arith.constant 0 : index
    %c0_82 = arith.constant 0 : index
    %196 = vector.load %arg7[%c0_81, %c0_82] : memref<1x512xf32, #tpu.memory_space<vmem>>, vector<1x512xf32>
    %197 = vector.broadcast %196 : vector<1x512xf32> to vector<8x512xf32>
    %198 = arith.addf %195, %197 : vector<8x512xf32>
    %c0_83 = arith.constant 0 : index
    %c0_84 = arith.constant 0 : index
    %c0_85 = arith.constant 0 : index
    %199 = vector.load %arg8[%c0_83, %c0_84, %c0_85] : memref<1x8x512xf32, #tpu.memory_space<vmem>>, vector<1x8x512xf32>
    %200 = vector.shape_cast %199 : vector<1x8x512xf32> to vector<8x512xf32>
    %201 = vector.shape_cast %198 : vector<8x512xf32> to vector<1x8x512xf32>
    tpu.vector_store %arg8[%c0_83, %c0_84, %c0_85], %201 {strides = array<i32>} : memref<1x8x512xf32, #tpu.memory_space<vmem>>, vector<1x8x512xf32>,
    return
  }
  func.func @transform_0(%arg0: i32, %arg1: i32) -> (i32, i32, i32) {
    %c0_i32 = arith.constant 0 : i32
    %c0_i32_0 = arith.constant 0 : i32
    return %arg0, %arg1, %c0_i32 : i32, i32, i32
  }
  func.func @transform_1(%arg0: i32, %arg1: i32) -> (i32, i32, i32) {
    %c0_i32 = arith.constant 0 : i32
    %c0_i32_0 = arith.constant 0 : i32
    %c0_i32_1 = arith.constant 0 : i32
    return %arg0, %c0_i32, %c0_i32_0 : i32, i32, i32
  }
  func.func @transform_2(%arg0: i32, %arg1: i32) -> (i32, i32, i32) {
    %c0_i32 = arith.constant 0 : i32
    %c0_i32_0 = arith.constant 0 : i32
    %c0_i32_1 = arith.constant 0 : i32
    return %arg0, %c0_i32, %c0_i32_0 : i32, i32, i32
  }
  func.func @transform_3(%arg0: i32, %arg1: i32) -> (i32, i32, i32) {
    %c0_i32 = arith.constant 0 : i32
    %c0_i32_0 = arith.constant 0 : i32
    return %arg0, %arg1, %c0_i32 : i32, i32, i32
  }
  func.func @transform_4(%arg0: i32, %arg1: i32) -> (i32, i32) {
    %c0_i32 = arith.constant 0 : i32
    %c0_i32_0 = arith.constant 0 : i32
    %c0_i32_1 = arith.constant 0 : i32
    return %c0_i32, %c0_i32_0 : i32, i32
  }
  func.func @transform_5(%arg0: i32, %arg1: i32) -> (i32, i32) {
    %c0_i32 = arith.constant 0 : i32
    %c0_i32_0 = arith.constant 0 : i32
    %c0_i32_1 = arith.constant 0 : i32
    return %c0_i32, %c0_i32_0 : i32, i32
  }
  func.func @transform_6(%arg0: i32, %arg1: i32) -> (i32, i32, i32) {
    %c0_i32 = arith.constant 0 : i32
    %c0_i32_0 = arith.constant 0 : i32
    return %arg0, %arg1, %c0_i32 : i32, i32, i32
  }
  func.func @transform_7(%arg0: i32, %arg1: i32) -> (i32, i32, i32, i32) {
    %c0_i32 = arith.constant 0 : i32
    %c0_i32_0 = arith.constant 0 : i32
    %c0_i32_1 = arith.constant 0 : i32
    return %arg0, %c0_i32, %arg1, %c0_i32_0 : i32, i32, i32, i32
  }
}

</mosaic_0001>

<bundles_post_ra>
// kernel: _mha_forward_cross.3
= control target key start
LH: loop header
LB: loop body
LE: loop exit
PB: predicated region body
PF: predicated region fallthrough
CT: control target
= control target key end

     0   :  { %s3541_s0 = inlined_call_operand.vmem [shape: bf16[2,8,512], index: 0, kind: input, shape index: {}]   ;;  %s3542_s1 = inlined_call_operand.vmem [shape: bf16[2,8,512], index: 1, kind: input, shape index: {}]   ;;  %s3543_s2 = inlined_call_operand.vmem [shape: bf16[2,8,512], index: 2, kind: input, shape index: {}]   ;;  %s3544_s3 = inlined_call_operand.vmem [shape: bf16[2,8,8], index: 3, kind: input, shape index: {}]   ;;  %s3545_s4 = inlined_call_operand.hbm [shape: bf16[512,512], index: 4, kind: input, shape index: {}]   ;;  %s3546_s5 = inlined_call_operand.hbm [shape: f32[1,512], index: 5, kind: input, shape index: {}]   ;;  %s3547_s6 = inlined_call_operand.hbm [shape: f32[2,8,512], index: 6, kind: output, shape index: {0}]   ;;  %s3548_s7 = inlined_call_operand.hbm [shape: bf16[2,8,8,8], index: 7, kind: output, shape index: {1}]  }
   0x1   :  { %3551 = sst [smem:[#allocation15_spill]] %s3541_s0 }
   0x2   :  { %3552 = sst [smem:[#allocation16_spill]] %s3542_s1 }
   0x3   :  { %13 = vsyncpa [#allocation4], 0 }
   0x4   :  { %14 = vsyncpa [#allocation7], 0 }
   0x5   :  { %15 = vsyncpa [#allocation5], 0 }
   0x6   :  { %17 = vsyncpa [#allocation5 + $0x1], 0 }
   0x7   :  { %18 = vsyncpa [#allocation10], 0 }
   0x8   :  { %20 = vsyncpa [#allocation10 + $0x1], 0  ;;  %s3194_s24 = smov 0   ;;  %s3196_s25 = smov 0  }
   0x9   :  { %s3198_s26 = smov 0   ;;  %s3200_s27 = smov 0  }
   0xa   :  { %s3202_s28 = smov 0   ;;  %s3204_s29 = smov 0  }
   0xb LB: > { %s2157_s30 = sadd.s32 4294967295, %s3146_s29   ;;  %s2158_s8 = sadd.s32 4294967294, %s3146_s29   ;;  %s3146_s29 = sphi %s3204_s29, %s26_s29   ;;  %s3142_s28 = sphi %s3202_s28, %s3565_s28   ;;  %s3138_s27 = sphi %s3200_s27, %s3564_s27   ;;  %s3134_s26 = sphi %s3198_s26, %s3563_s26   ;;  %s3130_s25 = sphi %s3196_s25, %s3562_s25   ;;  %s3126_s24 = sphi %s3194_s24, %s3561_s24  }
   0xc   : > { %s38_s9 = sadd.s32 1, %s3142_s28  ;;  %s197_s10 = sadd.s32 1, %s3134_s26 }
   0xd   : > { %p40_p0 = scmp.ge.s32.totalorder %s38_s9, 2  ;;  %p207_p1 = scmp.ne.s32.totalorder %s3134_s26, %s3130_s25 }
   0xe   : > { %p208_p2 = scmp.eq.s32.totalorder %s2157_s30, 1  ;;  %p213_p3 = scmp.ne.s32.totalorder %s3130_s25, %s3126_s24 }
   0xf   : > { %s3567_s9 = smov (%p40_p0, %s38_s9), 0  ;;  %p214_p5 = scmp.eq.s32.totalorder %s2158_s8, 1 }
  0x10   : > { %p3234_p4 = por %p208_p2, %p207_p1  ;;  %s192_s12 = ssub.s32 %s3142_s28, %s3567_s9 }
  0x11   : > { %p2159_p6 = scmp.ge.s32.totalorder %s3146_s29, 1  ;;  %p195_p7 = scmp.eq.s32.totalorder %s192_s12, 0 }
  0x12   : > { %p3241_p8 = por %p214_p5, %p213_p3  ;;  %p249_p9 = scmp.lt.s32.totalorder %s3146_s29, 3 }
  0x13   : > { %s3247_s14 = scalar_select %p195_p7, %s3134_s26, %s197_s10  }
  0x14   : > { %p3249_p10 = pnand %p2159_p6, %p249_p9  ;;  %p3253_p11 = scmp.eq.s32.totalorder %s2157_s30, 0 }
  0x15   : > { %s260_s19 = sshll.u32 %s3545_s4, 4  ;;  %s3148_s20 = smov [#allocation3]   ;;  %s261_s19 = int_to_ptr.hbm [resolvable:$true] %s260_s19 }
  0x16   : > { %p2863_p12 = pneg %p3249_p10  ;;  %s262_s21 = sshll.u32 %s3148_s20, 4  ;;  %s263_s21 = int_to_ptr.vmem [resolvable:$true] %s262_s21 }
  0x17   : > { %s275_s30 = sshll.u32 %s3546_s5, 4  ;;  %s3149_s8 = smov 256   ;;  %s276_s30 = int_to_ptr.hbm [resolvable:$true] %s275_s30 }
  0x18   : > { %p2864_p13 = pnand %p3253_p11, %p2863_p12  ;;  %s3150_s10 = smov 16  }
  0x19   : > { %s3151_s12 = smov [#allocation6]   ;;  %328 = sbr.rel (%p3249_p10) target bundleno = 1244 (0x4dc), region = 44 }
  0x1a   : > { %2866 = dma.hbm_to_vmem [thread:$0]  (!%p2864_p13), %s261_s19, 16384, %s263_s21, [#allocation4], %s3149_s8, %s3149_s8, %s3150_s10  }
  0x1b   : > { %s277_s17 = sshll.u32 %s3151_s12, 4  ;;  %s278_s17 = int_to_ptr.vmem [resolvable:$true] %s277_s17 }
  0x1c   : > { %2869 = dma.hbm_to_vmem [thread:$0]  (!%p2864_p13), %s276_s30, 64, %s278_s17, [#allocation7]  }
  0x1e   : > { %3109 = dma.done.wait (%p3253_p11), [#allocation4], 16384  }
  0x1f   : > { %3111 = vsyncadd (%p3253_p11), [#allocation4], 4294950912 }
  0x20   : > { %3113 = dma.done.wait (%p3253_p11), [#allocation7], 64  }
  0x21   : > { %3115 = vsyncadd (%p3253_p11), [#allocation7], 4294967232  ;;  %p392_p0 = scmp.lt.s32.totalorder %s3138_s27, 1  ;;  %s3557_s1 = sld [smem:[#allocation16_spill]]  ;;  %vm427_vm0 = vcmask 523264   ;;  %vm447_vm1 = vcmask 64512  }
  0x22   : > { %s3558_s0 = sld [smem:[#allocation15_spill]]  ;;  %s3550_s16 = smov 64   ;;  %vm465_vm2 = vcmask 1043456   ;;  %vm460_vm3 = vcmask 60416   ;;  %vm483_vm4 = vcmask 519168   ;;  %vm557_vm5 = vcmask 1043968  }
  0x23   : > { %s393_s18 = scalar_select %p392_p0, %s3138_s27, 1 }
  0x24   : > { %s2849_s23 = sshll.u32 %s3138_s27, 5 }
  0x25   : > { %s3279_s19 = sshll.u32 %s393_s18, 4  ;;  %s2174_s8 = sshll.u32 %s393_s18, 2 }
  0x26   : > { %s417_s17 = scalar_lea.vmem %s3544_s3, %s2174_s8  ;;  %s3338_s20 = scalar_lea.vmem %s3543_s2, %s3279_s19 }
  0x27   : > { %s405_s21 = scalar_lea.vmem %s3557_s1, %s3279_s19  ;;  %v425_v12 = vld [vmem:[%s417_s17] sm:$0xf]  ;;  %s1975_s10 = scalar_lea.hbm %s3548_s7, %s2849_s23 }
  0x28   : > { %s400_s30 = scalar_lea.vmem %s3558_s0, %s3279_s19  ;;  %v421_v0 = vld [vmem:[%s405_s21] sm:$0xff]  ;;  %v3304_v14 = vunpack.c.l.bf16 %v425_v12  ;;  %v3306_v15 = vld [vmem:[%s405_s21 + $0x8] sm:$0xff]  ;;  %s3347_s21 = sand.u32 1, %s3130_s25  }
  0x29   : > { %v432_v1 = vsel %vm427_vm0, %v421_v0, 0  ;;  %v419_v2 = vld [vmem:[%s400_s30] sm:$0xff]  ;;  %v491_v5 = vunpack.c.l.b16 %v421_v0  ;;  %v3297_v9 = vld [vmem:[%s400_s30 + $0x8] sm:$0xff]  ;;  %v743_v18 = vunpack.c.l.b16 %v3306_v15  ;;  %v561_v27 = vunpack.c.h.b16 %v421_v0  ;;  %s3549_s22 = sshll.u32 %s3347_s21, 5  ;;  %s1978_s12 = sshll.u32 %s1975_s10, 4  ;;  %s1979_s12 = int_to_ptr.hbm [resolvable:$true] %s1978_s12 }
  0x2a   : > { %441 = vmatpush.bf16.xpose.msra.mxu0 %v432_v1  ;;  %v559_v3 = vunpack.c.h.b16 %v419_v2  ;;  %v486_v7 = vunpack.c.l.b16 %v419_v2  ;;  %v738_v11 = vunpack.c.l.b16 %v3297_v9  ;;  %v810_v19 = vunpack.c.h.b16 %v3297_v9  ;;  %v3341_v48 = vld [vmem:[%s3338_s20] sm:$0xff]  ;;  %s3354_s19 = scalar_lea.vmem [#allocation9], %s3549_s22  ;;  %s1946_s18 = scalar_lea.sflag [#allocation10], %s3347_s21 }
  0x2b   : > { %v492_v6 = vpack.c.b16 %v491_v5, %v491_v5  ;;  %v744_v22 = vpack.c.b16 %v743_v18, %v743_v18  ;;  %v562_v28 = vpack.c.b16 %v561_v27, %v561_v27  ;;  %v812_v29 = vunpack.c.h.b16 %v3306_v15  ;;  %s1976_s17 = sshll.u32 %s3354_s19, 4  ;;  %s3042_s15 = sshra.s32 %s1979_s12, 4  ;;  %s1977_s17 = int_to_ptr.vmem [resolvable:$true] %s1976_s17  ;;  %s3043_s15 = int_to_ptr.hbm [resolvable:$true] %s3042_s15 }
  0x2c   : > { %v3290_v4 = vpack.c.b16 %v559_v3, %v559_v3  ;;  %v487_v8 = vpack.c.b16 %v486_v7, %v486_v7  ;;  %v739_v13 = vpack.c.b16 %v738_v11, %v738_v11  ;;  %v3312_v23 = vpack.c.b16 %v810_v19, %v810_v19  ;;  %s3048_s0 = scalar_lea.hbm %s3548_s7, 64  ;;  %p3049_p5 = scmp.lt.s32.totalorder %s3043_s15, %s3548_s7 }
  0x2d   : > { %745 = vrot.lane.b32.xlu2 %v744_v22, %s3550_s16  ;;  %v813_v30 = vpack.c.b16 %v812_v29, %v812_v29  ;;  %v467_v49 = vsel %vm465_vm2, %v3341_v48, 0  ;;  %v567_v50 = vsel %vm427_vm0, %v562_v28, 0  ;;  %v687_v55 = vsel %vm427_vm0, %v3306_v15, 0 }
  0x2e   : > { %619 = vrot.lane.b32.xlu1 %v3290_v4, %s3550_s16  ;;  %476 = vmatpush.bf16.msra.mxu1 %v467_v49 }
  0x2f   : > { %v818_v58 = vsel %vm427_vm0, %v813_v30, 0 }
  0x31   : > { %2175 = vmatmul.msk.bf16.vlgmr.msra.gmra.mxu0 %vm427_vm0, %v419_v2 }
  0x32   : > { %576 = vmatpush.bf16.xpose.msrb.mxu1 %v567_v50 }
  0x36   : > { %493 = vrot.lane.b32.xlu1 %v492_v6, %s3550_s16 }
  0x3e   : > { %488 = vrot.lane.b32.xlu1 %v487_v8, %s3550_s16 }
  0x46   : > { %740 = vrot.lane.b32.xlu1 %v739_v13, %s3550_s16 }
  0x4e   : > { %870 = vrot.lane.b32.xlu1 %v3312_v23, %s3550_s16 }
  0x87   : > { %v746_v36 = vpop.permute.xlu2 %745 }
  0x88   : > { %v751_v38 = vsel %vm427_vm0, %v746_v36, 0 }
  0xa0   : > { %v620_v10 = vpop.permute.xlu1 %619 }
  0xa8   : > { %v494_v17 = vpop.permute.xlu1 %493 }
  0xa9   : > { %v499_v21 = vsel %vm427_vm0, %v494_v17, 0 }
  0xaa   : > { %508 = vmatpush.bf16.xpose.msra.mxu2 %v499_v21 }
  0xae   : > { %v443_v16 = vpop.f32.mrf.mxu0 }
  0xaf   : > { %v444_v20 = vadd.f32 %v443_v16, %v3304_v14 }
  0xb0   : > { %v489_v26 = vpop.permute.xlu1 %488 }
  0xb1   : > { %v448_v24 = vsel %vm447_vm1, %v444_v20, -inf  ;;  %2177 = vmatmul.msk.bf16.vlgmr.msra.gmra.mxu2 %vm427_vm0, %v489_v26 }
  0xb2   : > { %449 = vmax.xlane.f32.xlu0 %v448_v24 }
  0xb6   : > { %v445_v25 = vpop.f32.mrf.mxu0 }
  0xb8   : > { %v741_v46 = vpop.permute.xlu1 %740 }
  0xc0   : > { %v871_v47 = vpop.permute.xlu1 %870 }
  0xc6   : > { %621 = vrot.lane.b32.xlu0 %v562_v28, %s3550_s16 }
  0xce   : > { %872 = vrot.lane.b32.xlu0 %v813_v30, %s3550_s16 }
 0x125   : > { %v450_v31 = vpop.xlane.xlu0 %449 }
 0x126   : > { %v451_v32 = vsub.f32 %v444_v20, %v450_v31 }
 0x128   : > { %v452_v33 = vmul.f32 1.442695, %v451_v32  ;;  %v596_v32 = vunpack.c.h.b16 %v3341_v48 }
 0x12a   : > { %2936 = vpow2.f32 %v452_v33 }
 0x130   : > { %v2937_v34 = vpop.eup %2936 }
 0x131   : > { %v454_v35 = vsel %vm447_vm1, %v2937_v34, 0.0 }
 0x132   : > { %455 = vadd.xlane.f32.xlu2 %v454_v35 }
 0x134   : > { %v510_v42 = vpop.f32.mrf.mxu2 }
 0x135   : > { %v3328_v43 = vadd.f32 %v510_v42, %v3304_v14 }
 0x137   : > { %v514_v44 = vsel %vm447_vm1, %v3328_v43, -inf }
 0x138   : > { %v622_v37 = vpop.permute.xlu0 %621 }
 0x139   : > { %v627_v39 = vsel %vm427_vm0, %v622_v37, 0 }
 0x13a   : > { %636 = vmatpush.bf16.xpose.msrb.mxu0 %v627_v39  ;;  %515 = vmax.xlane.f32.xlu2 %v514_v44  ;;  %v529_v39 = vunpack.c.l.b16 %v3341_v48 }
 0x13c   : > { %v512_v45 = vpop.f32.mrf.mxu2 }
 0x140   : > { %v873_v40 = vpop.permute.xlu0 %872 }
 0x141   : > { %2183 = vmatmul.msk.bf16.vlgmr.msrb.gmra.mxu0 %vm427_vm0, %v620_v10  ;;  %v878_v41 = vsel %vm427_vm0, %v873_v40, 0 }
 0x142   : > { %760 = vmatpush.bf16.xpose.msra.mxu0 %v751_v38  ;;  %v3392_v38 = vld [vmem:[%s3338_s20 + $0x8] sm:$0xff]  ;;  %s3044_s20 = scalar_lea.hbm %s3043_s15, 32 }
 0x143   : > { %v781_v40 = vunpack.c.l.b16 %v3392_v38  ;;  %p3045_p1 = scmp.ne.s32.totalorder %s3043_s15, %s3044_s20  ;;  %p3050_p6 = scmp.lt.s32.totalorder %s3048_s0, %s3044_s20 }
 0x145   : > { %v782_v42 = vpack.c.b16 %v781_v40, %v781_v40  ;;  %p3046_p2 = pnand %p3045_p1, %p3234_p4  ;;  %p3051_p7 = por %p3050_p6, %p3049_p5 }
 0x147   : > { %p3047_p3 = pneg %p3046_p2 }
 0x149   : > { %p3052_p9 = pnand %p3051_p7, %p3047_p3 }
 0x14a   : > { %887 = vmatpush.bf16.xpose.msrb.mxu0 %v878_v41  ;;  %v530_v41 = vpack.c.b16 %v529_v39, %v529_v39 }
 0x151   : > { %2189 = vmatmul.msk.bf16.vlgmr.msra.gmra.mxu0 %vm427_vm0, %v741_v46 }
 0x161   : > { %2195 = vmatmul.msk.bf16.vlgmr.msrb.gmra.mxu0 %vm427_vm0, %v871_v47 }
 0x1a5   : > { %v456_v51 = vpop.xlane.xlu2 %455 }
 0x1a6   : > { %2938 = vrcp.f32 %v456_v51 }
 0x1ac   : > { %v2939_v52 = vpop.eup %2938 }
 0x1ad   : > { %v458_v53 = vmul.f32 %v2939_v52, %v2937_v34  ;;  %v516_v16 = vpop.xlane.xlu2 %515  ;;  %v3385_v34 = vpack.c.b16 %v596_v32, %v596_v32 }
 0x1ae   : > { %v517_v21 = vsub.f32 %v3328_v43, %v516_v16  ;;  %v847_v43 = vunpack.c.h.b16 %v3392_v38 }
 0x1af   : > { %v459_v54 = vpack.c.bf16 %v458_v53, %v458_v53 }
 0x1b0   : > { %v3399_v44 = vpack.c.b16 %v847_v43, %v847_v43 }
 0x1b1   : > { %461 = vst.msk [vmem:[%s3354_s19] sm:$0xf] %vm460_vm3, %v459_v54  ;;  %2176 = vmatmul.msk.bf16.vlgmr.msra.gmra.mxu1 %vm447_vm1, %v459_v54 }
 0x1b2   : > { %696 = vmatpush.bf16.xpose.msra.mxu1 %v687_v55  ;;  %v853_v32 = vsel %vm465_vm2, %v3399_v44, 0 }
 0x1be   : > { %v638_v56 = vpop.f32.mrf.mxu0 }
 0x1bf   : > { %v639_v57 = vadd.f32 %v638_v56, %v3304_v14 }
 0x1c1   : > { %2180 = vmatmul.msk.bf16.vlgmr.msrb.gmra.mxu1 %vm427_vm0, %v3290_v4  ;;  %v642_v59 = vsel %vm447_vm1, %v639_v57, -inf }
 0x1c2   : > { %643 = vmax.xlane.f32.xlu0 %v642_v59  ;;  %827 = vmatpush.bf16.xpose.msrb.mxu1 %v818_v58 }
 0x1c6   : > { %v640_v60 = vpop.f32.mrf.mxu0 }
 0x1ce   : > { %v762_v61 = vpop.f32.mrf.mxu0 }
 0x1cf   : > { %v763_v62 = vadd.f32 %v762_v61, %v3304_v14 }
 0x1d1   : > { %2186 = vmatmul.msk.bf16.vlgmr.msra.gmra.mxu1 %vm427_vm0, %v3297_v9  ;;  %v766_v63 = vsel %vm447_vm1, %v763_v62, -inf }
 0x1d2   : > { %767 = vmax.xlane.f32.xlu1 %v766_v63 }
 0x1d6   : > { %v764_v0 = vpop.f32.mrf.mxu0 }
 0x1de   : > { %v889_v1 = vpop.f32.mrf.mxu0 }
 0x1df   : > { %v890_v2 = vadd.f32 %v889_v1, %v3304_v14 }
 0x1e1   : > { %2192 = vmatmul.msk.bf16.vlgmr.msrb.gmra.mxu1 %vm427_vm0, %v3312_v23  ;;  %v893_v3 = vsel %vm447_vm1, %v890_v2, -inf  ;;  %v518_v23 = vmul.f32 1.442695, %v517_v21 }
 0x1e2   : > { %894 = vmax.xlane.f32.xlu2 %v893_v3 }
 0x1e6   : > { %v891_v4 = vpop.f32.mrf.mxu0 }
 0x22e   : > { %v478_v5 = vpop.f32.mrf.mxu1 }
 0x22f   : > { %v482_v6 = vpack.c.bf16 %v478_v5, %v478_v5 }
 0x231   : > { %484 = vst.msk [vmem:[#allocation2] sm:$0xf] %vm483_vm4, %v482_v6 }
 0x235   : > { %v644_v7 = vpop.xlane.xlu0 %643 }
 0x236   : > { %v645_v8 = vsub.f32 %v639_v57, %v644_v7  ;;  %v480_v9 = vpop.f32.mrf.mxu1 }
 0x238   : > { %v646_v10 = vmul.f32 1.442695, %v645_v8 }
 0x23a   : > { %2940 = vpow2.f32 %v646_v10 }
 0x23e   : > { %v578_v11 = vpop.f32.mrf.mxu1 }
 0x23f   : > { %v579_v15 = vadd.f32 %v578_v11, %v3304_v14 }
 0x240   : > { %v2941_v12 = vpop.eup %2940 }
 0x241   : > { %v648_v13 = vsel %vm447_vm1, %v2941_v12, 0.0  ;;  %v582_v20 = vsel %vm447_vm1, %v579_v15, -inf }
 0x242   : > { %649 = vadd.xlane.f32.xlu2 %v648_v13 }
 0x245   : > { %v768_v17 = vpop.xlane.xlu1 %767 }
 0x246   : > { %v769_v18 = vsub.f32 %v763_v62, %v768_v17  ;;  %v580_v19 = vpop.f32.mrf.mxu1 }
 0x248   : > { %v770_v22 = vmul.f32 1.442695, %v769_v18 }
 0x24a   : > { %2942 = vpow2.f32 %v770_v22  ;;  %583 = vmax.xlane.f32.xlu2 %v582_v20 }
 0x24b   : > { %2944 = vpow2.f32 %v518_v23 }
 0x24e   : > { %v698_v24 = vpop.f32.mrf.mxu1 }
 0x24f   : > { %v699_v25 = vadd.f32 %v698_v24, %v3304_v14 }
 0x250   : > { %v2943_v26 = vpop.eup %2942 }
 0x251   : > { %v772_v27 = vsel %vm447_vm1, %v2943_v26, 0.0  ;;  %v702_v28 = vsel %vm447_vm1, %v699_v25, -inf  ;;  %v3380_v29 = vpop.eup %2944 }
 0x252   : > { %773 = vadd.xlane.f32.xlu1 %v772_v27  ;;  %703 = vmax.xlane.f32.xlu0 %v702_v28  ;;  %v520_v31 = vsel %vm447_vm1, %v3380_v29, 0.0 }
 0x256   : > { %v700_v30 = vpop.f32.mrf.mxu1 }
 0x25a   : > { %521 = vadd.xlane.f32.xlu1 %v520_v31 }
 0x25e   : > { %v829_v33 = vpop.f32.mrf.mxu1 }
 0x25f   : > { %v830_v35 = vadd.f32 %v829_v33, %v3304_v14  ;;  %v895_v14 = vpop.xlane.xlu2 %894 }
 0x260   : > { %v896_v45 = vsub.f32 %v890_v2, %v895_v14 }
 0x261   : > { %v833_v36 = vsel %vm447_vm1, %v830_v35, -inf }
 0x262   : > { %834 = vmax.xlane.f32.xlu0 %v833_v36  ;;  %656 = vrot.lane.b32.xlu2 %v3385_v34, %s3550_s16  ;;  %v897_v46 = vmul.f32 1.442695, %v896_v45 }
 0x264   : > { %2946 = vpow2.f32 %v897_v46 }
 0x266   : > { %v831_v37 = vpop.f32.mrf.mxu1 }
 0x26a   : > { %v2947_v47 = vpop.eup %2946 }
 0x26b   : > { %v899_v48 = vsel %vm447_vm1, %v2947_v47, 0.0 }
 0x273   : > { %531 = vrot.lane.b32.xlu1 %v530_v41, %s3550_s16 }
 0x276   : > { %783 = vrot.lane.b32.xlu0 %v782_v42, %s3550_s16 }
 0x27b   : > { %907 = vrot.lane.b32.xlu1 %v3399_v44, %s3550_s16 }
 0x28b   : > { %900 = vadd.xlane.f32.xlu2 %v899_v48  ;;  %v2751_v48 = vld [vmem:[#allocation3 + $0xec] sm:$0xf0] }
 0x2b5   : > { %v650_v49 = vpop.xlane.xlu2 %649 }
 0x2b6   : > { %2948 = vrcp.f32 %v650_v49  ;;  %v2440_v49 = vld [vmem:[#allocation3 + $0x1e0] sm:$0xf] }
 0x2bc   : > { %v2949_v50 = vpop.eup %2948 }
 0x2bd   : > { %v652_v51 = vmul.f32 %v2949_v50, %v2941_v12  ;;  %v584_v52 = vpop.xlane.xlu2 %583 }
 0x2be   : > { %v585_v53 = vsub.f32 %v579_v15, %v584_v52  ;;  %v2296_v52 = vld [vmem:[#allocation3 + $0xc0] sm:$0xf] }
 0x2bf   : > { %v653_v54 = vpack.c.bf16 %v652_v51, %v652_v51  ;;  %v2783_v51 = vld [vmem:[#allocation3 + $0x1ec] sm:$0xf0] }
 0x2c0   : > { %v586_v55 = vmul.f32 1.442695, %v585_v53  ;;  %v2747_v53 = vld [vmem:[#allocation3 + $0xcc] sm:$0xf0] }
 0x2c1   : > { %2184 = vst.msk [vmem:[%s3354_s19 + $0xc] sm:$0xf] %vm460_vm3, %v653_v54 }
 0x2c2   : > { %2950 = vpow2.f32 %v586_v55  ;;  %v2424_v55 = vld [vmem:[#allocation3 + $0x1c0] sm:$0xf] }
 0x2c5   : > { %v774_v56 = vpop.xlane.xlu1 %773  ;;  %v657_v57 = vpop.permute.xlu2 %656 }
 0x2c6   : > { %2952 = vrcp.f32 %v774_v56  ;;  %v704_v58 = vpop.xlane.xlu0 %703  ;;  %v662_v59 = vsel %vm465_vm2, %v657_v57, 0  ;;  %v2779_v56 = vld [vmem:[#allocation3 + $0x1cc] sm:$0xf0] }
 0x2c7   : > { %v705_v60 = vsub.f32 %v699_v25, %v704_v58  ;;  %671 = vmatpush.bf16.msrb.mxu2 %v662_v59  ;;  %v602_v25 = vsel %vm465_vm2, %v3385_v34, 0  ;;  %v2297_v58 = vor.u32 %v2747_v53, %v2296_v52  ;;  %v2425_v59 = vor.u32 %v2779_v56, %v2424_v55  ;;  %v2737_v53 = vld [vmem:[#allocation3 + $0x84] sm:$0xf] }
 0x2c8   : > { %v2951_v61 = vpop.eup %2950  ;;  %v2769_v55 = vld [vmem:[#allocation3 + $0x184] sm:$0xf] }
 0x2c9   : > { %v706_v62 = vmul.f32 1.442695, %v705_v60  ;;  %v588_v63 = vsel %vm447_vm1, %v2951_v61, 0.0  ;;  %v2280_v60 = vld [vmem:[#allocation3 + $0xa0] sm:$0xf] }
 0x2ca   : > { %589 = vadd.xlane.f32.xlu0 %v588_v63  ;;  %2185 = vmatmul.msk.bf16.vlgmr.msrb.gmra.mxu2 %vm447_vm1, %v653_v54  ;;  %v2441_v54 = vor.u32 %v2783_v51, %v2440_v49  ;;  %v2775_v63 = vld [vmem:[#allocation3 + $0x1ac] sm:$0xf0]  ;;  %v2773_v49 = vld [vmem:[#allocation3 + $0x1a4] sm:$0xf] }
 0x2cb   : > { %2954 = vpow2.f32 %v706_v62  ;;  %v2408_v62 = vld [vmem:[#allocation3 + $0x1a0] sm:$0xf] }
 0x2cc   : > { %v2953_v0 = vpop.eup %2952 }
 0x2cd   : > { %v776_v1 = vmul.f32 %v2953_v0, %v2943_v26  ;;  %v522_v2 = vpop.xlane.xlu1 %521  ;;  %v720_v26 = vsel %vm465_vm2, %v3392_v38, 0 }
 0x2ce   : > { %2956 = vrcp.f32 %v522_v2  ;;  %v2264_v2 = vld [vmem:[#allocation3 + $0x80] sm:$0xf] }
 0x2cf   : > { %v777_v3 = vpack.c.bf16 %v776_v1, %v776_v1  ;;  %v2409_v1 = vor.u32 %v2775_v63, %v2408_v62  ;;  %v2378_v63 = vld [vmem:[#allocation3 + $0x170] sm:$0xf0] }
 0x2d1   : > { %v2955_v4 = vpop.eup %2954  ;;  %2190 = vst.msk [vmem:[%s3354_s19 + $0x14] sm:$0xf] %vm460_vm3, %v777_v3 }
 0x2d2   : > { %v708_v5 = vsel %vm447_vm1, %v2955_v4, 0.0 }
 0x2d3   : > { %709 = vadd.xlane.f32.xlu1 %v708_v5  ;;  %v2771_v5 = vld [vmem:[#allocation3 + $0x18c] sm:$0xf0] }
 0x2d4   : > { %v2957_v6 = vpop.eup %2956 }
 0x2d5   : > { %v835_v7 = vpop.xlane.xlu0 %834  ;;  %v524_v8 = vmul.f32 %v2957_v6, %v3380_v29 }
 0x2d6   : > { %v836_v9 = vsub.f32 %v830_v35, %v835_v7 }
 0x2d7   : > { %v525_v10 = vpack.c.bf16 %v524_v8, %v524_v8  ;;  %v2248_v8 = vld [vmem:[#allocation3 + $0x60] sm:$0xf] }
 0x2d8   : > { %v837_v11 = vmul.f32 1.442695, %v836_v9  ;;  %v2735_v9 = vld [vmem:[#allocation3 + $0x6c] sm:$0xf0] }
 0x2d9   : > { %2178 = vst.msk [vmem:[%s3354_s19 + $0x4] sm:$0xf] %vm460_vm3, %v525_v10 }
 0x2da   : > { %2958 = vpow2.f32 %v837_v11  ;;  %v2767_v11 = vld [vmem:[#allocation3 + $0x16c] sm:$0xf0] }
 0x2e0   : > { %v2959_v12 = vpop.eup %2958 }
 0x2e1   : > { %v839_v13 = vsel %vm447_vm1, %v2959_v12, 0.0 }
 0x2e2   : > { %840 = vadd.xlane.f32.xlu2 %v839_v13 }
 0x2e5   : > { %v532_v15 = vpop.permute.xlu1 %531 }
 0x2e6   : > { %v537_v16 = vsel %vm465_vm2, %v532_v15, 0  ;;  %v2232_v15 = vld [vmem:[#allocation3 + $0x40] sm:$0xf] }
 0x2e7   : > { %546 = vmatpush.bf16.msra.mxu3 %v537_v16  ;;  %v2731_v16 = vld [vmem:[#allocation3 + $0x4c] sm:$0xf0] }
 0x2e8   : > { %v784_v17 = vpop.permute.xlu0 %783 }
 0x2e9   : > { %v789_v18 = vsel %vm465_vm2, %v784_v17, 0  ;;  %v2360_v17 = vld [vmem:[#allocation3 + $0x140] sm:$0xf] }
 0x2ea   : > { %2179 = vmatmul.msk.bf16.vlgmr.msra.gmra.mxu3 %vm447_vm1, %v525_v10  ;;  %798 = vmatpush.bf16.msra.mxu2 %v789_v18  ;;  %v2376_v10 = vld [vmem:[#allocation3 + $0x160] sm:$0xf]  ;;  %v2763_v18 = vld [vmem:[#allocation3 + $0x14c] sm:$0xf0] }
 0x2eb   : > { %611 = vmatpush.bf16.msrb.mxu3 %v602_v25  ;;  %v2377_v13 = vor.u32 %v2767_v11, %v2376_v10  ;;  %v2847_v11 = vld [vmem:[#allocation3 + $0x3ec] sm:$0xf0] }
 0x2ed   : > { %2191 = vmatmul.msk.bf16.vlgmr.msra.gmra.mxu2 %vm447_vm1, %v777_v3  ;;  %v908_v19 = vpop.permute.xlu1 %907  ;;  %v2739_v3 = vld [vmem:[#allocation3 + $0x8c] sm:$0xf0] }
 0x2ee   : > { %v913_v20 = vsel %vm465_vm2, %v908_v19, 0  ;;  %v2265_v6 = vor.u32 %v2739_v3, %v2264_v2  ;;  %v2233_v19 = vor.u32 %v2731_v16, %v2232_v15  ;;  %v2234_v2 = vld [vmem:[#allocation3 + $0x50] sm:$0xf0]  ;;  %v2761_v3 = vld [vmem:[#allocation3 + $0x144] sm:$0xf] }
 0x2ef   : > { %922 = vmatpush.bf16.msrb.mxu2 %v913_v20  ;;  %729 = vmatpush.bf16.msra.mxu3 %v720_v26  ;;  %v2361_v20 = vor.u32 %v2763_v18, %v2360_v17  ;;  %v2757_v17 = vld [vmem:[#allocation3 + $0x124] sm:$0xf]  ;;  %v2346_v18 = vld [vmem:[#allocation3 + $0x130] sm:$0xf0] }
 0x2fe   : > { %v901_v21 = vpop.xlane.xlu2 %900 }
 0x2ff   : > { %2960 = vrcp.f32 %v901_v21  ;;  %v2216_v21 = vld [vmem:[#allocation3 + $0x20] sm:$0xf] }
 0x305   : > { %v2961_v22 = vpop.eup %2960 }
 0x306   : > { %v903_v23 = vmul.f32 %v2961_v22, %v2947_v47  ;;  %v2312_v47 = vld [vmem:[#allocation3 + $0xe0] sm:$0xf]  ;;  %v2727_v22 = vld [vmem:[#allocation3 + $0x2c] sm:$0xf0] }
 0x307   : > { %v2313_v50 = vor.u32 %v2751_v48, %v2312_v47  ;;  %v2217_v25 = vor.u32 %v2727_v22, %v2216_v21  ;;  %v2282_v47 = vld [vmem:[#allocation3 + $0xb0] sm:$0xf0]  ;;  %v2811_v21 = vld [vmem:[#allocation3 + $0x2cc] sm:$0xf0]  ;;  %v2680_v22 = vld [vmem:[#allocation3 + $0x3c0] sm:$0xf] }
 0x308   : > { %v904_v24 = vpack.c.bf16 %v903_v23, %v903_v23  ;;  %v2344_v23 = vld [vmem:[#allocation3 + $0x120] sm:$0xf] }
 0x309   : > { %1728 = vmatpush.bf16.msra.mxu1 %v2313_v50  ;;  %v2410_v50 = vld [vmem:[#allocation3 + $0x1b0] sm:$0xf0] }
 0x30a   : > { %2196 = vst.msk [vmem:[%s3354_s19 + $0x1c] sm:$0xf] %vm460_vm3, %v904_v24  ;;  %2197 = vmatmul.msk.bf16.vlgmr.msrb.gmra.mxu2 %vm447_vm1, %v904_v24  ;;  %v2759_v24 = vld [vmem:[#allocation3 + $0x12c] sm:$0xf0]  ;;  %v2413_v52 = vor.u32 %v2773_v49, %v2410_v50  ;;  %v2488_v49 = vld [vmem:[#allocation3 + $0x240] sm:$0xf] }
 0x30b   : > { %v2795_v50 = vld [vmem:[#allocation3 + $0x24c] sm:$0xf0] }
 0x30d   : > { %1729 = vmatpush.bf16.msra.mxu1 %v2297_v58 }
 0x33d   : > { %v590_v27 = vpop.xlane.xlu0 %589 }
 0x33e   : > { %2962 = vrcp.f32 %v590_v27  ;;  %v2345_v27 = vor.u32 %v2759_v24, %v2344_v23  ;;  %v2843_v23 = vld [vmem:[#allocation3 + $0x3cc] sm:$0xf0] }
 0x344   : > { %v2963_v28 = vpop.eup %2962 }
 0x345   : > { %v592_v29 = vmul.f32 %v2963_v28, %v2951_v61  ;;  %v2743_v61 = vld [vmem:[#allocation3 + $0xac] sm:$0xf0]  ;;  %v2200_v28 = vld [vmem:[#allocation3] sm:$0xf] }
 0x346   : > { %v710_v30 = vpop.xlane.xlu1 %709  ;;  %v2281_v0 = vor.u32 %v2743_v61, %v2280_v60  ;;  %v2250_v60 = vld [vmem:[#allocation3 + $0x70] sm:$0xf0]  ;;  %v2765_v61 = vld [vmem:[#allocation3 + $0x164] sm:$0xf] }
 0x347   : > { %2964 = vrcp.f32 %v710_v30  ;;  %v593_v31 = vpack.c.bf16 %v592_v29, %v592_v29  ;;  %v2723_v29 = vld [vmem:[#allocation3 + $0xc] sm:$0xf0]  ;;  %v2328_v30 = vld [vmem:[#allocation3 + $0x100] sm:$0xf] }
 0x348   : > { %1730 = vmatpush.bf16.msra.mxu1 %v2281_v0  ;;  %v2381_v0 = vor.u32 %v2765_v61, %v2378_v63 }
 0x349   : > { %2181 = vst.msk [vmem:[%s3354_s19 + $0x8] sm:$0xf] %vm460_vm3, %v593_v31  ;;  %2182 = vmatmul.msk.bf16.vlgmr.msrb.gmra.mxu3 %vm447_vm1, %v593_v31 }
 0x34a   : > { %862 = vmatpush.bf16.msrb.mxu3 %v853_v32  ;;  %v2755_v32 = vld [vmem:[#allocation3 + $0x10c] sm:$0xf0] }
 0x34c   : > { %1731 = vmatpush.bf16.msra.mxu1 %v2265_v6 }
 0x34d   : > { %v2965_v33 = vpop.eup %2964  ;;  %v673_v34 = vpop.f32.mrf.mxu2 }
 0x34e   : > { %v712_v35 = vmul.f32 %v2965_v33, %v2955_v4  ;;  %v677_v36 = vpack.c.bf16 %v673_v34, %v673_v34  ;;  %v2392_v4 = vld [vmem:[#allocation3 + $0x180] sm:$0xf]  ;;  %v2749_v33 = vld [vmem:[#allocation3 + $0xe4] sm:$0xf]  ;;  %v2314_v34 = vld [vmem:[#allocation3 + $0xf0] sm:$0xf0] }
 0x34f   : > { %v2393_v7 = vor.u32 %v2771_v5, %v2392_v4  ;;  %v2362_v5 = vld [vmem:[#allocation3 + $0x150] sm:$0xf0] }
 0x350   : > { %v713_v37 = vpack.c.bf16 %v712_v35, %v712_v35  ;;  %679 = vrot.lane.b32.xlu0 %v677_v36, %s3550_s16  ;;  %v2781_v35 = vld [vmem:[#allocation3 + $0x1e4] sm:$0xf]  ;;  %v2442_v36 = vld [vmem:[#allocation3 + $0x1f0] sm:$0xf0]  ;;  %v2365_v6 = vor.u32 %v2761_v3, %v2362_v5  ;;  %v2584_v3 = vld [vmem:[#allocation3 + $0x300] sm:$0xf] }
 0x351   : > { %v2819_v5 = vld [vmem:[#allocation3 + $0x30c] sm:$0xf0] }
 0x352   : > { %2187 = vst.msk [vmem:[%s3354_s19 + $0x10] sm:$0xf] %vm460_vm3, %v713_v37 }
 0x355   : > { %v675_v38 = vpop.f32.mrf.mxu2  ;;  %v841_v39 = vpop.xlane.xlu2 %840 }
 0x356   : > { %2966 = vrcp.f32 %v841_v39  ;;  %v2329_v38 = vor.u32 %v2755_v32, %v2328_v30  ;;  %v2317_v39 = vor.u32 %v2749_v33, %v2314_v34  ;;  %v2330_v30 = vld [vmem:[#allocation3 + $0x110] sm:$0xf0]  ;;  %v2536_v32 = vld [vmem:[#allocation3 + $0x2a0] sm:$0xf]  ;;  %v2807_v33 = vld [vmem:[#allocation3 + $0x2ac] sm:$0xf0] }
 0x357   : > { %v2537_v34 = vor.u32 %v2807_v33, %v2536_v32  ;;  %v2538_v32 = vld [vmem:[#allocation3 + $0x2b0] sm:$0xf0]  ;;  %v2837_v33 = vld [vmem:[#allocation3 + $0x3a4] sm:$0xf] }
 0x359   : > { %2188 = vmatmul.msk.bf16.vlgmr.msra.gmra.mxu3 %vm447_vm1, %v713_v37  ;;  %v2201_v37 = vor.u32 %v2723_v29, %v2200_v28  ;;  %v2753_v28 = vld [vmem:[#allocation3 + $0x104] sm:$0xf] }
 0x35a   : > { %1741 = vmatpush.bf16.msra.mxu3 %v2441_v54  ;;  %v2266_v54 = vld [vmem:[#allocation3 + $0x90] sm:$0xf0] }
 0x35b   : > { %v2269_v56 = vor.u32 %v2737_v53, %v2266_v54  ;;  %v2827_v53 = vld [vmem:[#allocation3 + $0x34c] sm:$0xf0] }
 0x35c   : > { %v2967_v40 = vpop.eup %2966 }
 0x35d   : > { %v843_v41 = vmul.f32 %v2967_v40, %v2959_v12  ;;  %v2249_v12 = vor.u32 %v2735_v9, %v2248_v8  ;;  %v2445_v40 = vor.u32 %v2781_v35, %v2442_v36  ;;  %v2815_v8 = vld [vmem:[#allocation3 + $0x2ec] sm:$0xf0]  ;;  %v2696_v9 = vld [vmem:[#allocation3 + $0x3e0] sm:$0xf] }
 0x35e   : > { %1742 = vmatpush.bf16.msra.mxu3 %v2425_v59  ;;  %v2733_v59 = vld [vmem:[#allocation3 + $0x64] sm:$0xf]  ;;  %v2697_v15 = vor.u32 %v2847_v11, %v2696_v9  ;;  %v2664_v35 = vld [vmem:[#allocation3 + $0x3a0] sm:$0xf]  ;;  %v2839_v36 = vld [vmem:[#allocation3 + $0x3ac] sm:$0xf0] }
 0x35f   : > { %v844_v42 = vpack.c.bf16 %v843_v41, %v843_v41  ;;  %1732 = vmatpush.bf16.msra.mxu1 %v2249_v12  ;;  %v2253_v62 = vor.u32 %v2733_v59, %v2250_v60  ;;  %v2725_v12 = vld [vmem:[#allocation3 + $0x24] sm:$0xf]  ;;  %v2600_v59 = vld [vmem:[#allocation3 + $0x320] sm:$0xf]  ;;  %v2823_v60 = vld [vmem:[#allocation3 + $0x32c] sm:$0xf0] }
 0x360   : > { %1767 = vmatpush.bf16.msra.mxu2 %v2697_v15  ;;  %v2601_v63 = vor.u32 %v2823_v60, %v2600_v59  ;;  %v2698_v11 = vld [vmem:[#allocation3 + $0x3f0] sm:$0xf0]  ;;  %v2809_v15 = vld [vmem:[#allocation3 + $0x2c4] sm:$0xf]  ;;  %v2272_v60 = vld [vmem:[#allocation3 + $0x88] sm:$0xf] }
 0x361   : > { %2193 = vst.msk [vmem:[%s3354_s19 + $0x18] sm:$0xf] %vm460_vm3, %v844_v42 }
 0x362   : > { %1743 = vmatpush.bf16.msra.mxu3 %v2409_v1  ;;  %v2729_v1 = vld [vmem:[#allocation3 + $0x44] sm:$0xf] }
 0x363   : > { %1733 = vmatpush.bf16.msra.mxu1 %v2233_v19  ;;  %v2237_v4 = vor.u32 %v2729_v1, %v2234_v2  ;;  %v2552_v19 = vld [vmem:[#allocation3 + $0x2c0] sm:$0xf]  ;;  %v2787_v2 = vld [vmem:[#allocation3 + $0x20c] sm:$0xf0] }
 0x364   : > { %v2553_v24 = vor.u32 %v2811_v21, %v2552_v19  ;;  %v2456_v1 = vld [vmem:[#allocation3 + $0x200] sm:$0xf]  ;;  %v2752_v21 = vld [vmem:[#allocation3 + $0xf4] sm:$0xf0] }
 0x366   : > { %1744 = vmatpush.bf16.msra.mxu3 %v2393_v7  ;;  %v2568_v7 = vld [vmem:[#allocation3 + $0x2e0] sm:$0xf] }
 0x367   : > { %1734 = vmatpush.bf16.msra.mxu1 %v2217_v25  ;;  %v2569_v10 = vor.u32 %v2815_v8, %v2568_v7  ;;  %v2681_v25 = vor.u32 %v2843_v23, %v2680_v22  ;;  %v2570_v7 = vld [vmem:[#allocation3 + $0x2f0] sm:$0xf0]  ;;  %v2585_v8 = vor.u32 %v2819_v5, %v2584_v3  ;;  %v2448_v22 = vld [vmem:[#allocation3 + $0x1e8] sm:$0xf]  ;;  %v2784_v23 = vld [vmem:[#allocation3 + $0x1f4] sm:$0xf0] }
 0x368   : > { %v2793_v5 = vld [vmem:[#allocation3 + $0x244] sm:$0xf] }
 0x369   : > { %2194 = vmatmul.msk.bf16.vlgmr.msrb.gmra.mxu3 %vm447_vm1, %v844_v42  ;;  %v2745_v42 = vld [vmem:[#allocation3 + $0xc4] sm:$0xf]  ;;  %1754 = vmatpush.bf16.msra.mxu0 %v2569_v10 }
 0x36a   : > { %1745 = vmatpush.bf16.msra.mxu3 %v2377_v13  ;;  %v2218_v13 = vld [vmem:[#allocation3 + $0x30] sm:$0xf0]  ;;  %1768 = vmatpush.bf16.msra.mxu2 %v2681_v25  ;;  %v2845_v10 = vld [vmem:[#allocation3 + $0x3e4] sm:$0xf] }
 0x36b   : > { %1735 = vmatpush.bf16.msra.mxu1 %v2201_v37  ;;  %v2221_v16 = vor.u32 %v2725_v12, %v2218_v13  ;;  %v2665_v37 = vor.u32 %v2839_v36, %v2664_v35  ;;  %v2701_v12 = vor.u32 %v2845_v10, %v2698_v11  ;;  %v2736_v10 = vld [vmem:[#allocation3 + $0x74] sm:$0xf0]  ;;  %v2825_v11 = vld [vmem:[#allocation3 + $0x344] sm:$0xf] }
 0x36d   : > { %v548_v43 = vpop.f32.mrf.mxu3  ;;  %1755 = vmatpush.bf16.msra.mxu0 %v2553_v24 }
 0x36e   : > { %v552_v14 = vpack.c.bf16 %v548_v43, %v548_v43  ;;  %1746 = vmatpush.bf16.msra.mxu3 %v2361_v20  ;;  %v2298_v43 = vld [vmem:[#allocation3 + $0xd0] sm:$0xf0]  ;;  %v2349_v20 = vor.u32 %v2757_v17, %v2346_v18  ;;  %1769 = vmatpush.bf16.msra.mxu2 %v2665_v37  ;;  %v2841_v17 = vld [vmem:[#allocation3 + $0x3c4] sm:$0xf]  ;;  %v2320_v18 = vld [vmem:[#allocation3 + $0xe8] sm:$0xf] }
 0x36f   : > { %1780 = vmatpush.bf16.msrb.mxu1 %v2317_v39  ;;  %v2803_v39 = vld [vmem:[#allocation3 + $0x28c] sm:$0xf0]  ;;  %v2748_v37 = vld [vmem:[#allocation3 + $0xd4] sm:$0xf0] }
 0x370   : > { %554 = vrot.lane.b32.xlu2 %v552_v14, %s3550_s16  ;;  %v800_v44 = vpop.f32.mrf.mxu2  ;;  %v2777_v14 = vld [vmem:[#allocation3 + $0x1c4] sm:$0xf] }
 0x371   : > { %v804_v45 = vpack.c.bf16 %v800_v44, %v800_v44  ;;  %v2301_v44 = vor.u32 %v2745_v42, %v2298_v43  ;;  %1756 = vmatpush.bf16.msra.mxu0 %v2537_v34  ;;  %v2835_v42 = vld [vmem:[#allocation3 + $0x38c] sm:$0xf0]  ;;  %v2666_v34 = vld [vmem:[#allocation3 + $0x3b0] sm:$0xf0] }
 0x372   : > { %1747 = vmatpush.bf16.msra.mxu3 %v2345_v27  ;;  %v2202_v27 = vld [vmem:[#allocation3 + $0x10] sm:$0xf0] }
 0x373   : > { %806 = vrot.lane.b32.xlu1 %v804_v45, %s3550_s16  ;;  %v2426_v45 = vld [vmem:[#allocation3 + $0x1d0] sm:$0xf0]  ;;  %1781 = vmatpush.bf16.msrb.mxu1 %v2301_v44  ;;  %v2799_v44 = vld [vmem:[#allocation3 + $0x26c] sm:$0xf0] }
 0x374   : > { %v2429_v48 = vor.u32 %v2777_v14, %v2426_v45  ;;  %v2504_v14 = vld [vmem:[#allocation3 + $0x260] sm:$0xf] }
 0x375   : > { %v550_v46 = vpop.f32.mrf.mxu3  ;;  %v2505_v45 = vor.u32 %v2799_v44, %v2504_v14  ;;  %v2522_v14 = vld [vmem:[#allocation3 + $0x290] sm:$0xf0] }
 0x376   : > { %1748 = vmatpush.bf16.msra.mxu3 %v2329_v38  ;;  %v2741_v46 = vld [vmem:[#allocation3 + $0xa4] sm:$0xf]  ;;  %v2520_v38 = vld [vmem:[#allocation3 + $0x280] sm:$0xf] }
 0x377   : > { %v2285_v51 = vor.u32 %v2741_v46, %v2282_v47  ;;  %v2632_v46 = vld [vmem:[#allocation3 + $0x360] sm:$0xf]  ;;  %v2831_v47 = vld [vmem:[#allocation3 + $0x36c] sm:$0xf0] }
 0x378   : > { %v802_v57 = vpop.f32.mrf.mxu2 }
 0x379   : > { %1782 = vmatpush.bf16.msrb.mxu1 %v2285_v51  ;;  %v2394_v57 = vld [vmem:[#allocation3 + $0x190] sm:$0xf0]  ;;  %v2489_v51 = vor.u32 %v2795_v50, %v2488_v49  ;;  %v2744_v50 = vld [vmem:[#allocation3 + $0xb4] sm:$0xf0] }
 0x37a   : > { %1793 = vmatpush.bf16.msrb.mxu3 %v2445_v40  ;;  %v2397_v58 = vor.u32 %v2769_v55, %v2394_v57  ;;  %v2521_v40 = vor.u32 %v2803_v39, %v2520_v38  ;;  %v2432_v38 = vld [vmem:[#allocation3 + $0x1c8] sm:$0xf]  ;;  %v2780_v39 = vld [vmem:[#allocation3 + $0x1d4] sm:$0xf0]  ;;  %v2650_v49 = vld [vmem:[#allocation3 + $0x390] sm:$0xf0] }
 0x37c   : > { %1757 = vmatpush.bf16.msra.mxu0 %v2521_v40 }
 0x37d   : > { %1783 = vmatpush.bf16.msrb.mxu1 %v2269_v56  ;;  %v2472_v56 = vld [vmem:[#allocation3 + $0x220] sm:$0xf] }
 0x37e   : > { %1794 = vmatpush.bf16.msrb.mxu3 %v2429_v48  ;;  %v2633_v48 = vor.u32 %v2831_v47, %v2632_v46  ;;  %v2433_v46 = vor.u32 %v2780_v39, %v2432_v38  ;;  %v2288_v47 = vld [vmem:[#allocation3 + $0xa8] sm:$0xf] }
 0x37f   : > { %v2224_v39 = vld [vmem:[#allocation3 + $0x28] sm:$0xf] }
 0x380   : > { %1758 = vmatpush.bf16.msra.mxu0 %v2505_v45 }
 0x381   : > { %1784 = vmatpush.bf16.msrb.mxu1 %v2253_v62 }
 0x382   : > { %1795 = vmatpush.bf16.msrb.mxu3 %v2413_v52  ;;  %v2616_v52 = vld [vmem:[#allocation3 + $0x340] sm:$0xf] }
 0x383   : > { %v2617_v54 = vor.u32 %v2827_v53, %v2616_v52  ;;  %v2776_v52 = vld [vmem:[#allocation3 + $0x1b4] sm:$0xf0] }
 0x384   : > { %1759 = vmatpush.bf16.msra.mxu0 %v2489_v51  ;;  %v2416_v51 = vld [vmem:[#allocation3 + $0x1a8] sm:$0xf] }
 0x385   : > { %1785 = vmatpush.bf16.msrb.mxu1 %v2237_v4  ;;  %v2457_v4 = vor.u32 %v2787_v2, %v2456_v1  ;;  %v2417_v59 = vor.u32 %v2776_v52, %v2416_v51  ;;  %v2750_v51 = vld [vmem:[#allocation3 + $0xec] sm:$0xf]  ;;  %v2322_v52 = vld [vmem:[#allocation3 + $0xf8] sm:$0xf0] }
 0x386   : > { %1796 = vmatpush.bf16.msrb.mxu3 %v2397_v58  ;;  %v2791_v58 = vld [vmem:[#allocation3 + $0x22c] sm:$0xf0] }
 0x387   : > { %v2473_v62 = vor.u32 %v2791_v58, %v2472_v56  ;;  %v2506_v56 = vld [vmem:[#allocation3 + $0x270] sm:$0xf0]  ;;  %v2289_v58 = vor.u32 %v2744_v50, %v2288_v47  ;;  %v2208_v47 = vld [vmem:[#allocation3 + $0x8] sm:$0xf]  ;;  %v2756_v50 = vld [vmem:[#allocation3 + $0x114] sm:$0xf0] }
 0x389   : > { %1786 = vmatpush.bf16.msrb.mxu1 %v2221_v16  ;;  %1760 = vmatpush.bf16.msra.mxu0 %v2473_v62  ;;  %v2554_v16 = vld [vmem:[#allocation3 + $0x2d0] sm:$0xf0]  ;;  %v2740_v62 = vld [vmem:[#allocation3 + $0x94] sm:$0xf0] }
 0x38a   : > { %1797 = vmatpush.bf16.msrb.mxu3 %v2381_v0  ;;  %v2557_v19 = vor.u32 %v2809_v15, %v2554_v16  ;;  %v2768_v15 = vld [vmem:[#allocation3 + $0x174] sm:$0xf0] }
 0x38d   : > { %v924_v26 = vpop.f32.mrf.mxu2  ;;  %1761 = vmatpush.bf16.msra.mxu0 %v2457_v4  ;;  %v2256_v4 = vld [vmem:[#allocation3 + $0x68] sm:$0xf] }
 0x38e   : > { %v928_v31 = vpack.c.bf16 %v924_v26, %v924_v26  ;;  %1798 = vmatpush.bf16.msrb.mxu3 %v2365_v6  ;;  %v2721_v26 = vld [vmem:[#allocation3 + $0x4] sm:$0xf] }
 0x38f   : > { %v2205_v29 = vor.u32 %v2721_v26, %v2202_v27  ;;  %v2813_v6 = vld [vmem:[#allocation3 + $0x2e4] sm:$0xf] }
 0x390   : > { %930 = vrot.lane.b32.xlu0 %v928_v31, %s3550_s16  ;;  %v2333_v31 = vor.u32 %v2753_v28, %v2330_v30  ;;  %v2573_v9 = vor.u32 %v2813_v6, %v2570_v7  ;;  %v2304_v28 = vld [vmem:[#allocation3 + $0xc8] sm:$0xf]  ;;  %v2321_v30 = vor.u32 %v2752_v21, %v2320_v18  ;;  %v2490_v6 = vld [vmem:[#allocation3 + $0x250] sm:$0xf0]  ;;  %v2789_v18 = vld [vmem:[#allocation3 + $0x224] sm:$0xf]  ;;  %v2257_v21 = vor.u32 %v2736_v10, %v2256_v4 }
 0x391   : > { %1787 = vmatpush.bf16.msrb.mxu1 %v2205_v29  ;;  %v2805_v29 = vld [vmem:[#allocation3 + $0x2a4] sm:$0xf]  ;;  %v2305_v45 = vor.u32 %v2748_v37, %v2304_v28  ;;  %v2493_v16 = vor.u32 %v2793_v5, %v2490_v6  ;;  %v2774_v4 = vld [vmem:[#allocation3 + $0x1ac] sm:$0xf]  ;;  %v2418_v5 = vld [vmem:[#allocation3 + $0x1b8] sm:$0xf0] }
 0x392   : > { %1799 = vmatpush.bf16.msrb.mxu3 %v2349_v20  ;;  %1806 = vmatpush.bf16.msrb.mxu0 %v2573_v9  ;;  %v2682_v20 = vld [vmem:[#allocation3 + $0x3d0] sm:$0xf0]  ;;  %v2541_v40 = vor.u32 %v2805_v29, %v2538_v32  ;;  %v2770_v10 = vld [vmem:[#allocation3 + $0x18c] sm:$0xf] }
 0x393   : > { %v2685_v24 = vor.u32 %v2841_v17, %v2682_v20  ;;  %v2821_v20 = vld [vmem:[#allocation3 + $0x324] sm:$0xf]  ;;  %v2458_v32 = vld [vmem:[#allocation3 + $0x210] sm:$0xf0] }
 0x395   : > { %v926_v41 = vpop.f32.mrf.mxu2 }
 0x396   : > { %1800 = vmatpush.bf16.msrb.mxu3 %v2333_v31  ;;  %v2648_v41 = vld [vmem:[#allocation3 + $0x380] sm:$0xf]  ;;  %1807 = vmatpush.bf16.msrb.mxu0 %v2557_v19  ;;  %v2449_v31 = vor.u32 %v2784_v23, %v2448_v22  ;;  %v2474_v19 = vld [vmem:[#allocation3 + $0x230] sm:$0xf0]  ;;  %v2240_v23 = vld [vmem:[#allocation3 + $0x48] sm:$0xf] }
 0x397   : > { %v2649_v43 = vor.u32 %v2835_v42, %v2648_v41  ;;  %v2669_v41 = vor.u32 %v2837_v33, %v2666_v34  ;;  %v2477_v28 = vor.u32 %v2789_v18, %v2474_v19  ;;  %v2817_v33 = vld [vmem:[#allocation3 + $0x304] sm:$0xf]  ;;  %v2766_v18 = vld [vmem:[#allocation3 + $0x16c] sm:$0xf]  ;;  %v2386_v19 = vld [vmem:[#allocation3 + $0x178] sm:$0xf0] }
 0x399   : > { %1770 = vmatpush.bf16.msra.mxu2 %v2649_v43  ;;  %v2801_v43 = vld [vmem:[#allocation3 + $0x284] sm:$0xf] }
 0x39a   : > { %1808 = vmatpush.bf16.msrb.mxu0 %v2541_v40  ;;  %v2525_v53 = vor.u32 %v2801_v43, %v2522_v14  ;;  %v2586_v40 = vld [vmem:[#allocation3 + $0x310] sm:$0xf0]  ;;  %v2760_v43 = vld [vmem:[#allocation3 + $0x134] sm:$0xf0] }
 0x39d   : > { %1771 = vmatpush.bf16.msra.mxu2 %v2633_v48  ;;  %v2833_v48 = vld [vmem:[#allocation3 + $0x384] sm:$0xf] }
 0x39e   : > { %1809 = vmatpush.bf16.msrb.mxu0 %v2525_v53  ;;  %v2782_v53 = vld [vmem:[#allocation3 + $0x1ec] sm:$0xf] }
 0x3a1   : > { %1772 = vmatpush.bf16.msra.mxu2 %v2617_v54  ;;  %v2653_v54 = vor.u32 %v2833_v48, %v2650_v49  ;;  %v2724_v48 = vld [vmem:[#allocation3 + $0x14] sm:$0xf0]  ;;  %v2336_v49 = vld [vmem:[#allocation3 + $0x108] sm:$0xf] }
 0x3a5   : > { %1773 = vmatpush.bf16.msra.mxu2 %v2601_v63  ;;  %v2400_v63 = vld [vmem:[#allocation3 + $0x188] sm:$0xf] }
 0x3a9   : > { %1774 = vmatpush.bf16.msra.mxu2 %v2585_v8  ;;  %v2273_v8 = vor.u32 %v2740_v62, %v2272_v60  ;;  %v2746_v60 = vld [vmem:[#allocation3 + $0xcc] sm:$0xf] }
 0x3aa   : > { %v2778_v62 = vld [vmem:[#allocation3 + $0x1cc] sm:$0xf] }
 0x3ad   : > { %1819 = vmatpush.bf16.msrb.mxu2 %v2701_v12  ;;  %v2618_v12 = vld [vmem:[#allocation3 + $0x350] sm:$0xf0] }
 0x3ae   : > { %v2621_v17 = vor.u32 %v2825_v11, %v2618_v12  ;;  %v2402_v11 = vld [vmem:[#allocation3 + $0x198] sm:$0xf0] }
 0x3b1   : > { %1820 = vmatpush.bf16.msrb.mxu2 %v2685_v24  ;;  %v2602_v24 = vld [vmem:[#allocation3 + $0x330] sm:$0xf0] }
 0x3b2   : > { %v2605_v29 = vor.u32 %v2821_v20, %v2602_v24  ;;  %v2762_v24 = vld [vmem:[#allocation3 + $0x14c] sm:$0xf] }
 0x3b5   : > { %1821 = vmatpush.bf16.msrb.mxu2 %v2669_v41  ;;  %v2728_v41 = vld [vmem:[#allocation3 + $0x34] sm:$0xf0] }
 0x3b9   : > { %1822 = vmatpush.bf16.msrb.mxu2 %v2653_v54  ;;  %v2450_v54 = vld [vmem:[#allocation3 + $0x1f8] sm:$0xf0] }
 0x3c2   : > { %v680_v0 = vpop.permute.xlu0 %679 }
 0x3ca   : > { %v555_v55 = vpop.permute.xlu2 %554 }
 0x3cb   : > { %558 = vst.msk [vmem:[#allocation2] sm:$0xf] %vm557_vm5, %v555_v55  ;;  %v2797_v55 = vld [vmem:[#allocation3 + $0x264] sm:$0xf] }
 0x3cc   : > { %v613_v57 = vpop.f32.mrf.mxu3  ;;  %v2509_v1 = vor.u32 %v2797_v55, %v2506_v56  ;;  %v2209_v56 = vor.u32 %v2724_v48, %v2208_v47  ;;  %v2844_v47 = vld [vmem:[#allocation3 + $0x3d4] sm:$0xf0] }
 0x3cd   : > { %v617_v61 = vpack.c.bf16 %v613_v57, %v613_v57  ;;  %v2829_v57 = vld [vmem:[#allocation3 + $0x364] sm:$0xf] }
 0x3ce   : > { %1810 = vmatpush.bf16.msrb.mxu0 %v2509_v1 }
 0x3cf   : > { %618 = vst.msk [vmem:[#allocation2 + $0x4] sm:$0xf] %vm483_vm4, %v617_v61  ;;  %v2634_v61 = vld [vmem:[#allocation3 + $0x370] sm:$0xf0] }
 0x3d0   : > { %682 = vst.msk [vmem:[#allocation2 + $0x4] sm:$0xf] %vm557_vm5, %v680_v0  ;;  %v2772_v0 = vld [vmem:[#allocation3 + $0x194] sm:$0xf0]  ;;  %v2637_v2 = vor.u32 %v2829_v57, %v2634_v61  ;;  %v2337_v57 = vor.u32 %v2756_v50, %v2336_v49  ;;  %v2306_v61 = vld [vmem:[#allocation3 + $0xd8] sm:$0xf0] }
 0x3d1   : > { %v2401_v9 = vor.u32 %v2772_v0, %v2400_v63  ;;  %v2434_v63 = vld [vmem:[#allocation3 + $0x1d8] sm:$0xf0]  ;;  %v2309_v0 = vor.u32 %v2746_v60, %v2306_v61  ;;  %v2722_v50 = vld [vmem:[#allocation3 + $0xc] sm:$0xf] }
 0x3d2   : > { %1823 = vmatpush.bf16.msrb.mxu2 %v2637_v2  ;;  %1811 = vmatpush.bf16.msrb.mxu0 %v2493_v16  ;;  %v2437_v1 = vor.u32 %v2778_v62, %v2434_v63  ;;  %v2742_v2 = vld [vmem:[#allocation3 + $0xac] sm:$0xf] }
 0x3d3   : > { %v2734_v16 = vld [vmem:[#allocation3 + $0x6c] sm:$0xf] }
 0x3d4   : > { %v615_v13 = vpop.f32.mrf.mxu3 }
 0x3d5   : > { %v2384_v13 = vld [vmem:[#allocation3 + $0x168] sm:$0xf] }
 0x3d6   : > { %v2385_v22 = vor.u32 %v2768_v15, %v2384_v13  ;;  %1824 = vmatpush.bf16.msrb.mxu2 %v2621_v17  ;;  %1812 = vmatpush.bf16.msrb.mxu0 %v2477_v28  ;;  %v2405_v15 = vor.u32 %v2770_v10, %v2402_v11  ;;  %v2258_v17 = vld [vmem:[#allocation3 + $0x78] sm:$0xf0]  ;;  %v2704_v28 = vld [vmem:[#allocation3 + $0x3e8] sm:$0xf] }
 0x3d7   : > { %v934_v25 = vld [vmem:[#allocation2] sm:$0xff]  ;;  %v2261_v20 = vor.u32 %v2734_v16, %v2258_v17  ;;  %v2828_v16 = vld [vmem:[#allocation3 + $0x354] sm:$0xf0] }
 0x3d8   : > { %v1076_v26 = vunpack.c.l.b16 %v934_v25  ;;  %v1077_v27 = vunpack.c.h.b16 %v934_v25  ;;  %v2732_v25 = vld [vmem:[#allocation3 + $0x54] sm:$0xf0] }
 0x3d9   : > { %v2241_v37 = vor.u32 %v2732_v25, %v2240_v23  ;;  %v2242_v23 = vld [vmem:[#allocation3 + $0x58] sm:$0xf0] }
 0x3da   : > { %v3446_v35 = vpack.c.b16 %v1076_v26, %v1076_v26  ;;  %v3448_v36 = vpack.c.b16 %v1077_v27, %v1077_v27  ;;  %v2368_v26 = vld [vmem:[#allocation3 + $0x148] sm:$0xf]  ;;  %v2764_v27 = vld [vmem:[#allocation3 + $0x154] sm:$0xf0]  ;;  %1825 = vmatpush.bf16.msrb.mxu2 %v2605_v29  ;;  %v2370_v25 = vld [vmem:[#allocation3 + $0x158] sm:$0xf0] }
 0x3db   : > { %v2369_v38 = vor.u32 %v2764_v27, %v2368_v26  ;;  %v2576_v26 = vld [vmem:[#allocation3 + $0x2e8] sm:$0xf]  ;;  %v2816_v27 = vld [vmem:[#allocation3 + $0x2f4] sm:$0xf0] }
 0x3dc   : > { %v731_v42 = vpop.f32.mrf.mxu3  ;;  %1736 = vmatmul.bf16.vlgmr.msra.gmra.mxu1 %v3446_v35  ;;  %1749 = vmatmul.bf16.vlgmr.msra.gmra.mxu3 %v3448_v36  ;;  %v2848_v29 = vld [vmem:[#allocation3 + $0x3f4] sm:$0xf0] }
 0x3dd   : > { %v735_v44 = vpack.c.bf16 %v731_v42, %v731_v42  ;;  %1832 = vmatpush.bf16.msra.mxu1 %v2321_v30  ;;  %1845 = vmatpush.bf16.msra.mxu3 %v2449_v31  ;;  %v2785_v31 = vld [vmem:[#allocation3 + $0x204] sm:$0xf]  ;;  %v2352_v42 = vld [vmem:[#allocation3 + $0x128] sm:$0xf] }
 0x3de   : > { %v2461_v14 = vor.u32 %v2785_v31, %v2458_v32  ;;  %v2373_v31 = vor.u32 %v2762_v24, %v2370_v25  ;;  %v2788_v24 = vld [vmem:[#allocation3 + $0x214] sm:$0xf0]  ;;  %v2592_v25 = vld [vmem:[#allocation3 + $0x308] sm:$0xf] }
 0x3df   : > { %736 = vst.msk [vmem:[#allocation2 + $0x8] sm:$0xf] %vm483_vm4, %v735_v44  ;;  %v2589_v44 = vor.u32 %v2817_v33, %v2586_v40  ;;  %v2726_v33 = vld [vmem:[#allocation3 + $0x2c] sm:$0xf]  ;;  %v2354_v40 = vld [vmem:[#allocation3 + $0x138] sm:$0xf0] }
 0x3e0   : > { %1813 = vmatpush.bf16.msrb.mxu0 %v2461_v14 }
 0x3e1   : > { %1833 = vmatpush.bf16.msra.mxu1 %v2305_v45  ;;  %1846 = vmatpush.bf16.msra.mxu3 %v2433_v46  ;;  %v2225_v45 = vor.u32 %v2728_v41, %v2224_v39  ;;  %v2353_v46 = vor.u32 %v2760_v43, %v2352_v42  ;;  %v2758_v39 = vld [vmem:[#allocation3 + $0x12c] sm:$0xf]  ;;  %v2577_v41 = vor.u32 %v2816_v27, %v2576_v26  ;;  %v2560_v43 = vld [vmem:[#allocation3 + $0x2c8] sm:$0xf]  ;;  %v2820_v26 = vld [vmem:[#allocation3 + $0x314] sm:$0xf0] }
 0x3e2   : > { %1826 = vmatpush.bf16.msrb.mxu2 %v2589_v44  ;;  %v2705_v42 = vor.u32 %v2848_v29, %v2704_v28  ;;  %v2357_v49 = vor.u32 %v2758_v39, %v2354_v40  ;;  %v2814_v27 = vld [vmem:[#allocation3 + $0x2ec] sm:$0xf]  ;;  %v2578_v28 = vld [vmem:[#allocation3 + $0x2f8] sm:$0xf0] }
 0x3e3   : > { %v2846_v29 = vld [vmem:[#allocation3 + $0x3ec] sm:$0xf]  ;;  %v2690_v40 = vld [vmem:[#allocation3 + $0x3d8] sm:$0xf0] }
 0x3e4   : > { %v733_v3 = vpop.f32.mrf.mxu3  ;;  %v2842_v39 = vld [vmem:[#allocation3 + $0x3cc] sm:$0xf] }
 0x3e5   : > { %1834 = vmatpush.bf16.msra.mxu1 %v2289_v58  ;;  %1847 = vmatpush.bf16.msra.mxu3 %v2417_v59  ;;  %v807_v7 = vpop.permute.xlu1 %806  ;;  %v2325_v58 = vor.u32 %v2750_v51, %v2322_v52  ;;  %v2453_v59 = vor.u32 %v2782_v53, %v2450_v54  ;;  %v2290_v3 = vld [vmem:[#allocation3 + $0xb8] sm:$0xf0]  ;;  %v2754_v52 = vld [vmem:[#allocation3 + $0x10c] sm:$0xf] }
 0x3e6   : > { %809 = vst.msk [vmem:[#allocation2 + $0x8] sm:$0xf] %vm557_vm5, %v807_v7  ;;  %v2293_v6 = vor.u32 %v2742_v2, %v2290_v3  ;;  %v2421_v7 = vor.u32 %v2774_v4, %v2418_v5  ;;  %v2210_v51 = vld [vmem:[#allocation3 + $0x18] sm:$0xf0]  ;;  %v2656_v2 = vld [vmem:[#allocation3 + $0x388] sm:$0xf] }
 0x3e7   : > { %v2338_v53 = vld [vmem:[#allocation3 + $0x118] sm:$0xf0]  ;;  %v2213_v60 = vor.u32 %v2722_v50, %v2210_v51  ;;  %v2836_v3 = vld [vmem:[#allocation3 + $0x394] sm:$0xf0]  ;;  %v2802_v50 = vld [vmem:[#allocation3 + $0x28c] sm:$0xf] }
 0x3e8   : > { %v2341_v61 = vor.u32 %v2754_v52, %v2338_v53  ;;  %v2657_v5 = vor.u32 %v2836_v3, %v2656_v2  ;;  %v2530_v51 = vld [vmem:[#allocation3 + $0x298] sm:$0xf0]  ;;  %v2834_v52 = vld [vmem:[#allocation3 + $0x38c] sm:$0xf] }
 0x3e9   : > { %1835 = vmatpush.bf16.msra.mxu1 %v2273_v8  ;;  %1848 = vmatpush.bf16.msra.mxu3 %v2401_v9  ;;  %v2738_v8 = vld [vmem:[#allocation3 + $0x8c] sm:$0xf]  ;;  %v2274_v9 = vld [vmem:[#allocation3 + $0x98] sm:$0xf0] }
 0x3ea   : > { %v2277_v13 = vor.u32 %v2738_v8, %v2274_v9  ;;  %v2640_v8 = vld [vmem:[#allocation3 + $0x368] sm:$0xf]  ;;  %v2832_v9 = vld [vmem:[#allocation3 + $0x374] sm:$0xf0]  ;;  %v2658_v53 = vld [vmem:[#allocation3 + $0x398] sm:$0xf0] }
 0x3eb   : > { %v2641_v11 = vor.u32 %v2832_v9, %v2640_v8 }
 0x3ec   : > { %v864_v30 = vpop.f32.mrf.mxu3  ;;  %1788 = vmatmul.bf16.vlgmr.msrb.gmra.mxu1 %v3446_v35  ;;  %1801 = vmatmul.bf16.vlgmr.msrb.gmra.mxu3 %v3448_v36 }
 0x3ed   : > { %v868_v34 = vpack.c.bf16 %v864_v30, %v864_v30  ;;  %1836 = vmatpush.bf16.msra.mxu1 %v2257_v21  ;;  %1849 = vmatpush.bf16.msra.mxu3 %v2385_v22  ;;  %v2389_v21 = vor.u32 %v2766_v18, %v2386_v19  ;;  %v2730_v22 = vld [vmem:[#allocation3 + $0x4c] sm:$0xf]  ;;  %v2792_v18 = vld [vmem:[#allocation3 + $0x234] sm:$0xf0]  ;;  %v2608_v19 = vld [vmem:[#allocation3 + $0x328] sm:$0xf] }
 0x3ee   : > { %v2245_v30 = vor.u32 %v2730_v22, %v2242_v23  ;;  %v2464_v23 = vld [vmem:[#allocation3 + $0x208] sm:$0xf] }
 0x3ef   : > { %869 = vst.msk [vmem:[#allocation2 + $0xc] sm:$0xf] %vm483_vm4, %v868_v34 }
 0x3f1   : > { %1837 = vmatpush.bf16.msra.mxu1 %v2241_v37  ;;  %1850 = vmatpush.bf16.msra.mxu3 %v2369_v38  ;;  %v2226_v38 = vld [vmem:[#allocation3 + $0x38] sm:$0xf0] }
 0x3f2   : > { %v2229_v48 = vor.u32 %v2726_v33, %v2226_v38  ;;  %v2581_v33 = vor.u32 %v2814_v27, %v2578_v28  ;;  %v2562_v38 = vld [vmem:[#allocation3 + $0x2d8] sm:$0xf0] }
 0x3f4   : > { %v866_v55 = vpop.f32.mrf.mxu3 }
 0x3f5   : > { %1838 = vmatpush.bf16.msra.mxu1 %v2225_v45  ;;  %1851 = vmatpush.bf16.msra.mxu3 %v2353_v46  ;;  %v2812_v45 = vld [vmem:[#allocation3 + $0x2d4] sm:$0xf0]  ;;  %v2688_v46 = vld [vmem:[#allocation3 + $0x3c8] sm:$0xf] }
 0x3f6   : > { %v2561_v54 = vor.u32 %v2812_v45, %v2560_v43  ;;  %v2689_v55 = vor.u32 %v2844_v47, %v2688_v46  ;;  %v2806_v43 = vld [vmem:[#allocation3 + $0x2ac] sm:$0xf]  ;;  %v2546_v45 = vld [vmem:[#allocation3 + $0x2b8] sm:$0xf0] }
 0x3f7   : > { %v2838_v46 = vld [vmem:[#allocation3 + $0x3ac] sm:$0xf]  ;;  %v2674_v47 = vld [vmem:[#allocation3 + $0x3b8] sm:$0xf0] }
 0x3f9   : > { %1839 = vmatpush.bf16.msra.mxu1 %v2209_v56  ;;  %1852 = vmatpush.bf16.msra.mxu3 %v2337_v57  ;;  %v2544_v56 = vld [vmem:[#allocation3 + $0x2a8] sm:$0xf]  ;;  %v2808_v57 = vld [vmem:[#allocation3 + $0x2b4] sm:$0xf0] }
 0x3fa   : > { %v2545_v62 = vor.u32 %v2808_v57, %v2544_v56  ;;  %v2798_v56 = vld [vmem:[#allocation3 + $0x26c] sm:$0xf]  ;;  %v2514_v57 = vld [vmem:[#allocation3 + $0x278] sm:$0xf0] }
 0x3fc   : > { %1840 = vmatmul.bf16.vlgmr.msra.gmra.mxu1 %v3446_v35  ;;  %1853 = vmatmul.bf16.vlgmr.msra.gmra.mxu3 %v3448_v36 }
 0x3fd   : > { %1884 = vmatpush.bf16.msrb.mxu1 %v2325_v58  ;;  %1897 = vmatpush.bf16.msrb.mxu3 %v2453_v59  ;;  %v2672_v58 = vld [vmem:[#allocation3 + $0x3a8] sm:$0xf]  ;;  %v2840_v59 = vld [vmem:[#allocation3 + $0x3b4] sm:$0xf0] }
 0x3fe   : > { %v2673_v63 = vor.u32 %v2840_v59, %v2672_v58  ;;  %v2830_v58 = vld [vmem:[#allocation3 + $0x36c] sm:$0xf]  ;;  %v2642_v59 = vld [vmem:[#allocation3 + $0x378] sm:$0xf0] }
 0x401   : > { %1885 = vmatpush.bf16.msrb.mxu1 %v2309_v0  ;;  %1898 = vmatpush.bf16.msrb.mxu3 %v2437_v1  ;;  %v2528_v0 = vld [vmem:[#allocation3 + $0x288] sm:$0xf]  ;;  %v2804_v1 = vld [vmem:[#allocation3 + $0x294] sm:$0xf0] }
 0x402   : > { %v931_v12 = vpop.permute.xlu0 %930  ;;  %v2529_v4 = vor.u32 %v2804_v1, %v2528_v0  ;;  %v2826_v0 = vld [vmem:[#allocation3 + $0x34c] sm:$0xf]  ;;  %v2626_v1 = vld [vmem:[#allocation3 + $0x358] sm:$0xf0] }
 0x403   : > { %933 = vst.msk [vmem:[#allocation2 + $0xc] sm:$0xf] %vm557_vm5, %v931_v12  ;;  %v2496_v12 = vld [vmem:[#allocation3 + $0x248] sm:$0xf]  ;;  %v2629_v3 = vor.u32 %v2826_v0, %v2626_v1 }
 0x405   : > { %1886 = vmatpush.bf16.msrb.mxu1 %v2293_v6  ;;  %1899 = vmatpush.bf16.msrb.mxu3 %v2421_v7  ;;  %v2512_v6 = vld [vmem:[#allocation3 + $0x268] sm:$0xf]  ;;  %v2800_v7 = vld [vmem:[#allocation3 + $0x274] sm:$0xf0] }
 0x406   : > { %v2513_v10 = vor.u32 %v2800_v7, %v2512_v6  ;;  %v2822_v6 = vld [vmem:[#allocation3 + $0x32c] sm:$0xf]  ;;  %v2610_v7 = vld [vmem:[#allocation3 + $0x338] sm:$0xf0] }
 0x407   : > { %v2613_v9 = vor.u32 %v2822_v6, %v2610_v7 }
 0x409   : > { %1887 = vmatpush.bf16.msrb.mxu1 %v2277_v13  ;;  %1900 = vmatpush.bf16.msrb.mxu3 %v2405_v15  ;;  %v2796_v13 = vld [vmem:[#allocation3 + $0x254] sm:$0xf0]  ;;  %v2624_v15 = vld [vmem:[#allocation3 + $0x348] sm:$0xf] }
 0x40a   : > { %v935_v32 = vld [vmem:[#allocation2 + $0x8] sm:$0xff]  ;;  %v2625_v17 = vor.u32 %v2828_v16, %v2624_v15 }
 0x40b   : > { %v1078_v34 = vunpack.c.l.b16 %v935_v32  ;;  %v1079_v37 = vunpack.c.h.b16 %v935_v32  ;;  %v2593_v32 = vor.u32 %v2820_v26, %v2592_v25 }
 0x40d   : > { %1888 = vmatpush.bf16.msrb.mxu1 %v2261_v20  ;;  %1901 = vmatpush.bf16.msrb.mxu3 %v2389_v21  ;;  %v3460_v14 = vpack.c.b16 %v1078_v34, %v1078_v34  ;;  %v3462_v44 = vpack.c.b16 %v1079_v37, %v1079_v37  ;;  %v2824_v20 = vld [vmem:[#allocation3 + $0x334] sm:$0xf0]  ;;  %v2810_v37 = vld [vmem:[#allocation3 + $0x2cc] sm:$0xf] }
 0x40e   : > { %v2609_v22 = vor.u32 %v2824_v20, %v2608_v19 }
 0x40f   : > { %1762 = vmatmul.bf16.vlgmr.msra.gmra.mxu0 %v3460_v14  ;;  %1775 = vmatmul.bf16.vlgmr.msra.gmra.mxu2 %v3462_v44 }
 0x410   : > { %1858 = vmatpush.bf16.msra.mxu0 %v2577_v41  ;;  %1871 = vmatpush.bf16.msra.mxu2 %v2705_v42  ;;  %v2565_v41 = vor.u32 %v2810_v37, %v2562_v38  ;;  %v2693_v42 = vor.u32 %v2842_v39, %v2690_v40 }
 0x411   : > { %1889 = vmatpush.bf16.msrb.mxu1 %v2245_v30  ;;  %1902 = vmatpush.bf16.msrb.mxu3 %v2373_v31  ;;  %v2706_v30 = vld [vmem:[#allocation3 + $0x3f8] sm:$0xf0]  ;;  %v2465_v31 = vor.u32 %v2788_v24, %v2464_v23 }
 0x412   : > { %v2709_v34 = vor.u32 %v2846_v29, %v2706_v30 }
 0x414   : > { %1859 = vmatpush.bf16.msra.mxu0 %v2561_v54  ;;  %1872 = vmatpush.bf16.msra.mxu2 %v2689_v55  ;;  %v2533_v54 = vor.u32 %v2802_v50, %v2530_v51  ;;  %v2661_v55 = vor.u32 %v2834_v52, %v2658_v53 }
 0x415   : > { %1890 = vmatpush.bf16.msrb.mxu1 %v2229_v48  ;;  %1903 = vmatpush.bf16.msrb.mxu3 %v2357_v49  ;;  %v2549_v48 = vor.u32 %v2806_v43, %v2546_v45  ;;  %v2677_v49 = vor.u32 %v2838_v46, %v2674_v47 }
 0x418   : > { %1860 = vmatpush.bf16.msra.mxu0 %v2545_v62  ;;  %1873 = vmatpush.bf16.msra.mxu2 %v2673_v63  ;;  %v2794_v62 = vld [vmem:[#allocation3 + $0x24c] sm:$0xf]  ;;  %v2498_v63 = vld [vmem:[#allocation3 + $0x258] sm:$0xf0] }
 0x419   : > { %1891 = vmatpush.bf16.msrb.mxu1 %v2213_v60  ;;  %1904 = vmatpush.bf16.msrb.mxu3 %v2341_v61  ;;  %v2517_v60 = vor.u32 %v2798_v56, %v2514_v57  ;;  %v2645_v61 = vor.u32 %v2830_v58, %v2642_v59  ;;  %v2501_v2 = vor.u32 %v2794_v62, %v2498_v63 }
 0x41c   : > { %1892 = vmatmul.bf16.vlgmr.msrb.gmra.mxu1 %v3446_v35  ;;  %1905 = vmatmul.bf16.vlgmr.msrb.gmra.mxu3 %v3448_v36  ;;  %v2497_v35 = vor.u32 %v2796_v13, %v2496_v12  ;;  %v2480_v36 = vld [vmem:[#allocation3 + $0x228] sm:$0xf]  ;;  %v2818_v12 = vld [vmem:[#allocation3 + $0x30c] sm:$0xf]  ;;  %v2594_v13 = vld [vmem:[#allocation3 + $0x318] sm:$0xf0] }
 0x41d   : > { %1861 = vmatpush.bf16.msra.mxu0 %v2529_v4  ;;  %1874 = vmatpush.bf16.msra.mxu2 %v2657_v5  ;;  %v2481_v21 = vor.u32 %v2792_v18, %v2480_v36  ;;  %v2790_v4 = vld [vmem:[#allocation3 + $0x22c] sm:$0xf]  ;;  %v2482_v5 = vld [vmem:[#allocation3 + $0x238] sm:$0xf0]  ;;  %v2597_v16 = vor.u32 %v2818_v12, %v2594_v13 }
 0x41e   : > { %v2485_v8 = vor.u32 %v2790_v4, %v2482_v5 }
 0x41f   : > { %1814 = vmatmul.bf16.vlgmr.msrb.gmra.mxu0 %v3460_v14  ;;  %1827 = vmatmul.bf16.vlgmr.msrb.gmra.mxu2 %v3462_v44 }
 0x421   : > { %1862 = vmatpush.bf16.msra.mxu0 %v2513_v10  ;;  %1875 = vmatpush.bf16.msra.mxu2 %v2641_v11  ;;  %v2786_v10 = vld [vmem:[#allocation3 + $0x20c] sm:$0xf]  ;;  %v2466_v11 = vld [vmem:[#allocation3 + $0x218] sm:$0xf0] }
 0x422   : > { %v2469_v15 = vor.u32 %v2786_v10, %v2466_v11 }
 0x425   : > { %1863 = vmatpush.bf16.msra.mxu0 %v2497_v35  ;;  %1876 = vmatpush.bf16.msra.mxu2 %v2625_v17 }
 0x429   : > { %1864 = vmatpush.bf16.msra.mxu0 %v2481_v21  ;;  %1877 = vmatpush.bf16.msra.mxu2 %v2609_v22 }
 0x42d   : > { %1865 = vmatpush.bf16.msra.mxu0 %v2465_v31  ;;  %1878 = vmatpush.bf16.msra.mxu2 %v2593_v32 }
 0x430   : > { %1866 = vmatmul.bf16.vlgmr.msra.gmra.mxu0 %v3460_v14  ;;  %1879 = vmatmul.bf16.vlgmr.msra.gmra.mxu2 %v3462_v44 }
 0x431   : > { %1910 = vmatpush.bf16.msrb.mxu0 %v2581_v33  ;;  %1923 = vmatpush.bf16.msrb.mxu2 %v2709_v34 }
 0x435   : > { %1911 = vmatpush.bf16.msrb.mxu0 %v2565_v41  ;;  %1924 = vmatpush.bf16.msrb.mxu2 %v2693_v42 }
 0x439   : > { %1912 = vmatpush.bf16.msrb.mxu0 %v2549_v48  ;;  %1925 = vmatpush.bf16.msrb.mxu2 %v2677_v49 }
 0x43d   : > { %1913 = vmatpush.bf16.msrb.mxu0 %v2533_v54  ;;  %1926 = vmatpush.bf16.msrb.mxu2 %v2661_v55 }
 0x441   : > { %1914 = vmatpush.bf16.msrb.mxu0 %v2517_v60  ;;  %1927 = vmatpush.bf16.msrb.mxu2 %v2645_v61 }
 0x445   : > { %1915 = vmatpush.bf16.msrb.mxu0 %v2501_v2  ;;  %1928 = vmatpush.bf16.msrb.mxu2 %v2629_v3 }
 0x449   : > { %1916 = vmatpush.bf16.msrb.mxu0 %v2485_v8  ;;  %1929 = vmatpush.bf16.msrb.mxu2 %v2613_v9 }
 0x44d   : > { %1917 = vmatpush.bf16.msrb.mxu0 %v2469_v15  ;;  %1930 = vmatpush.bf16.msrb.mxu2 %v2597_v16 }
 0x450   : > { %1918 = vmatmul.bf16.vlgmr.msrb.gmra.mxu0 %v3460_v14  ;;  %1931 = vmatmul.bf16.vlgmr.msrb.gmra.mxu2 %v3462_v44 }
 0x459   : > { %v1737_v35 = vpop.f32.mrf.mxu1 }
 0x45a   : > { %3055 = shalt.err (!%p3052_p9)
}
 0x45b   : > { %s3153_s19 = smov 4   ;;  %s3559_s8 = smov 64   ;;  %v1064_v24 = vld [vmem:[#allocation6] sm:$0xf] }
 0x45c   : > { %2860 = dma.vmem_to_hbm [thread:$0]  (%p3234_p4), %s1977_s17, 512, %s1979_s12, %s1946_s18, %s3559_s8, %s3559_s8, %s3153_s19   ;;  %v1066_v26 = vperm.slane %v1064_v24, 0  ;;  %v1067_v37 = vperm.slane %v1064_v24, 1  ;;  %v1068_v50 = vperm.slane %v1064_v24, 2  ;;  %v1069_v60 = vperm.slane %v1064_v24, 3 }
 0x45d   : > { %s3560_s0 = sshll.u32 %s3347_s21, 5  ;;  %s1959_s10 = scalar_lea.hbm %s3547_s6, %s2849_s23 }
 0x45e   : > { %v1738_v28 = vadd.f32 %v1737_v35, %v1066_v26  ;;  %s3496_s1 = scalar_lea.vmem [#allocation8], %s3560_s0  ;;  %s1963_s17 = sshll.u32 %s1959_s10, 4  ;;  %s1964_s17 = int_to_ptr.hbm [resolvable:$true] %s1963_s17 }
 0x45f   : > { %v1750_v14 = vpop.f32.mrf.mxu3  ;;  %s1961_s12 = sshll.u32 %s3496_s1, 4  ;;  %s1941_s18 = scalar_lea.sflag [#allocation5], %s3347_s21  ;;  %s1962_s12 = int_to_ptr.vmem [resolvable:$true] %s1961_s12 }
 0x460   : > { %v1751_v29 = vadd.f32 %v1750_v14, %v1738_v28  ;;  %s3070_s15 = sshra.s32 %s1964_s17, 4  ;;  %s3076_s30 = scalar_lea.hbm %s3547_s6, 64  ;;  %s3071_s15 = int_to_ptr.hbm [resolvable:$true] %s3070_s15 }
 0x461   : > { %v1739_v44 = vpop.f32.mrf.mxu1  ;;  %s3072_s20 = scalar_lea.hbm %s3071_s15, 32  ;;  %p3077_p13 = scmp.lt.s32.totalorder %s3071_s15, %s3547_s6 }
 0x462   : > { %p3073_p10 = scmp.ne.s32.totalorder %s3071_s15, %s3072_s20  ;;  %p3078_p0 = scmp.lt.s32.totalorder %s3076_s30, %s3072_s20 }
 0x464   : > { %p3074_p11 = pnand %p3073_p10, %p3234_p4  ;;  %p3079_p1 = por %p3078_p0, %p3077_p13 }
 0x466   : > { %p3075_p12 = pneg %p3074_p11 }
 0x467   : > { %v1752_v17 = vpop.f32.mrf.mxu3 }
 0x468   : > { %p3080_p2 = pnand %p3079_p1, %p3075_p12 }
 0x469   : > { %v1789_v36 = vpop.f32.mrf.mxu1 }
 0x46a   : > { %v1790_v41 = vadd.f32 %v1789_v36, %v1067_v37 }
 0x46f   : > { %v1802_v18 = vpop.f32.mrf.mxu3 }
 0x470   : > { %v1803_v43 = vadd.f32 %v1802_v18, %v1790_v41 }
 0x471   : > { %v1791_v19 = vpop.f32.mrf.mxu1 }
 0x477   : > { %v1804_v20 = vpop.f32.mrf.mxu3 }
 0x479   : > { %v1841_v21 = vpop.f32.mrf.mxu1 }
 0x47a   : > { %v1842_v53 = vadd.f32 %v1841_v21, %v1068_v50 }
 0x47f   : > { %v1854_v22 = vpop.f32.mrf.mxu3 }
 0x480   : > { %v1855_v54 = vadd.f32 %v1854_v22, %v1842_v53 }
 0x481   : > { %v1843_v23 = vpop.f32.mrf.mxu1 }
 0x487   : > { %v1856_v25 = vpop.f32.mrf.mxu3 }
 0x48c   : > { %v1763_v27 = vpop.f32.mrf.mxu0 }
 0x48d   : > { %v1764_v30 = vadd.f32 %v1763_v27, %v1751_v29 }
 0x492   : > { %v1776_v31 = vpop.f32.mrf.mxu2 }
 0x493   : > { %v1777_v32 = vadd.f32 %v1776_v31, %v1764_v30 }
 0x494   : > { %v1765_v33 = vpop.f32.mrf.mxu0 }
 0x495   : > { %1936 = vst [vmem:[%s3496_s1] sm:$0xff] %v1777_v32 }
 0x499   : > { %v1893_v34 = vpop.f32.mrf.mxu1 }
 0x49a   : > { %v1778_v38 = vpop.f32.mrf.mxu2  ;;  %v1894_v62 = vadd.f32 %v1893_v34, %v1069_v60 }
 0x49c   : > { %v1815_v40 = vpop.f32.mrf.mxu0 }
 0x49d   : > { %v1816_v45 = vadd.f32 %v1815_v40, %v1803_v43 }
 0x49f   : > { %v1906_v39 = vpop.f32.mrf.mxu3 }
 0x4a0   : > { %v1907_v63 = vadd.f32 %v1906_v39, %v1894_v62 }
 0x4a1   : > { %v1895_v42 = vpop.f32.mrf.mxu1 }
 0x4a2   : > { %v1828_v46 = vpop.f32.mrf.mxu2 }
 0x4a3   : > { %v1829_v47 = vadd.f32 %v1828_v46, %v1816_v45 }
 0x4a4   : > { %v1817_v49 = vpop.f32.mrf.mxu0 }
 0x4a5   : > { %1937 = vst [vmem:[%s3496_s1 + $0x8] sm:$0xff] %v1829_v47 }
 0x4a7   : > { %v1908_v48 = vpop.f32.mrf.mxu3 }
 0x4aa   : > { %v1830_v51 = vpop.f32.mrf.mxu2 }
 0x4ad   : > { %v1867_v52 = vpop.f32.mrf.mxu0 }
 0x4ae   : > { %v1868_v55 = vadd.f32 %v1867_v52, %v1855_v54 }
 0x4b3   : > { %v1880_v56 = vpop.f32.mrf.mxu2 }
 0x4b4   : > { %v1881_v57 = vadd.f32 %v1880_v56, %v1868_v55 }
 0x4b5   : > { %v1869_v58 = vpop.f32.mrf.mxu0 }
 0x4b6   : > { %1938 = vst [vmem:[%s3496_s1 + $0x10] sm:$0xff] %v1881_v57 }
 0x4bb   : > { %v1882_v59 = vpop.f32.mrf.mxu2 }
 0x4cd   : > { %v1919_v61 = vpop.f32.mrf.mxu0 }
 0x4ce   : > { %v1920_v0 = vadd.f32 %v1919_v61, %v1907_v63 }
 0x4d3   : > { %v1932_v1 = vpop.f32.mrf.mxu2 }
 0x4d4   : > { %v1933_v2 = vadd.f32 %v1932_v1, %v1920_v0 }
 0x4d5   : > { %v1921_v3 = vpop.f32.mrf.mxu0 }
 0x4d6   : > { %1939 = vst [vmem:[%s3496_s1 + $0x18] sm:$0xff] %v1933_v2 }
 0x4d7   : > { %3083 = shalt.err (!%p3080_p2)
}
 0x4d8   : > { %2859 = dma.vmem_to_hbm [thread:$0]  (%p3234_p4), %s1962_s12, 512, %s1964_s17, %s1941_s18  }
 0x4db   : > { %v1934_v4 = vpop.f32.mrf.mxu2 }
 0x4dc PF: > { %p2881_p3 = scmp.ge.s32.totalorder %s3146_s29, 2  ;;  %s1993_s21 = sand.u32 1, %s3126_s24  }
 0x4dd   : > { %s1994_s0 = scalar_lea.sflag [#allocation5], %s1993_s21 }
 0x4de   : > { %p2871_p5 = pnand %p2881_p3, %p3241_p8 }
 0x4e0   : > { %p2872_p6 = pneg %p2871_p5 }
 0x4e2   : > { %3117 = dma.done.wait (%p2872_p6), %s1994_s0, 512  }
 0x4e3   : > { %3119 = vsyncadd (%p2872_p6), %s1994_s0, 4294966784  ;;  %s2004_s1 = scalar_lea.sflag [#allocation10], %s1993_s21 }
 0x4e4   : > { %3121 = dma.done.wait (%p2872_p6), %s2004_s1, 512  }
 0x4e5   : > { %3123 = vsyncadd (%p2872_p6), %s2004_s1, 4294966784  ;;  %s26_s29 = sadd.s32 1, %s3146_s29   ;;  %s3561_s24 = smov %s3130_s25 }
 0x4e6   : > { %p23_p7 = scmp.ge.s32.totalorder %s26_s29, 4   ;;  %s3562_s25 = smov %s3134_s26 }
 0x4e7   : > { %s3563_s26 = smov %s3247_s14  ;;  %s3564_s27 = smov %s3142_s28 }
 0x4e8   : > { %s3565_s28 = smov %s3567_s9  ;;  %25 = sbr.rel (!%p23_p7) target bundleno = 11 (0xb), region = 121 }
 0x4ed   :  { %2010 = vsyncpa [#allocation4], 1 }
 0x4ee   :  { %2012 = vsyncpa [#allocation4 + $0x1], 1 }
 0x4ef   :  { %2013 = vsyncpa [#allocation7], 1 }
 0x4f0   :  { %2014 = vsyncpa [#allocation5], 1 }
 0x4f1   :  { %2016 = vsyncpa [#allocation5 + $0x1], 1 }
 0x4f2   :  { %2017 = vsyncpa [#allocation10], 1 }
 0x4f3   :  { %2019 = vsyncpa [#allocation10 + $0x1], 1 }

// kernel: _mha_forward_cross.2
= control target key start
LH: loop header
LB: loop body
LE: loop exit
PB: predicated region body
PF: predicated region fallthrough
CT: control target
= control target key end

     0   :  { %13 = vsyncpa [#allocation3], 0  ;;  %s5513_s0 = inlined_call_operand.hbm [shape: f32[16,512], index: 0, kind: input, shape index: {}]   ;;  %s5514_s1 = inlined_call_operand.hbm [shape: f32[16,512], index: 1, kind: input, shape index: {}]   ;;  %s5515_s2 = inlined_call_operand.hbm [shape: f32[16,512], index: 2, kind: input, shape index: {}]   ;;  %s5516_s3 = inlined_call_operand.hbm [shape: bf16[3,512,512], index: 3, kind: input, shape index: {}]   ;;  %s5517_s4 = inlined_call_operand.hbm [shape: f32[3,1,512], index: 4, kind: input, shape index: {}]   ;;  %s5518_s5 = inlined_call_operand.vmem [shape: bf16[16,512], index: 5, kind: output, shape index: {0}]   ;;  %s5519_s6 = inlined_call_operand.vmem [shape: bf16[16,512], index: 6, kind: output, shape index: {1}]   ;;  %s5520_s7 = inlined_call_operand.vmem [shape: bf16[16,512], index: 7, kind: output, shape index: {2}]  }
   0x1   :  { %14 = vsyncpa [#allocation5], 0 }
   0x2   :  { %15 = vsyncpa [#allocation8], 0  ;;  %s33_s26 = sshll.u32 %s5514_s1, 4  ;;  %s5243_s27 = smov [#allocation4]   ;;  %s34_s26 = int_to_ptr.hbm [resolvable:$true] %s33_s26 }
   0x3   :  { %s35_s28 = sshll.u32 %s5243_s27, 4  ;;  %s59_s8 = sshll.u32 %s5516_s3, 4  ;;  %s36_s28 = int_to_ptr.vmem [resolvable:$true] %s35_s28  ;;  %s60_s8 = int_to_ptr.hbm [resolvable:$true] %s59_s8 }
   0x4   :  { %s5244_s9 = smov 512   ;;  %s5245_s10 = smov 32  }
   0x5   :  { %41 = dma.hbm_to_vmem [thread:$0]  %s34_s26, 1024, %s36_s28, [#allocation5], %s5244_s9, %s5244_s9, %s5245_s10  }
   0x6   :  { %s5246_s11 = smov [#allocation7]   ;;  %s5247_s13 = smov 256  }
   0x7   :  { %s61_s12 = sshll.u32 %s5246_s11, 4  ;;  %s5248_s14 = smov 16   ;;  %s62_s12 = int_to_ptr.vmem [resolvable:$true] %s61_s12 }
   0x8   :  { %67 = dma.hbm_to_vmem [thread:$0]  %s60_s8, 49152, %s62_s12, [#allocation8], %s5247_s13, %s5247_s13, %s5248_s14  }
   0x9   :  { %s20_s16 = sshll.u32 %s5513_s0, 4  ;;  %s5249_s17 = smov [#allocation2]   ;;  %s21_s16 = int_to_ptr.hbm [resolvable:$true] %s20_s16 }
   0xa   :  { %s22_s18 = sshll.u32 %s5249_s17, 4  ;;  %s46_s20 = sshll.u32 %s5515_s2, 4  ;;  %s23_s18 = int_to_ptr.vmem [resolvable:$true] %s22_s18  ;;  %s47_s20 = int_to_ptr.hbm [resolvable:$true] %s46_s20 }
   0xb   :  { %28 = dma.hbm_to_vmem [thread:$0]  %s21_s16, 1024, %s23_s18, [#allocation3], %s5244_s9, %s5244_s9, %s5245_s10  }
   0xc   :  { %s5250_s21 = smov [#allocation6]   ;;  %s72_s25 = sshll.u32 %s5517_s4, 4  ;;  %s73_s25 = int_to_ptr.hbm [resolvable:$true] %s72_s25 }
   0xd   :  { %s48_s22 = sshll.u32 %s5250_s21, 4  ;;  %s5251_s0 = smov [#allocation9]   ;;  %s49_s22 = int_to_ptr.vmem [resolvable:$true] %s48_s22 }
   0xe   :  { %54 = dma.hbm_to_vmem [thread:$0]  %s47_s20, 1024, %s49_s22, [#allocation5], %s5244_s9, %s5244_s9, %s5245_s10  }
   0xf   :  { %s74_s26 = sshll.u32 %s5251_s0, 4  ;;  %s5252_s27 = smov 64   ;;  %s75_s26 = int_to_ptr.vmem [resolvable:$true] %s74_s26 }
  0x10   :  { %s5253_s28 = smov 4  }
  0x11   :  { %80 = dma.hbm_to_vmem [thread:$0]  %s73_s25, 192, %s75_s26, [#allocation8], %s5252_s27, %s5252_s27, %s5253_s28  }
  0x12   :  { %5237 = dma.done.wait [#allocation3], 1024  }
  0x13   :  { %5238 = vsyncadd [#allocation3], 4294966272 }
  0x14   :  { %5239 = dma.done.wait [#allocation5], 2048  }
  0x15   :  { %5240 = vsyncadd [#allocation5], 4294965248 }
  0x16   :  { %5241 = dma.done.wait [#allocation8], 49344  }
  0x17   :  { %5242 = vsyncadd [#allocation8], 4294917952  ;;  %v3300_v0 = vld [vmem:[#allocation7 + $0xe0] sm:$0xf]  ;;  %v4752_v1 = vld [vmem:[#allocation7 + $0xec] sm:$0xf0] }
  0x18   :  { %v3428_v2 = vld [vmem:[#allocation7 + $0x1e0] sm:$0xf]  ;;  %v3301_v3 = vor.u32 %v4752_v1, %v3300_v0  ;;  %v4784_v4 = vld [vmem:[#allocation7 + $0x1ec] sm:$0xf0] }
  0x19   :  { %v3556_v5 = vld [vmem:[#allocation7 + $0x2e0] sm:$0xf]  ;;  %v4816_v6 = vld [vmem:[#allocation7 + $0x2ec] sm:$0xf0]  ;;  %v3429_v7 = vor.u32 %v4784_v4, %v3428_v2 }
  0x1a   :  { %v3557_v8 = vor.u32 %v4816_v6, %v3556_v5  ;;  %v3684_v9 = vld [vmem:[#allocation7 + $0x3e0] sm:$0xf]  ;;  %v4848_v10 = vld [vmem:[#allocation7 + $0x3ec] sm:$0xf0]  ;;  %915 = vmatpush.bf16.msra.mxu0 %v3301_v3 }
  0x1b   :  { %v3284_v11 = vld [vmem:[#allocation7 + $0xc0] sm:$0xf]  ;;  %v3685_v12 = vor.u32 %v4848_v10, %v3684_v9  ;;  %v4748_v13 = vld [vmem:[#allocation7 + $0xcc] sm:$0xf0]  ;;  %929 = vmatpush.bf16.msra.mxu1 %v3429_v7 }
  0x1c   :  { %v3412_v14 = vld [vmem:[#allocation7 + $0x1c0] sm:$0xf]  ;;  %v4780_v15 = vld [vmem:[#allocation7 + $0x1cc] sm:$0xf0]  ;;  %943 = vmatpush.bf16.msra.mxu2 %v3557_v8  ;;  %v3285_v16 = vor.u32 %v4748_v13, %v3284_v11 }
  0x1d   :  { %v3413_v17 = vor.u32 %v4780_v15, %v3412_v14  ;;  %v3540_v18 = vld [vmem:[#allocation7 + $0x2c0] sm:$0xf]  ;;  %v4812_v19 = vld [vmem:[#allocation7 + $0x2cc] sm:$0xf0]  ;;  %957 = vmatpush.bf16.msra.mxu3 %v3685_v12 }
  0x1e   :  { %v3668_v20 = vld [vmem:[#allocation7 + $0x3c0] sm:$0xf]  ;;  %v3541_v21 = vor.u32 %v4812_v19, %v3540_v18  ;;  %v4844_v22 = vld [vmem:[#allocation7 + $0x3cc] sm:$0xf0]  ;;  %916 = vmatpush.bf16.msra.mxu0 %v3285_v16 }
  0x1f   :  { %v3268_v23 = vld [vmem:[#allocation7 + $0xa0] sm:$0xf]  ;;  %v4744_v24 = vld [vmem:[#allocation7 + $0xac] sm:$0xf0]  ;;  %v3669_v25 = vor.u32 %v4844_v22, %v3668_v20  ;;  %930 = vmatpush.bf16.msra.mxu1 %v3413_v17 }
  0x20   :  { %v3396_v26 = vld [vmem:[#allocation7 + $0x1a0] sm:$0xf]  ;;  %v4776_v27 = vld [vmem:[#allocation7 + $0x1ac] sm:$0xf0]  ;;  %v3269_v29 = vor.u32 %v4744_v24, %v3268_v23  ;;  %944 = vmatpush.bf16.msra.mxu2 %v3541_v21 }
  0x21   :  { %v3524_v28 = vld [vmem:[#allocation7 + $0x2a0] sm:$0xf]  ;;  %v4808_v30 = vld [vmem:[#allocation7 + $0x2ac] sm:$0xf0]  ;;  %v3397_v33 = vor.u32 %v4776_v27, %v3396_v26  ;;  %958 = vmatpush.bf16.msra.mxu3 %v3669_v25 }
  0x22   :  { %v3652_v31 = vld [vmem:[#allocation7 + $0x3a0] sm:$0xf]  ;;  %v4840_v32 = vld [vmem:[#allocation7 + $0x3ac] sm:$0xf0]  ;;  %v3525_v34 = vor.u32 %v4808_v30, %v3524_v28  ;;  %917 = vmatpush.bf16.msra.mxu0 %v3269_v29  ;;  %v4750_v28 = vld [vmem:[#allocation7 + $0xe4] sm:$0xf] }
  0x23   :  { %v3252_v35 = vld [vmem:[#allocation7 + $0x80] sm:$0xf]  ;;  %v4740_v36 = vld [vmem:[#allocation7 + $0x8c] sm:$0xf0]  ;;  %v3653_v38 = vor.u32 %v4840_v32, %v3652_v31  ;;  %931 = vmatpush.bf16.msra.mxu1 %v3397_v33  ;;  %v3302_v29 = vld [vmem:[#allocation7 + $0xf0] sm:$0xf0] }
  0x24   :  { %v3380_v37 = vld [vmem:[#allocation7 + $0x180] sm:$0xf]  ;;  %v4772_v39 = vld [vmem:[#allocation7 + $0x18c] sm:$0xf0]  ;;  %v3253_v44 = vor.u32 %v4740_v36, %v3252_v35  ;;  %945 = vmatpush.bf16.msra.mxu2 %v3525_v34  ;;  %v4782_v30 = vld [vmem:[#allocation7 + $0x1e4] sm:$0xf] }
  0x25   :  { %v3508_v40 = vld [vmem:[#allocation7 + $0x280] sm:$0xf]  ;;  %v4804_v41 = vld [vmem:[#allocation7 + $0x28c] sm:$0xf0]  ;;  %v3381_v45 = vor.u32 %v4772_v39, %v3380_v37  ;;  %959 = vmatpush.bf16.msra.mxu3 %v3653_v38  ;;  %v3430_v32 = vld [vmem:[#allocation7 + $0x1f0] sm:$0xf0] }
  0x26   :  { %v3636_v42 = vld [vmem:[#allocation7 + $0x380] sm:$0xf]  ;;  %v4836_v43 = vld [vmem:[#allocation7 + $0x38c] sm:$0xf0]  ;;  %v3509_v46 = vor.u32 %v4804_v41, %v3508_v40  ;;  %918 = vmatpush.bf16.msra.mxu0 %v3253_v44  ;;  %v4814_v33 = vld [vmem:[#allocation7 + $0x2e4] sm:$0xf]  ;;  %v3305_v40 = vor.u32 %v4750_v28, %v3302_v29 }
  0x27   :  { %v3236_v47 = vld [vmem:[#allocation7 + $0x60] sm:$0xf]  ;;  %v4736_v48 = vld [vmem:[#allocation7 + $0x6c] sm:$0xf0]  ;;  %v3637_v50 = vor.u32 %v4836_v43, %v3636_v42  ;;  %932 = vmatpush.bf16.msra.mxu1 %v3381_v45  ;;  %v3558_v34 = vld [vmem:[#allocation7 + $0x2f0] sm:$0xf0]  ;;  %v3433_v43 = vor.u32 %v4782_v30, %v3430_v32 }
  0x28   :  { %v3364_v49 = vld [vmem:[#allocation7 + $0x160] sm:$0xf]  ;;  %v4768_v51 = vld [vmem:[#allocation7 + $0x16c] sm:$0xf0]  ;;  %v3237_v56 = vor.u32 %v4736_v48, %v3236_v47  ;;  %946 = vmatpush.bf16.msra.mxu2 %v3509_v46  ;;  %v4846_v37 = vld [vmem:[#allocation7 + $0x3e4] sm:$0xf]  ;;  %v3561_v44 = vor.u32 %v4814_v33, %v3558_v34 }
  0x29   :  { %v3492_v52 = vld [vmem:[#allocation7 + $0x260] sm:$0xf]  ;;  %v4800_v53 = vld [vmem:[#allocation7 + $0x26c] sm:$0xf0]  ;;  %v3365_v57 = vor.u32 %v4768_v51, %v3364_v49  ;;  %960 = vmatpush.bf16.msra.mxu3 %v3637_v50  ;;  %v3686_v38 = vld [vmem:[#allocation7 + $0x3f0] sm:$0xf0] }
  0x2a   :  { %v3620_v54 = vld [vmem:[#allocation7 + $0x360] sm:$0xf]  ;;  %v4832_v55 = vld [vmem:[#allocation7 + $0x36c] sm:$0xf0]  ;;  %v3493_v58 = vor.u32 %v4800_v53, %v3492_v52  ;;  %919 = vmatpush.bf16.msra.mxu0 %v3237_v56  ;;  %v4746_v41 = vld [vmem:[#allocation7 + $0xc4] sm:$0xf]  ;;  %v3689_v48 = vor.u32 %v4846_v37, %v3686_v38 }
  0x2b   :  { %v3220_v59 = vld [vmem:[#allocation7 + $0x40] sm:$0xf]  ;;  %v4732_v60 = vld [vmem:[#allocation7 + $0x4c] sm:$0xf0]  ;;  %v3621_v62 = vor.u32 %v4832_v55, %v3620_v54  ;;  %933 = vmatpush.bf16.msra.mxu1 %v3365_v57  ;;  %v3286_v42 = vld [vmem:[#allocation7 + $0xd0] sm:$0xf0] }
  0x2c   :  { %v3348_v61 = vld [vmem:[#allocation7 + $0x140] sm:$0xf]  ;;  %v4764_v63 = vld [vmem:[#allocation7 + $0x14c] sm:$0xf0]  ;;  %v3221_v4 = vor.u32 %v4732_v60, %v3220_v59  ;;  %947 = vmatpush.bf16.msra.mxu2 %v3493_v58  ;;  %v4778_v45 = vld [vmem:[#allocation7 + $0x1c4] sm:$0xf]  ;;  %v3289_v55 = vor.u32 %v4746_v41, %v3286_v42 }
  0x2d   :  { %v3476_v0 = vld [vmem:[#allocation7 + $0x240] sm:$0xf]  ;;  %v4796_v1 = vld [vmem:[#allocation7 + $0x24c] sm:$0xf0]  ;;  %v3349_v5 = vor.u32 %v4764_v63, %v3348_v61  ;;  %961 = vmatpush.bf16.msra.mxu3 %v3621_v62  ;;  %v3414_v46 = vld [vmem:[#allocation7 + $0x1d0] sm:$0xf0] }
  0x2e   :  { %v3604_v2 = vld [vmem:[#allocation7 + $0x340] sm:$0xf]  ;;  %v4828_v3 = vld [vmem:[#allocation7 + $0x34c] sm:$0xf0]  ;;  %v3477_v6 = vor.u32 %v4796_v1, %v3476_v0  ;;  %920 = vmatpush.bf16.msra.mxu0 %v3221_v4  ;;  %v4810_v47 = vld [vmem:[#allocation7 + $0x2c4] sm:$0xf]  ;;  %v3417_v60 = vor.u32 %v4778_v45, %v3414_v46 }
  0x2f   :  { %v3204_v7 = vld [vmem:[#allocation7 + $0x20] sm:$0xf]  ;;  %v4728_v8 = vld [vmem:[#allocation7 + $0x2c] sm:$0xf0]  ;;  %v3605_v10 = vor.u32 %v4828_v3, %v3604_v2  ;;  %934 = vmatpush.bf16.msra.mxu1 %v3349_v5  ;;  %v3542_v49 = vld [vmem:[#allocation7 + $0x2d0] sm:$0xf0] }
  0x30   :  { %v3332_v9 = vld [vmem:[#allocation7 + $0x120] sm:$0xf]  ;;  %v4760_v11 = vld [vmem:[#allocation7 + $0x12c] sm:$0xf0]  ;;  %v3205_v16 = vor.u32 %v4728_v8, %v3204_v7  ;;  %948 = vmatpush.bf16.msra.mxu2 %v3477_v6  ;;  %v4842_v50 = vld [vmem:[#allocation7 + $0x3c4] sm:$0xf]  ;;  %v3545_v61 = vor.u32 %v4810_v47, %v3542_v49 }
  0x31   :  { %v3460_v12 = vld [vmem:[#allocation7 + $0x220] sm:$0xf]  ;;  %v4792_v13 = vld [vmem:[#allocation7 + $0x22c] sm:$0xf0]  ;;  %v3333_v19 = vor.u32 %v4760_v11, %v3332_v9  ;;  %962 = vmatpush.bf16.msra.mxu3 %v3605_v10  ;;  %v3670_v51 = vld [vmem:[#allocation7 + $0x3d0] sm:$0xf0] }
  0x32   :  { %v3588_v14 = vld [vmem:[#allocation7 + $0x320] sm:$0xf]  ;;  %v4824_v15 = vld [vmem:[#allocation7 + $0x32c] sm:$0xf0]  ;;  %v3461_v20 = vor.u32 %v4792_v13, %v3460_v12  ;;  %921 = vmatpush.bf16.msra.mxu0 %v3205_v16  ;;  %v4742_v52 = vld [vmem:[#allocation7 + $0xa4] sm:$0xf]  ;;  %v3673_v1 = vor.u32 %v4842_v50, %v3670_v51 }
  0x33   :  { %v3188_v17 = vld [vmem:[#allocation7] sm:$0xf]  ;;  %v4724_v18 = vld [vmem:[#allocation7 + $0xc] sm:$0xf0]  ;;  %v3589_v24 = vor.u32 %v4824_v15, %v3588_v14  ;;  %935 = vmatpush.bf16.msra.mxu1 %v3333_v19  ;;  %v3270_v56 = vld [vmem:[#allocation7 + $0xb0] sm:$0xf0] }
  0x34   :  { %v3316_v21 = vld [vmem:[#allocation7 + $0x100] sm:$0xf]  ;;  %v4756_v22 = vld [vmem:[#allocation7 + $0x10c] sm:$0xf0]  ;;  %v3189_v31 = vor.u32 %v4724_v18, %v3188_v17  ;;  %949 = vmatpush.bf16.msra.mxu2 %v3461_v20  ;;  %v4774_v57 = vld [vmem:[#allocation7 + $0x1a4] sm:$0xf]  ;;  %v3273_v9 = vor.u32 %v4742_v52, %v3270_v56 }
  0x35   :  { %v3444_v23 = vld [vmem:[#allocation7 + $0x200] sm:$0xf]  ;;  %v4788_v25 = vld [vmem:[#allocation7 + $0x20c] sm:$0xf0]  ;;  %v3317_v35 = vor.u32 %v4756_v22, %v3316_v21  ;;  %963 = vmatpush.bf16.msra.mxu3 %v3589_v24  ;;  %v3398_v58 = vld [vmem:[#allocation7 + $0x1b0] sm:$0xf0] }
  0x36   :  { %v3572_v26 = vld [vmem:[#allocation7 + $0x300] sm:$0xf]  ;;  %v4820_v27 = vld [vmem:[#allocation7 + $0x30c] sm:$0xf0]  ;;  %v3445_v36 = vor.u32 %v4788_v25, %v3444_v23  ;;  %922 = vmatpush.bf16.msra.mxu0 %v3189_v31  ;;  %v4806_v62 = vld [vmem:[#allocation7 + $0x2a4] sm:$0xf]  ;;  %v3401_v12 = vor.u32 %v4774_v57, %v3398_v58 }
  0x37   :  { %v3573_v39 = vor.u32 %v4820_v27, %v3572_v26  ;;  %936 = vmatpush.bf16.msra.mxu1 %v3317_v35  ;;  %v103_v53 = vld [vmem:[#allocation2 + $0x10] sm:$0xff]  ;;  %v4838_v0 = vld [vmem:[#allocation7 + $0x3a4] sm:$0xf]  ;;  %v104_v6 = vld [vmem:[#allocation2 + $0x18] sm:$0xff] }
  0x38   :  { %950 = vmatpush.bf16.msra.mxu2 %v3445_v36  ;;  %v107_v54 = vld [vmem:[#allocation2 + $0x30] sm:$0xff]  ;;  %v101_v3 = vld [vmem:[#allocation2] sm:$0xff]  ;;  %v108_v7 = vld [vmem:[#allocation2 + $0x38] sm:$0xff] }
  0x39   :  { %964 = vmatpush.bf16.msra.mxu3 %v3573_v39  ;;  %v5309_v59 = vpack.c.bf16 %v107_v54, %v103_v53  ;;  %v3526_v63 = vld [vmem:[#allocation7 + $0x2b0] sm:$0xf0]  ;;  %v105_v4 = vld [vmem:[#allocation2 + $0x20] sm:$0xff]  ;;  %v102_v8 = vld [vmem:[#allocation2 + $0x8] sm:$0xff]  ;;  %v5314_v10 = vpack.c.bf16 %v108_v7, %v104_v6 }
  0x3a   :  { %971 = vmatpush.bf16.msrb.mxu0 %v3305_v40  ;;  %v3654_v2 = vld [vmem:[#allocation7 + $0x3b0] sm:$0xf0]  ;;  %v5312_v5 = vpack.c.bf16 %v105_v4, %v101_v3  ;;  %v106_v11 = vld [vmem:[#allocation2 + $0x28] sm:$0xff]  ;;  %v3529_v13 = vor.u32 %v4806_v62, %v3526_v63  ;;  %v4738_v14 = vld [vmem:[#allocation7 + $0x84] sm:$0xf] }
  0x3b   :  { %985 = vmatpush.bf16.msrb.mxu1 %v3433_v43  ;;  %951 = vmatmul.bf16.vlgmr.msra.gmra.mxu2 %v5309_v59  ;;  %v3254_v15 = vld [vmem:[#allocation7 + $0x90] sm:$0xf0]  ;;  %v4770_v16 = vld [vmem:[#allocation7 + $0x184] sm:$0xf]  ;;  %v5316_v17 = vpack.c.bf16 %v106_v11, %v102_v8  ;;  %v3657_v18 = vor.u32 %v4838_v0, %v3654_v2  ;;  %v3308_v11 = vld [vmem:[#allocation7 + $0xe8] sm:$0xf] }
  0x3c   :  { %999 = vmatpush.bf16.msrb.mxu2 %v3561_v44  ;;  %v3382_v19 = vld [vmem:[#allocation7 + $0x190] sm:$0xf0]  ;;  %v4802_v20 = vld [vmem:[#allocation7 + $0x284] sm:$0xf]  ;;  %923 = vmatmul.bf16.vlgmr.msra.gmra.mxu0 %v5312_v5  ;;  %v3257_v24 = vor.u32 %v4738_v14, %v3254_v15  ;;  %v4785_v15 = vld [vmem:[#allocation7 + $0x1f4] sm:$0xf0] }
  0x3d   :  { %1013 = vmatpush.bf16.msrb.mxu3 %v3689_v48  ;;  %v3510_v21 = vld [vmem:[#allocation7 + $0x290] sm:$0xf0]  ;;  %v4834_v22 = vld [vmem:[#allocation7 + $0x384] sm:$0xf]  ;;  %937 = vmatmul.bf16.vlgmr.msra.gmra.mxu1 %v5316_v17  ;;  %v3385_v25 = vor.u32 %v4770_v16, %v3382_v19  ;;  %v3564_v16 = vld [vmem:[#allocation7 + $0x2e8] sm:$0xf] }
  0x3e   :  { %972 = vmatpush.bf16.msrb.mxu0 %v3289_v55  ;;  %v3638_v23 = vld [vmem:[#allocation7 + $0x390] sm:$0xf0]  ;;  %965 = vmatmul.bf16.vlgmr.msra.gmra.mxu3 %v5314_v10  ;;  %v3513_v26 = vor.u32 %v4802_v20, %v3510_v21  ;;  %v4734_v27 = vld [vmem:[#allocation7 + $0x64] sm:$0xf]  ;;  %v3692_v21 = vld [vmem:[#allocation7 + $0x3e8] sm:$0xf] }
  0x3f   :  { %986 = vmatpush.bf16.msrb.mxu1 %v3417_v60  ;;  %v3238_v28 = vld [vmem:[#allocation7 + $0x70] sm:$0xf0]  ;;  %v4766_v29 = vld [vmem:[#allocation7 + $0x164] sm:$0xf]  ;;  %v3641_v30 = vor.u32 %v4834_v22, %v3638_v23  ;;  %v4849_v22 = vld [vmem:[#allocation7 + $0x3f4] sm:$0xf0] }
  0x40   :  { %1000 = vmatpush.bf16.msrb.mxu2 %v3545_v61  ;;  %v3366_v31 = vld [vmem:[#allocation7 + $0x170] sm:$0xf0]  ;;  %v4798_v32 = vld [vmem:[#allocation7 + $0x264] sm:$0xf]  ;;  %v3241_v36 = vor.u32 %v4734_v27, %v3238_v28  ;;  %v3292_v27 = vld [vmem:[#allocation7 + $0xc8] sm:$0xf] }
  0x41   :  { %1014 = vmatpush.bf16.msrb.mxu3 %v3673_v1  ;;  %v3494_v33 = vld [vmem:[#allocation7 + $0x270] sm:$0xf0]  ;;  %v4830_v34 = vld [vmem:[#allocation7 + $0x364] sm:$0xf]  ;;  %v3369_v37 = vor.u32 %v4766_v29, %v3366_v31  ;;  %v4749_v28 = vld [vmem:[#allocation7 + $0xd4] sm:$0xf0] }
  0x42   :  { %973 = vmatpush.bf16.msrb.mxu0 %v3273_v9  ;;  %v3622_v35 = vld [vmem:[#allocation7 + $0x370] sm:$0xf0]  ;;  %v3497_v38 = vor.u32 %v4798_v32, %v3494_v33  ;;  %v4730_v39 = vld [vmem:[#allocation7 + $0x44] sm:$0xf]  ;;  %v3420_v29 = vld [vmem:[#allocation7 + $0x1c8] sm:$0xf] }
  0x43   :  { %987 = vmatpush.bf16.msrb.mxu1 %v3401_v12  ;;  %v3222_v40 = vld [vmem:[#allocation7 + $0x50] sm:$0xf0]  ;;  %v4762_v41 = vld [vmem:[#allocation7 + $0x144] sm:$0xf]  ;;  %v3625_v42 = vor.u32 %v4830_v34, %v3622_v35  ;;  %v4753_v12 = vld [vmem:[#allocation7 + $0xf4] sm:$0xf0] }
  0x44   :  { %1001 = vmatpush.bf16.msrb.mxu2 %v3529_v13  ;;  %v3350_v43 = vld [vmem:[#allocation7 + $0x150] sm:$0xf0]  ;;  %v4794_v44 = vld [vmem:[#allocation7 + $0x244] sm:$0xf]  ;;  %v3225_v48 = vor.u32 %v4730_v39, %v3222_v40  ;;  %v3436_v13 = vld [vmem:[#allocation7 + $0x1e8] sm:$0xf] }
  0x45   :  { %1015 = vmatpush.bf16.msrb.mxu3 %v3657_v18  ;;  %v3478_v45 = vld [vmem:[#allocation7 + $0x250] sm:$0xf0]  ;;  %v4826_v46 = vld [vmem:[#allocation7 + $0x344] sm:$0xf]  ;;  %v3353_v49 = vor.u32 %v4762_v41, %v3350_v43  ;;  %v4817_v18 = vld [vmem:[#allocation7 + $0x2f4] sm:$0xf0] }
  0x46   :  { %974 = vmatpush.bf16.msrb.mxu0 %v3257_v24  ;;  %v3606_v47 = vld [vmem:[#allocation7 + $0x350] sm:$0xf0]  ;;  %v3481_v50 = vor.u32 %v4794_v44, %v3478_v45  ;;  %v4726_v51 = vld [vmem:[#allocation7 + $0x24] sm:$0xf]  ;;  %v3309_v24 = vor.u32 %v4753_v12, %v3308_v11  ;;  %v4781_v31 = vld [vmem:[#allocation7 + $0x1d4] sm:$0xf0] }
  0x47   :  { %988 = vmatpush.bf16.msrb.mxu1 %v3385_v25  ;;  %v3206_v52 = vld [vmem:[#allocation7 + $0x30] sm:$0xf0]  ;;  %v4758_v53 = vld [vmem:[#allocation7 + $0x124] sm:$0xf]  ;;  %v3609_v54 = vor.u32 %v4826_v46, %v3606_v47  ;;  %v3437_v25 = vor.u32 %v4785_v15, %v3436_v13  ;;  %v3548_v32 = vld [vmem:[#allocation7 + $0x2c8] sm:$0xf] }
  0x48   :  { %1002 = vmatpush.bf16.msrb.mxu2 %v3513_v26  ;;  %v3334_v55 = vld [vmem:[#allocation7 + $0x130] sm:$0xf0]  ;;  %v4790_v56 = vld [vmem:[#allocation7 + $0x224] sm:$0xf]  ;;  %v3209_v61 = vor.u32 %v4726_v51, %v3206_v52  ;;  %v3565_v26 = vor.u32 %v4817_v18, %v3564_v16  ;;  %v4813_v33 = vld [vmem:[#allocation7 + $0x2d4] sm:$0xf0] }
  0x49   :  { %1016 = vmatpush.bf16.msrb.mxu3 %v3641_v30  ;;  %v3462_v57 = vld [vmem:[#allocation7 + $0x230] sm:$0xf0]  ;;  %v4822_v58 = vld [vmem:[#allocation7 + $0x324] sm:$0xf]  ;;  %v3337_v0 = vor.u32 %v4758_v53, %v3334_v55  ;;  %v3693_v30 = vor.u32 %v4849_v22, %v3692_v21  ;;  %v3676_v34 = vld [vmem:[#allocation7 + $0x3c8] sm:$0xf] }
  0x4a   :  { %975 = vmatpush.bf16.msrb.mxu0 %v3241_v36  ;;  %v3590_v60 = vld [vmem:[#allocation7 + $0x330] sm:$0xf0]  ;;  %v4722_v62 = vld [vmem:[#allocation7 + $0x4] sm:$0xf]  ;;  %v3465_v1 = vor.u32 %v4790_v56, %v3462_v57  ;;  %v4845_v35 = vld [vmem:[#allocation7 + $0x3d4] sm:$0xf0]  ;;  %v3293_v36 = vor.u32 %v4749_v28, %v3292_v27 }
  0x4b   :  { %989 = vmatpush.bf16.msrb.mxu1 %v3369_v37  ;;  %v3190_v63 = vld [vmem:[#allocation7 + $0x10] sm:$0xf0]  ;;  %v4754_v2 = vld [vmem:[#allocation7 + $0x104] sm:$0xf]  ;;  %v3593_v6 = vor.u32 %v4822_v58, %v3590_v60  ;;  %v3421_v37 = vor.u32 %v4781_v31, %v3420_v29  ;;  %v3276_v39 = vld [vmem:[#allocation7 + $0xa8] sm:$0xf] }
  0x4c   :  { %1003 = vmatpush.bf16.msrb.mxu2 %v3497_v38  ;;  %v3318_v3 = vld [vmem:[#allocation7 + $0x110] sm:$0xf0]  ;;  %v4786_v4 = vld [vmem:[#allocation7 + $0x204] sm:$0xf]  ;;  %v3193_v14 = vor.u32 %v4722_v62, %v3190_v63  ;;  %v3549_v38 = vor.u32 %v4813_v33, %v3548_v32  ;;  %v4745_v40 = vld [vmem:[#allocation7 + $0xb4] sm:$0xf0] }
  0x4d   :  { %1017 = vmatpush.bf16.msrb.mxu3 %v3625_v42  ;;  %v3446_v7 = vld [vmem:[#allocation7 + $0x210] sm:$0xf0]  ;;  %v4818_v8 = vld [vmem:[#allocation7 + $0x304] sm:$0xf]  ;;  %v3321_v19 = vor.u32 %v4754_v2, %v3318_v3  ;;  %v3404_v41 = vld [vmem:[#allocation7 + $0x1a8] sm:$0xf]  ;;  %v3677_v42 = vor.u32 %v4845_v35, %v3676_v34 }
  0x4e   :  { %976 = vmatpush.bf16.msrb.mxu0 %v3225_v48  ;;  %v3574_v9 = vld [vmem:[#allocation7 + $0x310] sm:$0xf0]  ;;  %v3449_v20 = vor.u32 %v4786_v4, %v3446_v7  ;;  %v4777_v43 = vld [vmem:[#allocation7 + $0x1b4] sm:$0xf0]  ;;  %v3532_v44 = vld [vmem:[#allocation7 + $0x2a8] sm:$0xf]  ;;  %v3277_v48 = vor.u32 %v4745_v40, %v3276_v39 }
  0x4f   :  { %990 = vmatpush.bf16.msrb.mxu1 %v3353_v49  ;;  %v3577_v23 = vor.u32 %v4818_v8, %v3574_v9  ;;  %v4809_v45 = vld [vmem:[#allocation7 + $0x2b4] sm:$0xf0]  ;;  %v3660_v46 = vld [vmem:[#allocation7 + $0x3a8] sm:$0xf]  ;;  %v3405_v49 = vor.u32 %v4777_v43, %v3404_v41 }
  0x50   :  { %1004 = vmatpush.bf16.msrb.mxu2 %v3481_v50  ;;  %v4841_v47 = vld [vmem:[#allocation7 + $0x3b4] sm:$0xf0]  ;;  %v3533_v50 = vor.u32 %v4809_v45, %v3532_v44  ;;  %v3260_v51 = vld [vmem:[#allocation7 + $0x88] sm:$0xf] }
  0x51   :  { %1018 = vmatpush.bf16.msrb.mxu3 %v3609_v54  ;;  %v4741_v52 = vld [vmem:[#allocation7 + $0x94] sm:$0xf0]  ;;  %v3388_v53 = vld [vmem:[#allocation7 + $0x188] sm:$0xf]  ;;  %v3661_v54 = vor.u32 %v4841_v47, %v3660_v46 }
  0x52   :  { %977 = vmatpush.bf16.msrb.mxu0 %v3209_v61  ;;  %v4773_v55 = vld [vmem:[#allocation7 + $0x194] sm:$0xf0]  ;;  %v3516_v56 = vld [vmem:[#allocation7 + $0x288] sm:$0xf]  ;;  %v3261_v61 = vor.u32 %v4741_v52, %v3260_v51  ;;  %v3438_v52 = vld [vmem:[#allocation7 + $0x1f8] sm:$0xf0] }
  0x53   :  { %991 = vmatpush.bf16.msrb.mxu1 %v3337_v0  ;;  %v4805_v57 = vld [vmem:[#allocation7 + $0x294] sm:$0xf0]  ;;  %v3644_v58 = vld [vmem:[#allocation7 + $0x388] sm:$0xf]  ;;  %v3389_v62 = vor.u32 %v4773_v55, %v3388_v53  ;;  %v4815_v53 = vld [vmem:[#allocation7 + $0x2ec] sm:$0xf] }
  0x54   :  { %1005 = vmatpush.bf16.msrb.mxu2 %v3465_v1  ;;  %v4837_v60 = vld [vmem:[#allocation7 + $0x394] sm:$0xf0]  ;;  %v3517_v63 = vor.u32 %v4805_v57, %v3516_v56  ;;  %v3244_v0 = vld [vmem:[#allocation7 + $0x68] sm:$0xf]  ;;  %v4847_v57 = vld [vmem:[#allocation7 + $0x3ec] sm:$0xf] }
  0x55   :  { %1019 = vmatpush.bf16.msrb.mxu3 %v3593_v6  ;;  %v4737_v1 = vld [vmem:[#allocation7 + $0x74] sm:$0xf0]  ;;  %v3372_v2 = vld [vmem:[#allocation7 + $0x168] sm:$0xf]  ;;  %v3645_v3 = vor.u32 %v4837_v60, %v3644_v58  ;;  %v3694_v58 = vld [vmem:[#allocation7 + $0x3f8] sm:$0xf0] }
  0x56   :  { %978 = vmatpush.bf16.msrb.mxu0 %v3193_v14  ;;  %v4769_v4 = vld [vmem:[#allocation7 + $0x174] sm:$0xf0]  ;;  %v3500_v6 = vld [vmem:[#allocation7 + $0x268] sm:$0xf]  ;;  %v3245_v11 = vor.u32 %v4737_v1, %v3244_v0  ;;  %v4747_v0 = vld [vmem:[#allocation7 + $0xcc] sm:$0xf] }
  0x57   :  { %992 = vmatpush.bf16.msrb.mxu1 %v3321_v19  ;;  %v4801_v7 = vld [vmem:[#allocation7 + $0x274] sm:$0xf0]  ;;  %v3628_v8 = vld [vmem:[#allocation7 + $0x368] sm:$0xf]  ;;  %v3373_v12 = vor.u32 %v4769_v4, %v3372_v2  ;;  %v3294_v1 = vld [vmem:[#allocation7 + $0xd8] sm:$0xf0] }
  0x58   :  { %1006 = vmatpush.bf16.msrb.mxu2 %v3449_v20  ;;  %v4833_v9 = vld [vmem:[#allocation7 + $0x374] sm:$0xf0]  ;;  %v3501_v13 = vor.u32 %v4801_v7, %v3500_v6  ;;  %v3228_v14 = vld [vmem:[#allocation7 + $0x48] sm:$0xf]  ;;  %v4779_v2 = vld [vmem:[#allocation7 + $0x1cc] sm:$0xf] }
  0x59   :  { %1020 = vmatpush.bf16.msrb.mxu3 %v3577_v23  ;;  %979 = vmatmul.bf16.vlgmr.msrb.gmra.mxu0 %v5312_v5  ;;  %v4733_v15 = vld [vmem:[#allocation7 + $0x54] sm:$0xf0]  ;;  %v3356_v16 = vld [vmem:[#allocation7 + $0x148] sm:$0xf]  ;;  %v3629_v18 = vor.u32 %v4833_v9, %v3628_v8  ;;  %v3422_v4 = vld [vmem:[#allocation7 + $0x1d8] sm:$0xf0] }
  0x5a   :  { %1027 = vmatpush.bf16.msra.mxu0 %v3309_v24  ;;  %993 = vmatmul.bf16.vlgmr.msrb.gmra.mxu1 %v5316_v17  ;;  %v4765_v19 = vld [vmem:[#allocation7 + $0x154] sm:$0xf0]  ;;  %v3484_v20 = vld [vmem:[#allocation7 + $0x248] sm:$0xf]  ;;  %v3229_v24 = vor.u32 %v4733_v15, %v3228_v14  ;;  %v4811_v6 = vld [vmem:[#allocation7 + $0x2cc] sm:$0xf] }
  0x5b   :  { %1041 = vmatpush.bf16.msra.mxu1 %v3437_v25  ;;  %1007 = vmatmul.bf16.vlgmr.msrb.gmra.mxu2 %v5309_v59  ;;  %v4797_v21 = vld [vmem:[#allocation7 + $0x254] sm:$0xf0]  ;;  %v3612_v22 = vld [vmem:[#allocation7 + $0x348] sm:$0xf]  ;;  %v3357_v25 = vor.u32 %v4765_v19, %v3356_v16  ;;  %v3550_v7 = vld [vmem:[#allocation7 + $0x2d8] sm:$0xf0] }
  0x5c   :  { %1055 = vmatpush.bf16.msra.mxu2 %v3565_v26  ;;  %1021 = vmatmul.bf16.vlgmr.msrb.gmra.mxu3 %v5314_v10  ;;  %v4829_v23 = vld [vmem:[#allocation7 + $0x354] sm:$0xf0]  ;;  %v3485_v26 = vor.u32 %v4797_v21, %v3484_v20  ;;  %v3212_v27 = vld [vmem:[#allocation7 + $0x28] sm:$0xf]  ;;  %v4843_v8 = vld [vmem:[#allocation7 + $0x3cc] sm:$0xf] }
  0x5d   :  { %1069 = vmatpush.bf16.msra.mxu3 %v3693_v30  ;;  %v4729_v28 = vld [vmem:[#allocation7 + $0x34] sm:$0xf0]  ;;  %v3340_v29 = vld [vmem:[#allocation7 + $0x128] sm:$0xf]  ;;  %v3613_v30 = vor.u32 %v4829_v23, %v3612_v22  ;;  %v3678_v9 = vld [vmem:[#allocation7 + $0x3d8] sm:$0xf0] }
  0x5e   :  { %1028 = vmatpush.bf16.msra.mxu0 %v3293_v36  ;;  %v4761_v31 = vld [vmem:[#allocation7 + $0x134] sm:$0xf0]  ;;  %v3468_v32 = vld [vmem:[#allocation7 + $0x228] sm:$0xf]  ;;  %v3213_v36 = vor.u32 %v4729_v28, %v3212_v27  ;;  %v4743_v14 = vld [vmem:[#allocation7 + $0xac] sm:$0xf] }
  0x5f   :  { %1042 = vmatpush.bf16.msra.mxu1 %v3421_v37  ;;  %v4793_v33 = vld [vmem:[#allocation7 + $0x234] sm:$0xf0]  ;;  %v3596_v34 = vld [vmem:[#allocation7 + $0x328] sm:$0xf]  ;;  %v3341_v39 = vor.u32 %v4761_v31, %v3340_v29  ;;  %v3278_v15 = vld [vmem:[#allocation7 + $0xb8] sm:$0xf0] }
  0x60   :  { %1056 = vmatpush.bf16.msra.mxu2 %v3549_v38  ;;  %v4825_v35 = vld [vmem:[#allocation7 + $0x334] sm:$0xf0]  ;;  %v3196_v37 = vld [vmem:[#allocation7 + $0x8] sm:$0xf]  ;;  %v3469_v40 = vor.u32 %v4793_v33, %v3468_v32  ;;  %v4775_v16 = vld [vmem:[#allocation7 + $0x1ac] sm:$0xf] }
  0x61   :  { %1070 = vmatpush.bf16.msra.mxu3 %v3677_v42  ;;  %v4725_v38 = vld [vmem:[#allocation7 + $0x14] sm:$0xf0]  ;;  %v3324_v41 = vld [vmem:[#allocation7 + $0x108] sm:$0xf]  ;;  %v3597_v44 = vor.u32 %v4825_v35, %v3596_v34  ;;  %v3406_v19 = vld [vmem:[#allocation7 + $0x1b8] sm:$0xf0] }
  0x62   :  { %1029 = vmatpush.bf16.msra.mxu0 %v3277_v48  ;;  %v4757_v42 = vld [vmem:[#allocation7 + $0x114] sm:$0xf0]  ;;  %v3452_v43 = vld [vmem:[#allocation7 + $0x208] sm:$0xf]  ;;  %v4751_v48 = vld [vmem:[#allocation7 + $0xec] sm:$0xf]  ;;  %v3197_v51 = vor.u32 %v4725_v38, %v3196_v37 }
  0x63   :  { %1043 = vmatpush.bf16.msra.mxu1 %v3405_v49  ;;  %v4789_v45 = vld [vmem:[#allocation7 + $0x214] sm:$0xf0]  ;;  %v3580_v46 = vld [vmem:[#allocation7 + $0x308] sm:$0xf]  ;;  %v3310_v49 = vld [vmem:[#allocation7 + $0xf8] sm:$0xf0]  ;;  %v3325_v55 = vor.u32 %v4757_v42, %v3324_v41 }
  0x64   :  { %1057 = vmatpush.bf16.msra.mxu2 %v3533_v50  ;;  %v4821_v47 = vld [vmem:[#allocation7 + $0x314] sm:$0xf0]  ;;  %v4783_v50 = vld [vmem:[#allocation7 + $0x1ec] sm:$0xf]  ;;  %v3453_v56 = vor.u32 %v4789_v45, %v3452_v43  ;;  %v3534_v21 = vld [vmem:[#allocation7 + $0x2b8] sm:$0xf0] }
  0x65   :  { %1071 = vmatpush.bf16.msra.mxu3 %v3661_v54  ;;  %v3566_v54 = vld [vmem:[#allocation7 + $0x2f8] sm:$0xf0]  ;;  %v3581_v60 = vor.u32 %v4821_v47, %v3580_v46  ;;  %v4807_v20 = vld [vmem:[#allocation7 + $0x2ac] sm:$0xf] }
  0x66   :  { %1030 = vmatpush.bf16.msra.mxu0 %v3261_v61  ;;  %v3313_v61 = vor.u32 %v4751_v48, %v3310_v49  ;;  %v4839_v22 = vld [vmem:[#allocation7 + $0x3ac] sm:$0xf]  ;;  %v3662_v23 = vld [vmem:[#allocation7 + $0x3b8] sm:$0xf0] }
  0x67   :  { %1044 = vmatpush.bf16.msra.mxu1 %v3389_v62  ;;  %v3441_v62 = vor.u32 %v4783_v50, %v3438_v52  ;;  %v4739_v27 = vld [vmem:[#allocation7 + $0x8c] sm:$0xf]  ;;  %v3262_v28 = vld [vmem:[#allocation7 + $0x98] sm:$0xf0] }
  0x68   :  { %1058 = vmatpush.bf16.msra.mxu2 %v3517_v63  ;;  %v3569_v63 = vor.u32 %v4815_v53, %v3566_v54  ;;  %v4771_v29 = vld [vmem:[#allocation7 + $0x18c] sm:$0xf]  ;;  %v3390_v31 = vld [vmem:[#allocation7 + $0x198] sm:$0xf0] }
  0x69   :  { %1072 = vmatpush.bf16.msra.mxu3 %v3645_v3  ;;  %v3697_v3 = vor.u32 %v4847_v57, %v3694_v58  ;;  %v4803_v32 = vld [vmem:[#allocation7 + $0x28c] sm:$0xf]  ;;  %v3518_v33 = vld [vmem:[#allocation7 + $0x298] sm:$0xf0]  ;;  %v3393_v37 = vor.u32 %v4771_v29, %v3390_v31  ;;  %v4068_v29 = vld [vmem:[#allocation7 + $0x6e0] sm:$0xf] }
  0x6a   :  { %1031 = vmatpush.bf16.msra.mxu0 %v3245_v11  ;;  %v3297_v11 = vor.u32 %v4747_v0, %v3294_v1  ;;  %v4835_v34 = vld [vmem:[#allocation7 + $0x38c] sm:$0xf]  ;;  %v3646_v35 = vld [vmem:[#allocation7 + $0x398] sm:$0xf0]  ;;  %v3521_v38 = vor.u32 %v4803_v32, %v3518_v33  ;;  %v4196_v33 = vld [vmem:[#allocation7 + $0x7e0] sm:$0xf] }
  0x6b   :  { %1045 = vmatpush.bf16.msra.mxu1 %v3373_v12  ;;  %v3425_v12 = vor.u32 %v4779_v2, %v3422_v4  ;;  %v4767_v41 = vld [vmem:[#allocation7 + $0x16c] sm:$0xf]  ;;  %v3649_v42 = vor.u32 %v4835_v34, %v3646_v35  ;;  %v3374_v43 = vld [vmem:[#allocation7 + $0x178] sm:$0xf0]  ;;  %v4976_v34 = vld [vmem:[#allocation7 + $0x7ec] sm:$0xf0] }
  0x6c   :  { %1059 = vmatpush.bf16.msra.mxu2 %v3501_v13  ;;  %v3553_v13 = vor.u32 %v4811_v6, %v3550_v7  ;;  %v3502_v45 = vld [vmem:[#allocation7 + $0x278] sm:$0xf0]  ;;  %v4831_v46 = vld [vmem:[#allocation7 + $0x36c] sm:$0xf]  ;;  %v3377_v49 = vor.u32 %v4767_v41, %v3374_v43  ;;  %v3924_v41 = vld [vmem:[#allocation7 + $0x5c0] sm:$0xf] }
  0x6d   :  { %1073 = vmatpush.bf16.msra.mxu3 %v3629_v18  ;;  %v3681_v18 = vor.u32 %v4843_v8, %v3678_v9  ;;  %v3630_v47 = vld [vmem:[#allocation7 + $0x378] sm:$0xf0]  ;;  %v4763_v53 = vld [vmem:[#allocation7 + $0x14c] sm:$0xf]  ;;  %v4908_v43 = vld [vmem:[#allocation7 + $0x5cc] sm:$0xf0] }
  0x6e   :  { %1032 = vmatpush.bf16.msra.mxu0 %v3229_v24  ;;  %v3281_v24 = vor.u32 %v4743_v14, %v3278_v15  ;;  %v3230_v52 = vld [vmem:[#allocation7 + $0x58] sm:$0xf0]  ;;  %v3633_v54 = vor.u32 %v4831_v46, %v3630_v47  ;;  %v4827_v58 = vld [vmem:[#allocation7 + $0x34c] sm:$0xf]  ;;  %v4180_v46 = vld [vmem:[#allocation7 + $0x7c0] sm:$0xf] }
  0x6f   :  { %1046 = vmatpush.bf16.msra.mxu1 %v3357_v25  ;;  %v3409_v25 = vor.u32 %v4775_v16, %v3406_v19  ;;  %v3486_v57 = vld [vmem:[#allocation7 + $0x258] sm:$0xf0]  ;;  %v4727_v0 = vld [vmem:[#allocation7 + $0x2c] sm:$0xf]  ;;  %v4972_v47 = vld [vmem:[#allocation7 + $0x7cc] sm:$0xf0] }
  0x70   :  { %1060 = vmatpush.bf16.msra.mxu2 %v3485_v26  ;;  %v3537_v26 = vor.u32 %v4807_v20, %v3534_v21  ;;  %v3214_v1 = vld [vmem:[#allocation7 + $0x38] sm:$0xf0]  ;;  %v4759_v2 = vld [vmem:[#allocation7 + $0x12c] sm:$0xf] }
  0x71   :  { %1074 = vmatpush.bf16.msra.mxu3 %v3613_v30  ;;  %v3665_v30 = vor.u32 %v4839_v22, %v3662_v23  ;;  %v3342_v4 = vld [vmem:[#allocation7 + $0x138] sm:$0xf0]  ;;  %v4791_v6 = vld [vmem:[#allocation7 + $0x22c] sm:$0xf] }
  0x72   :  { %1033 = vmatpush.bf16.msra.mxu0 %v3213_v36  ;;  %v3265_v36 = vor.u32 %v4739_v27, %v3262_v28  ;;  %v3470_v7 = vld [vmem:[#allocation7 + $0x238] sm:$0xf0]  ;;  %v4823_v8 = vld [vmem:[#allocation7 + $0x32c] sm:$0xf]  ;;  %v3345_v14 = vor.u32 %v4759_v2, %v3342_v4  ;;  %v4912_v28 = vld [vmem:[#allocation7 + $0x5ec] sm:$0xf0] }
  0x73   :  { %1047 = vmatpush.bf16.msra.mxu1 %v3341_v39  ;;  %v4735_v39 = vld [vmem:[#allocation7 + $0x6c] sm:$0xf]  ;;  %v3598_v9 = vld [vmem:[#allocation7 + $0x338] sm:$0xf0]  ;;  %v3473_v15 = vor.u32 %v4791_v6, %v3470_v7  ;;  %v4020_v4 = vld [vmem:[#allocation7 + $0x680] sm:$0xf] }
  0x74   :  { %1061 = vmatpush.bf16.msra.mxu2 %v3469_v40  ;;  %v3246_v40 = vld [vmem:[#allocation7 + $0x78] sm:$0xf0]  ;;  %v4755_v16 = vld [vmem:[#allocation7 + $0x10c] sm:$0xf]  ;;  %v3601_v20 = vor.u32 %v4823_v8, %v3598_v9  ;;  %v4148_v6 = vld [vmem:[#allocation7 + $0x780] sm:$0xf] }
  0x75   :  { %1075 = vmatpush.bf16.msra.mxu3 %v3597_v44  ;;  %v4799_v44 = vld [vmem:[#allocation7 + $0x26c] sm:$0xf]  ;;  %v3249_v48 = vor.u32 %v4735_v39, %v3246_v40  ;;  %v3454_v21 = vld [vmem:[#allocation7 + $0x218] sm:$0xf0]  ;;  %v3796_v39 = vld [vmem:[#allocation7 + $0x4c0] sm:$0xf] }
  0x76   :  { %1034 = vmatpush.bf16.msra.mxu0 %v3197_v51  ;;  %v3505_v50 = vor.u32 %v4799_v44, %v3502_v45  ;;  %v4731_v51 = vld [vmem:[#allocation7 + $0x4c] sm:$0xf]  ;;  %v3582_v23 = vld [vmem:[#allocation7 + $0x318] sm:$0xf0]  ;;  %v4876_v40 = vld [vmem:[#allocation7 + $0x4cc] sm:$0xf0] }
  0x77   :  { %1048 = vmatpush.bf16.msra.mxu1 %v3325_v55  ;;  %v3358_v55 = vld [vmem:[#allocation7 + $0x158] sm:$0xf0]  ;;  %v4787_v19 = vld [vmem:[#allocation7 + $0x20c] sm:$0xf]  ;;  %v4052_v44 = vld [vmem:[#allocation7 + $0x6c0] sm:$0xf] }
  0x78   :  { %1062 = vmatpush.bf16.msra.mxu2 %v3453_v56  ;;  %v4795_v56 = vld [vmem:[#allocation7 + $0x24c] sm:$0xf]  ;;  %v3457_v32 = vor.u32 %v4787_v19, %v3454_v21  ;;  %v4940_v45 = vld [vmem:[#allocation7 + $0x6cc] sm:$0xf0]  ;;  %v3748_v9 = vld [vmem:[#allocation7 + $0x460] sm:$0xf] }
  0x79   :  { %1076 = vmatpush.bf16.msra.mxu3 %v3581_v60  ;;  %1035 = vmatmul.bf16.vlgmr.msra.gmra.mxu0 %v5312_v5  ;;  %v3614_v60 = vld [vmem:[#allocation7 + $0x358] sm:$0xf0]  ;;  %v4819_v22 = vld [vmem:[#allocation7 + $0x30c] sm:$0xf]  ;;  %v4960_v19 = vld [vmem:[#allocation7 + $0x76c] sm:$0xf0] }
  0x7a   :  { %1083 = vmatpush.bf16.msrb.mxu0 %v3313_v61  ;;  %1049 = vmatmul.bf16.vlgmr.msra.gmra.mxu1 %v5316_v17  ;;  %v3233_v61 = vor.u32 %v4731_v51, %v3230_v52  ;;  %v3585_v35 = vor.u32 %v4819_v22, %v3582_v23  ;;  %v3780_v51 = vld [vmem:[#allocation7 + $0x4a0] sm:$0xf]  ;;  %v4872_v52 = vld [vmem:[#allocation7 + $0x4ac] sm:$0xf0] }
  0x7b   :  { %1097 = vmatpush.bf16.msrb.mxu1 %v3441_v62  ;;  %1063 = vmatmul.bf16.vlgmr.msra.gmra.mxu2 %v5309_v59  ;;  %v3361_v62 = vor.u32 %v4763_v53, %v3358_v55  ;;  %v3908_v53 = vld [vmem:[#allocation7 + $0x5a0] sm:$0xf]  ;;  %v4904_v55 = vld [vmem:[#allocation7 + $0x5ac] sm:$0xf0] }
  0x7c   :  { %1111 = vmatpush.bf16.msrb.mxu2 %v3569_v63  ;;  %1077 = vmatmul.bf16.vlgmr.msra.gmra.mxu3 %v5314_v10  ;;  %v3489_v63 = vor.u32 %v4795_v56, %v3486_v57  ;;  %v4036_v56 = vld [vmem:[#allocation7 + $0x6a0] sm:$0xf]  ;;  %v4936_v57 = vld [vmem:[#allocation7 + $0x6ac] sm:$0xf0] }
  0x7d   :  { %1125 = vmatpush.bf16.msrb.mxu3 %v3697_v3  ;;  %v3617_v3 = vor.u32 %v4827_v58, %v3614_v60  ;;  %v4164_v58 = vld [vmem:[#allocation7 + $0x7a0] sm:$0xf]  ;;  %v4968_v60 = vld [vmem:[#allocation7 + $0x7ac] sm:$0xf0] }
  0x7e   :  { %1084 = vmatpush.bf16.msrb.mxu0 %v3297_v11  ;;  %v3217_v11 = vor.u32 %v4727_v0, %v3214_v1  ;;  %v3764_v0 = vld [vmem:[#allocation7 + $0x480] sm:$0xf]  ;;  %v4165_v2 = vor.u32 %v4968_v60, %v4164_v58  ;;  %v4910_v58 = vld [vmem:[#allocation7 + $0x5e4] sm:$0xf]  ;;  %v3942_v60 = vld [vmem:[#allocation7 + $0x5f0] sm:$0xf0] }
  0x7f   :  { %1098 = vmatpush.bf16.msrb.mxu1 %v3425_v12  ;;  %v4723_v12 = vld [vmem:[#allocation7 + $0xc] sm:$0xf]  ;;  %v3892_v1 = vld [vmem:[#allocation7 + $0x580] sm:$0xf] }
  0x80   :  { %1112 = vmatpush.bf16.msrb.mxu2 %v3553_v13  ;;  %v3198_v13 = vld [vmem:[#allocation7 + $0x18] sm:$0xf0]  ;;  %v3732_v23 = vld [vmem:[#allocation7 + $0x440] sm:$0xf] }
  0x81   :  { %1126 = vmatpush.bf16.msrb.mxu3 %v3681_v18  ;;  %v3326_v18 = vld [vmem:[#allocation7 + $0x118] sm:$0xf0]  ;;  %v3201_v27 = vor.u32 %v4723_v12, %v3198_v13  ;;  %v3876_v12 = vld [vmem:[#allocation7 + $0x560] sm:$0xf] }
  0x82   :  { %1085 = vmatpush.bf16.msrb.mxu0 %v3281_v24  ;;  %v3812_v24 = vld [vmem:[#allocation7 + $0x4e0] sm:$0xf]  ;;  %v3329_v31 = vor.u32 %v4755_v16, %v3326_v18  ;;  %v4928_v16 = vld [vmem:[#allocation7 + $0x66c] sm:$0xf0] }
  0x83   :  { %1099 = vmatpush.bf16.msrb.mxu1 %v3409_v25  ;;  %v4880_v25 = vld [vmem:[#allocation7 + $0x4ec] sm:$0xf0]  ;;  %v4132_v18 = vld [vmem:[#allocation7 + $0x760] sm:$0xf] }
  0x84   :  { %1113 = vmatpush.bf16.msrb.mxu2 %v3537_v26  ;;  %v3940_v26 = vld [vmem:[#allocation7 + $0x5e0] sm:$0xf] }
  0x85   :  { %1127 = vmatpush.bf16.msrb.mxu3 %v3665_v30  ;;  %v4944_v30 = vld [vmem:[#allocation7 + $0x6ec] sm:$0xf0] }
  0x86   :  { %1086 = vmatpush.bf16.msrb.mxu0 %v3265_v36  ;;  %v3813_v36 = vor.u32 %v4880_v25, %v3812_v24  ;;  %v4860_v24 = vld [vmem:[#allocation7 + $0x44c] sm:$0xf0]  ;;  %v3860_v25 = vld [vmem:[#allocation7 + $0x540] sm:$0xf] }
  0x87   :  { %1100 = vmatpush.bf16.msrb.mxu1 %v3393_v37  ;;  %v3941_v37 = vor.u32 %v4912_v28, %v3940_v26  ;;  %v4133_v26 = vor.u32 %v4960_v19, %v4132_v18  ;;  %v3988_v28 = vld [vmem:[#allocation7 + $0x640] sm:$0xf]  ;;  %v3926_v19 = vld [vmem:[#allocation7 + $0x5d0] sm:$0xf0] }
  0x88   :  { %1114 = vmatpush.bf16.msrb.mxu2 %v3521_v38  ;;  %v4069_v38 = vor.u32 %v4944_v30, %v4068_v29  ;;  %v4924_v29 = vld [vmem:[#allocation7 + $0x64c] sm:$0xf0]  ;;  %v4116_v30 = vld [vmem:[#allocation7 + $0x740] sm:$0xf] }
  0x89   :  { %1128 = vmatpush.bf16.msrb.mxu3 %v3649_v42  ;;  %v4197_v42 = vor.u32 %v4976_v34, %v4196_v33  ;;  %v3989_v34 = vor.u32 %v4924_v29, %v3988_v28 }
  0x8a   :  { %1087 = vmatpush.bf16.msrb.mxu0 %v3249_v48  ;;  %v3797_v48 = vor.u32 %v4876_v40, %v3796_v39  ;;  %v4888_v39 = vld [vmem:[#allocation7 + $0x52c] sm:$0xf0]  ;;  %v3972_v40 = vld [vmem:[#allocation7 + $0x620] sm:$0xf] }
  0x8b   :  { %1101 = vmatpush.bf16.msrb.mxu1 %v3377_v49  ;;  %v3925_v49 = vor.u32 %v4908_v43, %v3924_v41  ;;  %v4920_v41 = vld [vmem:[#allocation7 + $0x62c] sm:$0xf0] }
  0x8c   :  { %1115 = vmatpush.bf16.msrb.mxu2 %v3505_v50  ;;  %v4053_v50 = vor.u32 %v4940_v45, %v4052_v44  ;;  %v4952_v43 = vld [vmem:[#allocation7 + $0x72c] sm:$0xf0]  ;;  %v3700_v44 = vld [vmem:[#allocation7 + $0x400] sm:$0xf] }
  0x8d   :  { %1129 = vmatpush.bf16.msrb.mxu3 %v3633_v54  ;;  %v4181_v54 = vor.u32 %v4972_v47, %v4180_v46  ;;  %v4852_v46 = vld [vmem:[#allocation7 + $0x40c] sm:$0xf0]  ;;  %v3828_v47 = vld [vmem:[#allocation7 + $0x500] sm:$0xf] }
  0x8e   :  { %1088 = vmatpush.bf16.msrb.mxu0 %v3233_v61  ;;  %v3781_v61 = vor.u32 %v4872_v52, %v3780_v51  ;;  %v3956_v51 = vld [vmem:[#allocation7 + $0x600] sm:$0xf]  ;;  %v4916_v52 = vld [vmem:[#allocation7 + $0x60c] sm:$0xf0] }
  0x8f   :  { %1102 = vmatpush.bf16.msrb.mxu1 %v3361_v62  ;;  %v3909_v62 = vor.u32 %v4904_v55, %v3908_v53  ;;  %v4084_v53 = vld [vmem:[#allocation7 + $0x700] sm:$0xf]  ;;  %v4948_v55 = vld [vmem:[#allocation7 + $0x70c] sm:$0xf0] }
  0x90   :  { %1116 = vmatpush.bf16.msrb.mxu2 %v3489_v63  ;;  %v4037_v63 = vor.u32 %v4936_v57, %v4036_v56  ;;  %v4878_v56 = vld [vmem:[#allocation7 + $0x4e4] sm:$0xf]  ;;  %v3814_v57 = vld [vmem:[#allocation7 + $0x4f0] sm:$0xf0] }
  0x91   :  { %1130 = vmatpush.bf16.msrb.mxu3 %v3617_v3  ;;  %v4900_v3 = vld [vmem:[#allocation7 + $0x58c] sm:$0xf0] }
  0x92   :  { %1089 = vmatpush.bf16.msrb.mxu0 %v3217_v11  ;;  %v4864_v11 = vld [vmem:[#allocation7 + $0x46c] sm:$0xf0] }
  0x93   :  { %1103 = vmatpush.bf16.msrb.mxu1 %v3345_v14  ;;  %v4896_v14 = vld [vmem:[#allocation7 + $0x56c] sm:$0xf0] }
  0x94   :  { %1117 = vmatpush.bf16.msrb.mxu2 %v3473_v15  ;;  %v4004_v15 = vld [vmem:[#allocation7 + $0x660] sm:$0xf]  ;;  %v3877_v21 = vor.u32 %v4896_v14, %v3876_v12  ;;  %v3945_v12 = vor.u32 %v4910_v58, %v3942_v60  ;;  %v4906_v14 = vld [vmem:[#allocation7 + $0x5c4] sm:$0xf]  ;;  %v3878_v60 = vld [vmem:[#allocation7 + $0x570] sm:$0xf0] }
  0x95   :  { %1131 = vmatpush.bf16.msrb.mxu3 %v3601_v20  ;;  %v3749_v20 = vor.u32 %v4864_v11, %v3748_v9  ;;  %v4005_v22 = vor.u32 %v4928_v16, %v4004_v15  ;;  %v116_v9 = vld [vmem:[#allocation4 + $0x18] sm:$0xff]  ;;  %v114_v15 = vld [vmem:[#allocation4 + $0x8] sm:$0xff]  ;;  %v3929_v29 = vor.u32 %v4906_v14, %v3926_v19  ;;  %v4854_v14 = vld [vmem:[#allocation7 + $0x424] sm:$0xf] }
  0x96   :  { %1090 = vmatpush.bf16.msrb.mxu0 %v3201_v27  ;;  %v4892_v27 = vld [vmem:[#allocation7 + $0x54c] sm:$0xf0]  ;;  %v120_v11 = vld [vmem:[#allocation4 + $0x38] sm:$0xff]  ;;  %v118_v16 = vld [vmem:[#allocation4 + $0x28] sm:$0xff] }
  0x97   :  { %1104 = vmatpush.bf16.msrb.mxu1 %v3329_v31  ;;  %v4956_v31 = vld [vmem:[#allocation7 + $0x74c] sm:$0xf0]  ;;  %v3861_v33 = vor.u32 %v4892_v27, %v3860_v25  ;;  %v5339_v28 = vpack.c.bf16 %v118_v16, %v114_v15  ;;  %v3718_v15 = vld [vmem:[#allocation7 + $0x430] sm:$0xf0]  ;;  %v4886_v16 = vld [vmem:[#allocation7 + $0x524] sm:$0xf] }
  0x98   :  { %1118 = vmatpush.bf16.msrb.mxu2 %v3457_v32  ;;  %v3733_v32 = vor.u32 %v4860_v24, %v3732_v23  ;;  %v4970_v23 = vld [vmem:[#allocation7 + $0x7c4] sm:$0xf]  ;;  %v4182_v24 = vld [vmem:[#allocation7 + $0x7d0] sm:$0xf0] }
  0x99   :  { %1132 = vmatpush.bf16.msrb.mxu3 %v3585_v35  ;;  %1091 = vmatmul.bf16.vlgmr.msrb.gmra.mxu0 %v5312_v5  ;;  %v4932_v5 = vld [vmem:[#allocation7 + $0x68c] sm:$0xf0]  ;;  %v3716_v35 = vld [vmem:[#allocation7 + $0x420] sm:$0xf]  ;;  %v3846_v19 = vld [vmem:[#allocation7 + $0x530] sm:$0xf0] }
  0x9a   :  { %1919 = vmatpush.bf16.msra.mxu0 %v3813_v36  ;;  %1105 = vmatmul.bf16.vlgmr.msrb.gmra.mxu1 %v5316_v17  ;;  %v3893_v17 = vor.u32 %v4900_v3, %v3892_v1  ;;  %v4021_v8 = vor.u32 %v4932_v5, %v4020_v4  ;;  %v4856_v36 = vld [vmem:[#allocation7 + $0x42c] sm:$0xf0]  ;;  %v4874_v3 = vld [vmem:[#allocation7 + $0x4c4] sm:$0xf]  ;;  %v3798_v4 = vld [vmem:[#allocation7 + $0x4d0] sm:$0xf0] }
  0x9b   :  { %1933 = vmatpush.bf16.msra.mxu1 %v3941_v37  ;;  %1119 = vmatmul.bf16.vlgmr.msrb.gmra.mxu2 %v5309_v59  ;;  %v4868_v59 = vld [vmem:[#allocation7 + $0x48c] sm:$0xf0]  ;;  %v3844_v37 = vld [vmem:[#allocation7 + $0x520] sm:$0xf]  ;;  %v3717_v45 = vor.u32 %v4856_v36, %v3716_v35  ;;  %v3801_v27 = vor.u32 %v4874_v3, %v3798_v4  ;;  %v3910_v35 = vld [vmem:[#allocation7 + $0x5b0] sm:$0xf0] }
  0x9c   :  { %1947 = vmatpush.bf16.msra.mxu2 %v4069_v38  ;;  %1133 = vmatmul.bf16.vlgmr.msrb.gmra.mxu3 %v5314_v10  ;;  %v4964_v10 = vld [vmem:[#allocation7 + $0x78c] sm:$0xf0]  ;;  %v3765_v7 = vor.u32 %v4868_v59, %v3764_v0  ;;  %v4117_v38 = vor.u32 %v4956_v31, %v4116_v30  ;;  %v4974_v0 = vld [vmem:[#allocation7 + $0x7e4] sm:$0xf]  ;;  %v4198_v59 = vld [vmem:[#allocation7 + $0x7f0] sm:$0xf0] }
  0x9d   :  { %1961 = vmatpush.bf16.msra.mxu3 %v4197_v42  ;;  %v4149_v13 = vor.u32 %v4964_v10, %v4148_v6  ;;  %v4100_v42 = vld [vmem:[#allocation7 + $0x720] sm:$0xf]  ;;  %v115_v5 = vld [vmem:[#allocation4 + $0x10] sm:$0xff]  ;;  %v4201_v18 = vor.u32 %v4974_v0, %v4198_v59  ;;  %v4870_v31 = vld [vmem:[#allocation7 + $0x4a4] sm:$0xf] }
  0x9e   :  { %1920 = vmatpush.bf16.msra.mxu0 %v3797_v48  ;;  %v4884_v48 = vld [vmem:[#allocation7 + $0x50c] sm:$0xf0]  ;;  %v113_v10 = vld [vmem:[#allocation4] sm:$0xff]  ;;  %v4134_v0 = vld [vmem:[#allocation7 + $0x770] sm:$0xf0] }
  0x9f   :  { %1934 = vmatpush.bf16.msra.mxu1 %v3925_v49  ;;  %v3845_v49 = vor.u32 %v4888_v39, %v3844_v37  ;;  %v3829_v1 = vor.u32 %v4884_v48, %v3828_v47  ;;  %v119_v6 = vld [vmem:[#allocation4 + $0x30] sm:$0xff]  ;;  %v4934_v36 = vld [vmem:[#allocation7 + $0x6a4] sm:$0xf] }
  0xa0   :  { %1948 = vmatpush.bf16.msra.mxu2 %v4053_v50  ;;  %v3973_v50 = vor.u32 %v4920_v41, %v3972_v40  ;;  %v4038_v37 = vld [vmem:[#allocation7 + $0x6b0] sm:$0xf0]  ;;  %v4930_v48 = vld [vmem:[#allocation7 + $0x684] sm:$0xf] }
  0xa1   :  { %1962 = vmatpush.bf16.msra.mxu3 %v4181_v54  ;;  %v4101_v54 = vor.u32 %v4952_v43, %v4100_v42  ;;  %v4166_v39 = vld [vmem:[#allocation7 + $0x7b0] sm:$0xf0]  ;;  %v4041_v42 = vor.u32 %v4934_v36, %v4038_v37  ;;  %v4866_v43 = vld [vmem:[#allocation7 + $0x484] sm:$0xf] }
  0xa2   :  { %1921 = vmatpush.bf16.msra.mxu0 %v3781_v61  ;;  %v4942_v61 = vld [vmem:[#allocation7 + $0x6e4] sm:$0xf]  ;;  %v3894_v47 = vld [vmem:[#allocation7 + $0x590] sm:$0xf0] }
  0xa3   :  { %1935 = vmatpush.bf16.msra.mxu1 %v3909_v62  ;;  %v3701_v62 = vor.u32 %v4852_v46, %v3700_v44  ;;  %v3766_v44 = vld [vmem:[#allocation7 + $0x490] sm:$0xf0]  ;;  %v4858_v3 = vld [vmem:[#allocation7 + $0x444] sm:$0xf] }
  0xa4   :  { %1949 = vmatpush.bf16.msra.mxu2 %v4037_v63  ;;  %v4070_v63 = vld [vmem:[#allocation7 + $0x6f0] sm:$0xf0]  ;;  %v4914_v37 = vld [vmem:[#allocation7 + $0x604] sm:$0xf] }
  0xa5   :  { %1963 = vmatpush.bf16.msra.mxu3 %v4165_v2  ;;  %v3957_v2 = vor.u32 %v4916_v52, %v3956_v51  ;;  %v4150_v51 = vld [vmem:[#allocation7 + $0x790] sm:$0xf0]  ;;  %v3769_v52 = vor.u32 %v4866_v43, %v3766_v44  ;;  %v4881_v43 = vld [vmem:[#allocation7 + $0x4f4] sm:$0xf0]  ;;  %v3948_v44 = vld [vmem:[#allocation7 + $0x5e8] sm:$0xf] }
  0xa6   :  { %1922 = vmatpush.bf16.msra.mxu0 %v3765_v7  ;;  %v4085_v7 = vor.u32 %v4948_v55, %v4084_v53  ;;  %v4862_v55 = vld [vmem:[#allocation7 + $0x464] sm:$0xf]  ;;  %v3734_v4 = vld [vmem:[#allocation7 + $0x450] sm:$0xf0] }
  0xa7   :  { %1936 = vmatpush.bf16.msra.mxu1 %v3893_v17  ;;  %v3817_v17 = vor.u32 %v4878_v56, %v3814_v57  ;;  %v3750_v56 = vld [vmem:[#allocation7 + $0x470] sm:$0xf0]  ;;  %v4894_v57 = vld [vmem:[#allocation7 + $0x564] sm:$0xf] }
  0xa8   :  { %1950 = vmatpush.bf16.msra.mxu2 %v4021_v8  ;;  %v117_v8 = vld [vmem:[#allocation4 + $0x20] sm:$0xff]  ;;  %v3753_v59 = vor.u32 %v4862_v55, %v3750_v56  ;;  %v3830_v36 = vld [vmem:[#allocation7 + $0x510] sm:$0xf0] }
  0xa9   :  { %1964 = vmatpush.bf16.msra.mxu3 %v4149_v13  ;;  %v4073_v13 = vor.u32 %v4942_v61, %v4070_v63  ;;  %v5335_v25 = vpack.c.bf16 %v117_v8, %v113_v10  ;;  %v4926_v61 = vld [vmem:[#allocation7 + $0x664] sm:$0xf]  ;;  %v3862_v10 = vld [vmem:[#allocation7 + $0x550] sm:$0xf0]  ;;  %v5353_v55 = vld [vmem:[#allocation9] sm:$0xf] }
  0xaa   :  { %1923 = vmatpush.bf16.msra.mxu0 %v3749_v20  ;;  %v4938_v20 = vld [vmem:[#allocation7 + $0x6c4] sm:$0xf] }
  0xab   :  { %1937 = vmatpush.bf16.msra.mxu1 %v3877_v21  ;;  %v4054_v21 = vld [vmem:[#allocation7 + $0x6d0] sm:$0xf0]  ;;  %v4958_v63 = vld [vmem:[#allocation7 + $0x764] sm:$0xf] }
  0xac   :  { %1951 = vmatpush.bf16.msra.mxu2 %v4005_v22  ;;  %v5333_v22 = vpack.c.bf16 %v119_v6, %v115_v5  ;;  %v4057_v30 = vor.u32 %v4938_v20, %v4054_v21  ;;  %v4890_v5 = vld [vmem:[#allocation7 + $0x544] sm:$0xf]  ;;  %v4137_v6 = vor.u32 %v4958_v63, %v4134_v0  ;;  %v3974_v21 = vld [vmem:[#allocation7 + $0x630] sm:$0xf0]  ;;  %v3932_v63 = vld [vmem:[#allocation7 + $0x5c8] sm:$0xf] }
  0xad   :  { %1965 = vmatpush.bf16.msra.mxu3 %v4133_v26  ;;  %v5337_v26 = vpack.c.bf16 %v120_v11, %v116_v9  ;;  %v4954_v8 = vld [vmem:[#allocation7 + $0x744] sm:$0xf]  ;;  %v4118_v9 = vld [vmem:[#allocation7 + $0x750] sm:$0xf0]  ;;  %v3737_v11 = vor.u32 %v4858_v3, %v3734_v4  ;;  %v4188_v4 = vld [vmem:[#allocation7 + $0x7c8] sm:$0xf] }
  0xae   :  { %1924 = vmatpush.bf16.msra.mxu0 %v3733_v32  ;;  %v3782_v32 = vld [vmem:[#allocation7 + $0x4b0] sm:$0xf0]  ;;  %v4918_v20 = vld [vmem:[#allocation7 + $0x624] sm:$0xf] }
  0xaf   :  { %1938 = vmatpush.bf16.msra.mxu1 %v3861_v33  ;;  %v4902_v33 = vld [vmem:[#allocation7 + $0x5a4] sm:$0xf]  ;;  %v3785_v40 = vor.u32 %v4870_v31, %v3782_v32  ;;  %v3702_v32 = vld [vmem:[#allocation7 + $0x410] sm:$0xf0] }
  0xb0   :  { %1952 = vmatpush.bf16.msra.mxu2 %v3989_v34  ;;  %v4185_v34 = vor.u32 %v4970_v23, %v4182_v24  ;;  %v3913_v41 = vor.u32 %v4902_v33, %v3910_v35  ;;  %v4950_v24 = vld [vmem:[#allocation7 + $0x724] sm:$0xf]  ;;  %v3849_v33 = vor.u32 %v4886_v16, %v3846_v19  ;;  %v4937_v16 = vld [vmem:[#allocation7 + $0x6b4] sm:$0xf0] }
  0xb1   :  { %1966 = vmatpush.bf16.msra.mxu3 %v4117_v38  ;;  %v4966_v38 = vld [vmem:[#allocation7 + $0x7a4] sm:$0xf]  ;;  %v4969_v19 = vld [vmem:[#allocation7 + $0x7b4] sm:$0xf0] }
  0xb2   :  { %1925 = vmatpush.bf16.msra.mxu0 %v3717_v45  ;;  %v4898_v45 = vld [vmem:[#allocation7 + $0x584] sm:$0xf]  ;;  %v4169_v46 = vor.u32 %v4966_v38, %v4166_v39  ;;  %v3958_v39 = vld [vmem:[#allocation7 + $0x610] sm:$0xf0] }
  0xb3   :  { %1939 = vmatpush.bf16.msra.mxu1 %v3845_v49  ;;  %v4022_v49 = vld [vmem:[#allocation7 + $0x690] sm:$0xf0]  ;;  %v3897_v53 = vor.u32 %v4898_v45, %v3894_v47  ;;  %v4850_v31 = vld [vmem:[#allocation7 + $0x404] sm:$0xf]  ;;  %v4913_v47 = vld [vmem:[#allocation7 + $0x5f4] sm:$0xf0] }
  0xb4   :  { %1953 = vmatpush.bf16.msra.mxu2 %v3973_v50  ;;  %v4962_v50 = vld [vmem:[#allocation7 + $0x784] sm:$0xf] }
  0xb5   :  { %1967 = vmatpush.bf16.msra.mxu3 %v4101_v54  ;;  %v4025_v54 = vor.u32 %v4930_v48, %v4022_v49  ;;  %v4153_v58 = vor.u32 %v4962_v50, %v4150_v51  ;;  %v4882_v35 = vld [vmem:[#allocation7 + $0x504] sm:$0xf]  ;;  %v4076_v48 = vld [vmem:[#allocation7 + $0x6e8] sm:$0xf]  ;;  %v4945_v49 = vld [vmem:[#allocation7 + $0x6f4] sm:$0xf0] }
  0xb6   :  { %1926 = vmatpush.bf16.msra.mxu0 %v3701_v62  ;;  %v4006_v62 = vld [vmem:[#allocation7 + $0x670] sm:$0xf0]  ;;  %v3833_v51 = vor.u32 %v4882_v35, %v3830_v36  ;;  %v268_v35 = vperm.slane %v5353_v55, 1 }
  0xb7   :  { %1940 = vmatpush.bf16.msra.mxu1 %v3829_v1  ;;  %v3881_v1 = vor.u32 %v4894_v57, %v3878_v60  ;;  %v4077_v60 = vor.u32 %v4945_v49, %v4076_v48  ;;  %v3756_v49 = vld [vmem:[#allocation7 + $0x468] sm:$0xf] }
  0xb8   :  { %1954 = vmatpush.bf16.msra.mxu2 %v3957_v2  ;;  %v4009_v2 = vor.u32 %v4926_v61, %v4006_v62  ;;  %v3804_v61 = vld [vmem:[#allocation7 + $0x4c8] sm:$0xf]  ;;  %v4877_v62 = vld [vmem:[#allocation7 + $0x4d4] sm:$0xf0] }
  0xb9   :  { %1968 = vmatpush.bf16.msra.mxu3 %v4085_v7  ;;  %1927 = vmatmul.bf16.vlgmr.msra.gmra.mxu0 %v5335_v25  ;;  %v4922_v7 = vld [vmem:[#allocation7 + $0x644] sm:$0xf]  ;;  %v5345_v23 = vpop.f32.mrf.mxu0 }
  0xba   :  { %1975 = vmatpush.bf16.msrb.mxu0 %v3817_v17  ;;  %1941 = vmatmul.bf16.vlgmr.msra.gmra.mxu1 %v5339_v28  ;;  %v3990_v17 = vld [vmem:[#allocation7 + $0x650] sm:$0xf0] }
  0xbb   :  { %1989 = vmatpush.bf16.msrb.mxu1 %v3945_v12  ;;  %1955 = vmatmul.bf16.vlgmr.msra.gmra.mxu2 %v5333_v22  ;;  %v3865_v12 = vor.u32 %v4890_v5, %v3862_v10  ;;  %v4973_v5 = vld [vmem:[#allocation7 + $0x7d4] sm:$0xf0]  ;;  %v267_v10 = vperm.slane %v5353_v55, 0 }
  0xbc   :  { %2003 = vmatpush.bf16.msrb.mxu2 %v4073_v13  ;;  %1969 = vmatmul.bf16.vlgmr.msra.gmra.mxu3 %v5337_v26  ;;  %v3993_v13 = vor.u32 %v4922_v7, %v3990_v17  ;;  %v3805_v7 = vor.u32 %v4877_v62, %v3804_v61 }
  0xbd   :  { %2017 = vmatpush.bf16.msrb.mxu3 %v4201_v18  ;;  %v4121_v18 = vor.u32 %v4954_v8, %v4118_v9  ;;  %v3788_v9 = vld [vmem:[#allocation7 + $0x4a8] sm:$0xf] }
  0xbe   :  { %1976 = vmatpush.bf16.msrb.mxu0 %v3801_v27  ;;  %v4102_v27 = vld [vmem:[#allocation7 + $0x730] sm:$0xf0]  ;;  %v5349_v45 = vpop.f32.mrf.mxu2 }
  0xbf   :  { %1990 = vmatpush.bf16.msrb.mxu1 %v3929_v29  ;;  %v5347_v29 = vpop.f32.mrf.mxu1  ;;  %v4105_v38 = vor.u32 %v4950_v24, %v4102_v27 }
  0xc0   :  { %2004 = vmatpush.bf16.msrb.mxu2 %v4057_v30  ;;  %v3721_v30 = vor.u32 %v4854_v14, %v3718_v15  ;;  %v4905_v14 = vld [vmem:[#allocation7 + $0x5b4] sm:$0xf0]  ;;  %v4044_v15 = vld [vmem:[#allocation7 + $0x6a8] sm:$0xf] }
  0xc1   :  { %2018 = vmatpush.bf16.msrb.mxu3 %v4185_v34  ;;  %v3977_v34 = vor.u32 %v4918_v20, %v3974_v21  ;;  %v5351_v50 = vpop.f32.mrf.mxu3  ;;  %v5355_v3 = vpop.f32.mrf.mxu0  ;;  %v925_v21 = vadd.f32 %v5345_v23, %v267_v10  ;;  %v4933_v23 = vld [vmem:[#allocation7 + $0x694] sm:$0xf0] }
  0xc2   :  { %1977 = vmatpush.bf16.msrb.mxu0 %v3785_v40  ;;  %v4946_v40 = vld [vmem:[#allocation7 + $0x704] sm:$0xf]  ;;  %v927_v62 = vadd.f32 %v5355_v3, %v267_v10 }
  0xc3   :  { %1991 = vmatpush.bf16.msrb.mxu1 %v3913_v41  ;;  %v4086_v41 = vld [vmem:[#allocation7 + $0x710] sm:$0xf0] }
  0xc4   :  { %2005 = vmatpush.bf16.msrb.mxu2 %v4041_v42  ;;  %v3820_v42 = vld [vmem:[#allocation7 + $0x4e8] sm:$0xf]  ;;  %v4089_v56 = vor.u32 %v4946_v40, %v4086_v41  ;;  %v4965_v40 = vld [vmem:[#allocation7 + $0x794] sm:$0xf0]  ;;  %v939_v41 = vadd.f32 %v5347_v29, %v925_v21 }
  0xc5   :  { %2019 = vmatpush.bf16.msrb.mxu3 %v4169_v46  ;;  %v3705_v46 = vor.u32 %v4850_v31, %v3702_v32  ;;  %v3821_v57 = vor.u32 %v4881_v43, %v3820_v42  ;;  %v4045_v32 = vor.u32 %v4937_v16, %v4044_v15  ;;  %v4961_v29 = vld [vmem:[#allocation7 + $0x774] sm:$0xf0] }
  0xc6   :  { %1978 = vmatpush.bf16.msrb.mxu0 %v3769_v52  ;;  %v3961_v52 = vor.u32 %v4914_v37, %v3958_v39  ;;  %v5363_v20 = vpop.f32.mrf.mxu2  ;;  %v4901_v37 = vld [vmem:[#allocation7 + $0x594] sm:$0xf0]  ;;  %v4156_v39 = vld [vmem:[#allocation7 + $0x788] sm:$0xf]  ;;  %v953_v61 = vadd.f32 %v5349_v45, %v939_v41 }
  0xc7   :  { %1992 = vmatpush.bf16.msrb.mxu1 %v3897_v53  ;;  %v4204_v53 = vld [vmem:[#allocation7 + $0x7e8] sm:$0xf]  ;;  %v4853_v41 = vld [vmem:[#allocation7 + $0x414] sm:$0xf0] }
  0xc8   :  { %2006 = vmatpush.bf16.msrb.mxu2 %v4025_v54  ;;  %v4977_v54 = vld [vmem:[#allocation7 + $0x7f4] sm:$0xf0]  ;;  %v3996_v45 = vld [vmem:[#allocation7 + $0x648] sm:$0xf]  ;;  %v967_v3 = vadd.f32 %v5351_v50, %v953_v61 }
  0xc9   :  { %2020 = vmatpush.bf16.msrb.mxu3 %v4153_v58  ;;  %v3949_v58 = vor.u32 %v4913_v47, %v3948_v44  ;;  %v4205_v0 = vor.u32 %v4977_v54, %v4204_v53  ;;  %v5369_v27 = vpop.f32.mrf.mxu3  ;;  %v4157_v53 = vor.u32 %v4965_v40, %v4156_v39  ;;  %v4897_v54 = vld [vmem:[#allocation7 + $0x574] sm:$0xf0]  ;;  %v3980_v50 = vld [vmem:[#allocation7 + $0x628] sm:$0xf] }
  0xca   :  { %1979 = vmatpush.bf16.msrb.mxu0 %v3753_v59  ;;  %v4909_v59 = vld [vmem:[#allocation7 + $0x5d4] sm:$0xf0]  ;;  %v3708_v40 = vld [vmem:[#allocation7 + $0x408] sm:$0xf] }
  0xcb   :  { %1993 = vmatpush.bf16.msrb.mxu1 %v3881_v1  ;;  %v4060_v1 = vld [vmem:[#allocation7 + $0x6c8] sm:$0xf]  ;;  %v3933_v17 = vor.u32 %v4909_v59, %v3932_v63  ;;  %v3709_v61 = vor.u32 %v4853_v41, %v3708_v40  ;;  %v3902_v41 = vld [vmem:[#allocation7 + $0x598] sm:$0xf0] }
  0xcc   :  { %2007 = vmatpush.bf16.msrb.mxu2 %v4009_v2  ;;  %v4941_v2 = vld [vmem:[#allocation7 + $0x6d4] sm:$0xf0] }
  0xcd   :  { %2021 = vmatpush.bf16.msrb.mxu3 %v4137_v6  ;;  %v5357_v6 = vpop.f32.mrf.mxu1  ;;  %v4061_v8 = vor.u32 %v4941_v2, %v4060_v1  ;;  %v3740_v2 = vld [vmem:[#allocation7 + $0x448] sm:$0xf] }
  0xce   :  { %1980 = vmatpush.bf16.msrb.mxu0 %v3737_v11  ;;  %v4873_v11 = vld [vmem:[#allocation7 + $0x4b4] sm:$0xf0]  ;;  %v941_v10 = vadd.f32 %v5357_v6, %v927_v62  ;;  %v3950_v62 = vld [vmem:[#allocation7 + $0x5f8] sm:$0xf0] }
  0xcf   :  { %1994 = vmatpush.bf16.msrb.mxu1 %v3865_v12  ;;  %v3916_v12 = vld [vmem:[#allocation7 + $0x5a8] sm:$0xf]  ;;  %v3789_v24 = vor.u32 %v4873_v11, %v3788_v9  ;;  %v4893_v9 = vld [vmem:[#allocation7 + $0x554] sm:$0xf0] }
  0xd0   :  { %2008 = vmatpush.bf16.msrb.mxu2 %v3993_v13  ;;  %v4189_v13 = vor.u32 %v4973_v5, %v4188_v4  ;;  %v3917_v31 = vor.u32 %v4905_v14, %v3916_v12  ;;  %v4861_v4 = vld [vmem:[#allocation7 + $0x454] sm:$0xf0]  ;;  %v3868_v5 = vld [vmem:[#allocation7 + $0x548] sm:$0xf]  ;;  %v955_v39 = vadd.f32 %v5363_v20, %v941_v10  ;;  %v4062_v10 = vld [vmem:[#allocation7 + $0x6d8] sm:$0xf0] }
  0xd1   :  { %2022 = vmatpush.bf16.msrb.mxu3 %v4121_v18  ;;  %v4172_v18 = vld [vmem:[#allocation7 + $0x7a8] sm:$0xf]  ;;  %v4925_v11 = vld [vmem:[#allocation7 + $0x654] sm:$0xf0]  ;;  %v3741_v15 = vor.u32 %v4861_v4, %v3740_v2  ;;  %v4975_v2 = vld [vmem:[#allocation7 + $0x7ec] sm:$0xf] }
  0xd2   :  { %1981 = vmatpush.bf16.msrb.mxu0 %v3721_v30  ;;  %v3772_v30 = vld [vmem:[#allocation7 + $0x488] sm:$0xf]  ;;  %v4173_v36 = vor.u32 %v4969_v19, %v4172_v18  ;;  %v3869_v18 = vor.u32 %v4893_v9, %v3868_v5  ;;  %v3997_v19 = vor.u32 %v4925_v11, %v3996_v45  ;;  %v4206_v4 = vld [vmem:[#allocation7 + $0x7f8] sm:$0xf0]  ;;  %v4907_v11 = vld [vmem:[#allocation7 + $0x5cc] sm:$0xf] }
  0xd3   :  { %1995 = vmatpush.bf16.msrb.mxu1 %v3849_v33  ;;  %v4869_v33 = vld [vmem:[#allocation7 + $0x494] sm:$0xf0]  ;;  %v4124_v12 = vld [vmem:[#allocation7 + $0x748] sm:$0xf] }
  0xd4   :  { %2009 = vmatpush.bf16.msrb.mxu2 %v3977_v34  ;;  %v3900_v34 = vld [vmem:[#allocation7 + $0x588] sm:$0xf]  ;;  %v3773_v42 = vor.u32 %v4869_v33, %v3772_v30 }
  0xd5   :  { %2023 = vmatpush.bf16.msrb.mxu3 %v4105_v38  ;;  %v4028_v38 = vld [vmem:[#allocation7 + $0x688] sm:$0xf]  ;;  %v3901_v44 = vor.u32 %v4901_v37, %v3900_v34  ;;  %v4921_v37 = vld [vmem:[#allocation7 + $0x634] sm:$0xf0] }
  0xd6   :  { %1982 = vmatpush.bf16.msrb.mxu0 %v3705_v46  ;;  %v980_v43 = vpop.f32.mrf.mxu0  ;;  %v4029_v46 = vor.u32 %v4933_v23, %v4028_v38  ;;  %v3724_v30 = vld [vmem:[#allocation7 + $0x428] sm:$0xf]  ;;  %v4953_v23 = vld [vmem:[#allocation7 + $0x734] sm:$0xf0] }
  0xd7   :  { %1996 = vmatpush.bf16.msrb.mxu1 %v3833_v51  ;;  %v981_v47 = vadd.f32 %v980_v43, %v268_v35  ;;  %v994_v48 = vpop.f32.mrf.mxu1  ;;  %v4865_v51 = vld [vmem:[#allocation7 + $0x474] sm:$0xf0]  ;;  %v4108_v38 = vld [vmem:[#allocation7 + $0x728] sm:$0xf]  ;;  %v3981_v43 = vor.u32 %v4921_v37, %v3980_v50  ;;  %v4174_v50 = vld [vmem:[#allocation7 + $0x7b8] sm:$0xf0] }
  0xd8   :  { %2010 = vmatpush.bf16.msrb.mxu2 %v3961_v52  ;;  %v3884_v52 = vld [vmem:[#allocation7 + $0x568] sm:$0xf]  ;;  %v3757_v63 = vor.u32 %v4865_v51, %v3756_v49  ;;  %v4109_v49 = vor.u32 %v4953_v23, %v4108_v38  ;;  %v4867_v23 = vld [vmem:[#allocation7 + $0x48c] sm:$0xf] }
  0xd9   :  { %2024 = vmatpush.bf16.msrb.mxu3 %v4089_v56  ;;  %1983 = vmatmul.bf16.vlgmr.msrb.gmra.mxu0 %v5335_v25  ;;  %v4012_v56 = vld [vmem:[#allocation7 + $0x668] sm:$0xf] }
  0xda   :  { %2031 = vmatpush.bf16.msra.mxu0 %v3821_v57  ;;  %1997 = vmatmul.bf16.vlgmr.msrb.gmra.mxu1 %v5339_v28  ;;  %v4929_v57 = vld [vmem:[#allocation7 + $0x674] sm:$0xf0] }
  0xdb   :  { %2045 = vmatpush.bf16.msra.mxu1 %v3949_v58  ;;  %2011 = vmatmul.bf16.vlgmr.msrb.gmra.mxu2 %v5333_v22  ;;  %v995_v58 = vadd.f32 %v994_v48, %v981_v47  ;;  %v4013_v59 = vor.u32 %v4929_v57, %v4012_v56  ;;  %v4885_v47 = vld [vmem:[#allocation7 + $0x514] sm:$0xf0]  ;;  %v3964_v48 = vld [vmem:[#allocation7 + $0x608] sm:$0xf]  ;;  %v4879_v56 = vld [vmem:[#allocation7 + $0x4ec] sm:$0xf] }
  0xdc   :  { %2059 = vmatpush.bf16.msra.mxu2 %v4077_v60  ;;  %2025 = vmatmul.bf16.vlgmr.msrb.gmra.mxu3 %v5337_v26  ;;  %v4140_v60 = vld [vmem:[#allocation7 + $0x768] sm:$0xf]  ;;  %v3822_v57 = vld [vmem:[#allocation7 + $0x4f8] sm:$0xf0] }
  0xdd   :  { %2073 = vmatpush.bf16.msra.mxu3 %v4205_v0  ;;  %v3885_v0 = vor.u32 %v4897_v54, %v3884_v52  ;;  %v4917_v52 = vld [vmem:[#allocation7 + $0x614] sm:$0xf0] }
  0xde   :  { %2032 = vmatpush.bf16.msra.mxu0 %v3805_v7  ;;  %v1008_v1 = vpop.f32.mrf.mxu2  ;;  %v4141_v7 = vor.u32 %v4961_v29, %v4140_v60  ;;  %v982_v16 = vpop.f32.mrf.mxu0  ;;  %v4949_v54 = vld [vmem:[#allocation7 + $0x714] sm:$0xf0]  ;;  %v969_v60 = vadd.f32 %v5369_v27, %v955_v39  ;;  %v3806_v27 = vld [vmem:[#allocation7 + $0x4d8] sm:$0xf0] }
  0xdf   :  { %2046 = vmatpush.bf16.msra.mxu1 %v3933_v17  ;;  %v1009_v17 = vadd.f32 %v1008_v1, %v995_v58  ;;  %v983_v21 = vadd.f32 %v982_v16, %v268_v35  ;;  %v4911_v58 = vld [vmem:[#allocation7 + $0x5ec] sm:$0xf]  ;;  %v3965_v1 = vor.u32 %v4917_v52, %v3964_v48  ;;  %v3774_v39 = vld [vmem:[#allocation7 + $0x498] sm:$0xf0] }
  0xe0   :  { %2060 = vmatpush.bf16.msra.mxu2 %v4061_v8  ;;  %v1022_v8 = vpop.f32.mrf.mxu3  ;;  %v3953_v9 = vor.u32 %v4911_v58, %v3950_v62  ;;  %v4895_v52 = vld [vmem:[#allocation7 + $0x56c] sm:$0xf] }
  0xe1   :  { %2074 = vmatpush.bf16.msra.mxu3 %v4189_v13  ;;  %v4957_v13 = vld [vmem:[#allocation7 + $0x754] sm:$0xf0]  ;;  %v1023_v14 = vadd.f32 %v1022_v8, %v1009_v17  ;;  %v3825_v17 = vor.u32 %v4879_v56, %v3822_v57  ;;  %v4875_v8 = vld [vmem:[#allocation7 + $0x4cc] sm:$0xf]  ;;  %v4014_v57 = vld [vmem:[#allocation7 + $0x678] sm:$0xf0] }
  0xe2   :  { %2033 = vmatpush.bf16.msra.mxu0 %v3789_v24  ;;  %v996_v24 = vpop.f32.mrf.mxu1  ;;  %v4125_v34 = vor.u32 %v4957_v13, %v4124_v12  ;;  %v3934_v12 = vld [vmem:[#allocation7 + $0x5d8] sm:$0xf0]  ;;  %v4209_v13 = vor.u32 %v4975_v2, %v4206_v4  ;;  %v3809_v16 = vor.u32 %v4875_v8, %v3806_v27  ;;  %v4927_v56 = vld [vmem:[#allocation7 + $0x66c] sm:$0xf] }
  0xe3   :  { %2047 = vmatpush.bf16.msra.mxu1 %v3917_v31  ;;  %v4857_v31 = vld [vmem:[#allocation7 + $0x434] sm:$0xf0]  ;;  %v3147_v33 = vpack.c.bf16 %v1023_v14, %v967_v3  ;;  %v997_v6 = vadd.f32 %v996_v24, %v983_v21  ;;  %v4939_v3 = vld [vmem:[#allocation7 + $0x6cc] sm:$0xf]  ;;  %v3790_v24 = vld [vmem:[#allocation7 + $0x4b8] sm:$0xf0]  ;;  %v4017_v62 = vor.u32 %v4927_v56, %v4014_v57 }
  0xe4   :  { %2061 = vmatpush.bf16.msra.mxu2 %v4045_v32  ;;  %v3852_v32 = vld [vmem:[#allocation7 + $0x528] sm:$0xf]  ;;  %v3725_v35 = vor.u32 %v4857_v31, %v3724_v30  ;;  %v4971_v14 = vld [vmem:[#allocation7 + $0x7cc] sm:$0xf]  ;;  %v3870_v2 = vld [vmem:[#allocation7 + $0x558] sm:$0xf0] }
  0xe5   :  { %2075 = vmatpush.bf16.msra.mxu3 %v4173_v36  ;;  %v4889_v36 = vld [vmem:[#allocation7 + $0x534] sm:$0xf0]  ;;  %3151 = vst [vmem:[%s5518_s5] sm:$0xff] %v3147_v33  ;;  %v4871_v21 = vld [vmem:[#allocation7 + $0x4ac] sm:$0xf]  ;;  %v4308_v56 = vld [vmem:[#allocation7 + $0x8c0] sm:$0xf] }
  0xe6   :  { %2034 = vmatpush.bf16.msra.mxu0 %v3773_v42  ;;  %v3853_v42 = vor.u32 %v4889_v36, %v3852_v32  ;;  %v4903_v30 = vld [vmem:[#allocation7 + $0x5ac] sm:$0xf]  ;;  %v3918_v32 = vld [vmem:[#allocation7 + $0x5b8] sm:$0xf0]  ;;  %v3793_v37 = vor.u32 %v4871_v21, %v3790_v24  ;;  %v5004_v57 = vld [vmem:[#allocation7 + $0x8cc] sm:$0xf0] }
  0xe7   :  { %2048 = vmatpush.bf16.msra.mxu1 %v3901_v44  ;;  %v1010_v44 = vpop.f32.mrf.mxu2  ;;  %v4935_v33 = vld [vmem:[#allocation7 + $0x6ac] sm:$0xf] }
  0xe8   :  { %2062 = vmatpush.bf16.msra.mxu2 %v4029_v46  ;;  %v3836_v46 = vld [vmem:[#allocation7 + $0x508] sm:$0xf]  ;;  %v1011_v51 = vadd.f32 %v1010_v44, %v997_v6  ;;  %v1024_v20 = vpop.f32.mrf.mxu3  ;;  %v4967_v36 = vld [vmem:[#allocation7 + $0x7ac] sm:$0xf]  ;;  %v3921_v6 = vor.u32 %v4903_v30, %v3918_v32  ;;  %v3710_v30 = vld [vmem:[#allocation7 + $0x418] sm:$0xf0] }
  0xe9   :  { %2076 = vmatpush.bf16.msra.mxu3 %v4157_v53  ;;  %v4092_v53 = vld [vmem:[#allocation7 + $0x708] sm:$0xf]  ;;  %v4177_v40 = vor.u32 %v4967_v36, %v4174_v50  ;;  %v4963_v44 = vld [vmem:[#allocation7 + $0x78c] sm:$0xf] }
  0xea   :  { %2035 = vmatpush.bf16.msra.mxu0 %v3757_v63  ;;  %v1025_v29 = vadd.f32 %v1024_v20, %v1011_v51  ;;  %v4943_v63 = vld [vmem:[#allocation7 + $0x6ec] sm:$0xf]  ;;  %v3758_v20 = vld [vmem:[#allocation7 + $0x478] sm:$0xf0] }
  0xeb   :  { %2049 = vmatpush.bf16.msra.mxu1 %v3885_v0  ;;  %v4078_v0 = vld [vmem:[#allocation7 + $0x6f8] sm:$0xf0]  ;;  %v4863_v51 = vld [vmem:[#allocation7 + $0x46c] sm:$0xf] }
  0xec   :  { %2063 = vmatpush.bf16.msra.mxu2 %v4013_v59  ;;  %v3837_v59 = vor.u32 %v4885_v47, %v3836_v46  ;;  %v3149_v5 = vpack.c.bf16 %v1025_v29, %v969_v60  ;;  %v4081_v45 = vor.u32 %v4943_v63, %v4078_v0  ;;  %v4158_v46 = vld [vmem:[#allocation7 + $0x798] sm:$0xf0]  ;;  %v3777_v47 = vor.u32 %v4867_v23, %v3774_v39  ;;  %v4959_v58 = vld [vmem:[#allocation7 + $0x76c] sm:$0xf]  ;;  %v4324_v23 = vld [vmem:[#allocation7 + $0x8e0] sm:$0xf] }
  0xed   :  { %2077 = vmatpush.bf16.msra.mxu3 %v4141_v7  ;;  %v4093_v7 = vor.u32 %v4949_v54, %v4092_v53  ;;  %v4161_v53 = vor.u32 %v4963_v44, %v4158_v46  ;;  %v3886_v54 = vld [vmem:[#allocation7 + $0x578] sm:$0xf0]  ;;  %v3761_v29 = vor.u32 %v4863_v51, %v3758_v20  ;;  %v4859_v63 = vld [vmem:[#allocation7 + $0x44c] sm:$0xf]  ;;  %v5008_v39 = vld [vmem:[#allocation7 + $0x8ec] sm:$0xf0] }
  0xee   :  { %2036 = vmatpush.bf16.msra.mxu0 %v3741_v15  ;;  %3153 = vst [vmem:[%s5518_s5 + $0x10] sm:$0xff] %v3149_v5  ;;  %v4190_v15 = vld [vmem:[#allocation7 + $0x7d8] sm:$0xf0]  ;;  %v4923_v4 = vld [vmem:[#allocation7 + $0x64c] sm:$0xf] }
  0xef   :  { %2050 = vmatpush.bf16.msra.mxu1 %v3869_v18  ;;  %v3937_v18 = vor.u32 %v4907_v11, %v3934_v12  ;;  %v4193_v31 = vor.u32 %v4971_v14, %v4190_v15  ;;  %v4142_v60 = vld [vmem:[#allocation7 + $0x778] sm:$0xf0]  ;;  %v4855_v27 = vld [vmem:[#allocation7 + $0x42c] sm:$0xf]  ;;  %v5072_v44 = vld [vmem:[#allocation7 + $0xaec] sm:$0xf0] }
  0xf0   :  { %2064 = vmatpush.bf16.msra.mxu2 %v3997_v19  ;;  %v4065_v19 = vor.u32 %v4939_v3, %v4062_v10  ;;  %v3742_v0 = vld [vmem:[#allocation7 + $0x458] sm:$0xf0]  ;;  %v4887_v12 = vld [vmem:[#allocation7 + $0x52c] sm:$0xf]  ;;  %v5104_v51 = vld [vmem:[#allocation7 + $0xbec] sm:$0xf0] }
  0xf1   :  { %2078 = vmatpush.bf16.msra.mxu3 %v4125_v34  ;;  %v4046_v34 = vld [vmem:[#allocation7 + $0x6b8] sm:$0xf0]  ;;  %v3745_v8 = vor.u32 %v4859_v63, %v3742_v0  ;;  %v4919_v10 = vld [vmem:[#allocation7 + $0x62c] sm:$0xf]  ;;  %v4692_v0 = vld [vmem:[#allocation7 + $0xbc0] sm:$0xf] }
  0xf2   :  { %2037 = vmatpush.bf16.msra.mxu0 %v3725_v35  ;;  %v4049_v38 = vor.u32 %v4935_v33, %v4046_v34  ;;  %v4899_v35 = vld [vmem:[#allocation7 + $0x58c] sm:$0xf]  ;;  %v3998_v5 = vld [vmem:[#allocation7 + $0x658] sm:$0xf0] }
  0xf3   :  { %2051 = vmatpush.bf16.msra.mxu1 %v3853_v42  ;;  %v4931_v42 = vld [vmem:[#allocation7 + $0x68c] sm:$0xf]  ;;  %v3905_v48 = vor.u32 %v4899_v35, %v3902_v41  ;;  %v3726_v11 = vld [vmem:[#allocation7 + $0x438] sm:$0xf0]  ;;  %v4452_v35 = vld [vmem:[#allocation7 + $0x9e0] sm:$0xf] }
  0xf4   :  { %2065 = vmatpush.bf16.msra.mxu2 %v3981_v43  ;;  %v4030_v43 = vld [vmem:[#allocation7 + $0x698] sm:$0xf0]  ;;  %v3729_v21 = vor.u32 %v4855_v27, %v3726_v11  ;;  %v4851_v24 = vld [vmem:[#allocation7 + $0x40c] sm:$0xf]  ;;  %v5032_v27 = vld [vmem:[#allocation7 + $0x9ac] sm:$0xf0] }
  0xf5   :  { %2079 = vmatpush.bf16.msra.mxu3 %v4109_v49  ;;  %v4033_v49 = vor.u32 %v4931_v42, %v4030_v43  ;;  %v3854_v3 = vld [vmem:[#allocation7 + $0x538] sm:$0xf0]  ;;  %v4883_v33 = vld [vmem:[#allocation7 + $0x50c] sm:$0xf]  ;;  %v3713_v41 = vor.u32 %v4851_v24, %v3710_v30  ;;  %v5040_v42 = vld [vmem:[#allocation7 + $0x9ec] sm:$0xf0] }
  0xf6   :  { %2038 = vmatpush.bf16.msra.mxu0 %v3709_v61  ;;  %v3889_v61 = vor.u32 %v4895_v52, %v3886_v54  ;;  %v3982_v14 = vld [vmem:[#allocation7 + $0x638] sm:$0xf0]  ;;  %v5391_v15 = vpop.f32.mrf.mxu0  ;;  %v4915_v36 = vld [vmem:[#allocation7 + $0x60c] sm:$0xf]  ;;  %v4580_v43 = vld [vmem:[#allocation7 + $0xae0] sm:$0xf]  ;;  %v4325_v52 = vor.u32 %v5008_v39, %v4324_v23 }
  0xf7   :  { %2052 = vmatpush.bf16.msra.mxu1 %v3837_v59  ;;  %v4891_v59 = vld [vmem:[#allocation7 + $0x54c] sm:$0xf]  ;;  %v3985_v32 = vor.u32 %v4919_v10, %v3982_v14  ;;  %v3838_v34 = vld [vmem:[#allocation7 + $0x518] sm:$0xf0]  ;;  %v4581_v54 = vor.u32 %v5072_v44, %v4580_v43  ;;  %v4548_v11 = vld [vmem:[#allocation7 + $0xaa0] sm:$0xf] }
  0xf8   :  { %2066 = vmatpush.bf16.msra.mxu2 %v3965_v1  ;;  %v4145_v1 = vor.u32 %v4959_v58, %v4142_v60  ;;  %v4436_v58 = vld [vmem:[#allocation7 + $0x9c0] sm:$0xf]  ;;  %v270_v30 = vperm.slane %v5353_v55, 3  ;;  %v5024_v44 = vld [vmem:[#allocation7 + $0x96c] sm:$0xf0] }
  0xf9   :  { %2080 = vmatpush.bf16.msra.mxu3 %v4093_v7  ;;  %2039 = vmatmul.bf16.vlgmr.msra.gmra.mxu0 %v5335_v25  ;;  %v4955_v7 = vld [vmem:[#allocation7 + $0x74c] sm:$0xf]  ;;  %v4404_v24 = vld [vmem:[#allocation7 + $0x980] sm:$0xf] }
  0xfa   :  { %2087 = vmatpush.bf16.msrb.mxu0 %v3825_v17  ;;  %2053 = vmatmul.bf16.vlgmr.msra.gmra.mxu1 %v5339_v28  ;;  %v4126_v17 = vld [vmem:[#allocation7 + $0x758] sm:$0xf0] }
  0xfb   :  { %2101 = vmatpush.bf16.msrb.mxu1 %v3953_v9  ;;  %2067 = vmatmul.bf16.vlgmr.msra.gmra.mxu2 %v5333_v22  ;;  %v3873_v9 = vor.u32 %v4891_v59, %v3870_v2  ;;  %v5100_v59 = vld [vmem:[#allocation7 + $0xbcc] sm:$0xf0]  ;;  %v269_v2 = vperm.slane %v5353_v55, 2  ;;  %v4628_v55 = vld [vmem:[#allocation7 + $0xb40] sm:$0xf] }
  0xfc   :  { %2115 = vmatpush.bf16.msrb.mxu2 %v4081_v45  ;;  %2081 = vmatmul.bf16.vlgmr.msra.gmra.mxu3 %v5337_v26  ;;  %v4001_v45 = vor.u32 %v4923_v4, %v3998_v5  ;;  %v4309_v4 = vor.u32 %v5004_v57, %v4308_v56 }
  0xfd   :  { %2129 = vmatpush.bf16.msrb.mxu3 %v4209_v13  ;;  %v4129_v13 = vor.u32 %v4955_v7, %v4126_v17  ;;  %v4292_v17 = vld [vmem:[#allocation7 + $0x8a0] sm:$0xf]  ;;  %v1037_v14 = vadd.f32 %v5391_v15, %v269_v2  ;;  %v5060_v15 = vld [vmem:[#allocation7 + $0xa8c] sm:$0xf0] }
  0xfe   :  { %2088 = vmatpush.bf16.msrb.mxu0 %v3809_v16  ;;  %v4951_v16 = vld [vmem:[#allocation7 + $0x72c] sm:$0xf]  ;;  %v5399_v63 = vpop.f32.mrf.mxu0 }
  0xff   :  { %2102 = vmatpush.bf16.msrb.mxu1 %v3937_v18  ;;  %v4110_v18 = vld [vmem:[#allocation7 + $0x738] sm:$0xf0]  ;;  %v5397_v46 = vpop.f32.mrf.mxu3 }
 0x100   :  { %2116 = vmatpush.bf16.msrb.mxu2 %v4065_v19  ;;  %v5393_v19 = vpop.f32.mrf.mxu1  ;;  %v4113_v50 = vor.u32 %v4951_v16, %v4110_v18  ;;  %v4276_v18 = vld [vmem:[#allocation7 + $0x880] sm:$0xf] }
 0x101   :  { %2130 = vmatpush.bf16.msrb.mxu3 %v4193_v31  ;;  %v3857_v31 = vor.u32 %v4887_v12, %v3854_v3  ;;  %v5064_v12 = vld [vmem:[#allocation7 + $0xaac] sm:$0xf0] }
 0x102   :  { %2089 = vmatpush.bf16.msrb.mxu0 %v3793_v37  ;;  %v3966_v37 = vld [vmem:[#allocation7 + $0x618] sm:$0xf0]  ;;  %v5096_v3 = vld [vmem:[#allocation7 + $0xbac] sm:$0xf0] }
 0x103   :  { %2103 = vmatpush.bf16.msrb.mxu1 %v3921_v6  ;;  %v4947_v6 = vld [vmem:[#allocation7 + $0x70c] sm:$0xf] }
 0x104   :  { %2117 = vmatpush.bf16.msrb.mxu2 %v4049_v38  ;;  %v4094_v38 = vld [vmem:[#allocation7 + $0x718] sm:$0xf0] }
 0x105   :  { %2131 = vmatpush.bf16.msrb.mxu3 %v4177_v40  ;;  %v5395_v40 = vpop.f32.mrf.mxu2  ;;  %v4097_v20 = vor.u32 %v4947_v6, %v4094_v38 }
 0x106   :  { %2090 = vmatpush.bf16.msrb.mxu0 %v3777_v47  ;;  %v3841_v47 = vor.u32 %v4883_v33, %v3838_v34  ;;  %v4532_v33 = vld [vmem:[#allocation7 + $0xa80] sm:$0xf] }
 0x107   :  { %2104 = vmatpush.bf16.msrb.mxu1 %v3905_v48  ;;  %v3969_v48 = vor.u32 %v4915_v36, %v3966_v37  ;;  %v5413_v16 = vpop.f32.mrf.mxu3  ;;  %v4660_v34 = vld [vmem:[#allocation7 + $0xb80] sm:$0xf]  ;;  %v5092_v36 = vld [vmem:[#allocation7 + $0xb8c] sm:$0xf0]  ;;  %v4533_v38 = vor.u32 %v5060_v15, %v4532_v33 }
 0x108   :  { %2118 = vmatpush.bf16.msrb.mxu2 %v4033_v49  ;;  %v4708_v49 = vld [vmem:[#allocation7 + $0xbe0] sm:$0xf]  ;;  %v4661_v43 = vor.u32 %v5092_v36, %v4660_v34  ;;  %v5012_v15 = vld [vmem:[#allocation7 + $0x90c] sm:$0xf0] }
 0x109   :  { %2132 = vmatpush.bf16.msrb.mxu3 %v4161_v53  ;;  %v4453_v53 = vor.u32 %v5040_v42, %v4452_v35  ;;  %v4709_v60 = vor.u32 %v5104_v51, %v4708_v49  ;;  %v4260_v35 = vld [vmem:[#allocation7 + $0x860] sm:$0xf] }
 0x10a   :  { %2091 = vmatpush.bf16.msrb.mxu0 %v3761_v29  ;;  %v5036_v29 = vld [vmem:[#allocation7 + $0x9cc] sm:$0xf0]  ;;  %v4388_v42 = vld [vmem:[#allocation7 + $0x960] sm:$0xf] }
 0x10b   :  { %2105 = vmatpush.bf16.msrb.mxu1 %v3889_v61  ;;  %v4564_v61 = vld [vmem:[#allocation7 + $0xac0] sm:$0xf]  ;;  %v4437_v5 = vor.u32 %v5036_v29, %v4436_v58 }
 0x10c   :  { %2119 = vmatpush.bf16.msrb.mxu2 %v4017_v62  ;;  %v5068_v62 = vld [vmem:[#allocation7 + $0xacc] sm:$0xf0]  ;;  %v4644_v51 = vld [vmem:[#allocation7 + $0xb60] sm:$0xf] }
 0x10d   :  { %2133 = vmatpush.bf16.msrb.mxu3 %v4145_v1  ;;  %v5401_v1 = vpop.f32.mrf.mxu1  ;;  %v4565_v7 = vor.u32 %v5068_v62, %v4564_v61  ;;  %v5407_v10 = vpop.f32.mrf.mxu2  ;;  %v4244_v58 = vld [vmem:[#allocation7 + $0x840] sm:$0xf] }
 0x10e   :  { %2092 = vmatpush.bf16.msrb.mxu0 %v3745_v8  ;;  %v5000_v8 = vld [vmem:[#allocation7 + $0x8ac] sm:$0xf0]  ;;  %v4372_v29 = vld [vmem:[#allocation7 + $0x940] sm:$0xf] }
 0x10f   :  { %2106 = vmatpush.bf16.msrb.mxu1 %v3873_v9  ;;  %v4420_v9 = vld [vmem:[#allocation7 + $0x9a0] sm:$0xf] }
 0x110   :  { %2120 = vmatpush.bf16.msrb.mxu2 %v4001_v45  ;;  %v4693_v45 = vor.u32 %v5100_v59, %v4692_v0  ;;  %v5020_v59 = vld [vmem:[#allocation7 + $0x94c] sm:$0xf0]  ;;  %v4340_v33 = vld [vmem:[#allocation7 + $0x900] sm:$0xf] }
 0x111   :  { %2134 = vmatpush.bf16.msrb.mxu3 %v4129_v13  ;;  %v4676_v13 = vld [vmem:[#allocation7 + $0xba0] sm:$0xf] }
 0x112   :  { %2093 = vmatpush.bf16.msrb.mxu0 %v3729_v21  ;;  %v4549_v21 = vor.u32 %v5064_v12, %v4548_v11 }
 0x113   :  { %2107 = vmatpush.bf16.msrb.mxu1 %v3857_v31  ;;  %v4677_v31 = vor.u32 %v5096_v3, %v4676_v13  ;;  %v4984_v13 = vld [vmem:[#allocation7 + $0x82c] sm:$0xf0]  ;;  %v4356_v3 = vld [vmem:[#allocation7 + $0x920] sm:$0xf] }
 0x114   :  { %2121 = vmatpush.bf16.msrb.mxu2 %v3985_v32  ;;  %v5028_v32 = vld [vmem:[#allocation7 + $0x98c] sm:$0xf0] }
 0x115   :  { %2135 = vmatpush.bf16.msrb.mxu3 %v4113_v50  ;;  %v4405_v6 = vor.u32 %v5028_v32, %v4404_v24  ;;  %v4212_v24 = vld [vmem:[#allocation7 + $0x800] sm:$0xf] }
 0x116   :  { %2094 = vmatpush.bf16.msrb.mxu0 %v3713_v41  ;;  %v1092_v37 = vpop.f32.mrf.mxu0  ;;  %v4992_v41 = vld [vmem:[#allocation7 + $0x86c] sm:$0xf0] }
 0x117   :  { %2108 = vmatpush.bf16.msrb.mxu1 %v3841_v47  ;;  %v1093_v23 = vadd.f32 %v1092_v37, %v270_v30  ;;  %v1106_v39 = vpop.f32.mrf.mxu1  ;;  %v4516_v47 = vld [vmem:[#allocation7 + $0xa60] sm:$0xf]  ;;  %v5044_v37 = vld [vmem:[#allocation7 + $0xa0c] sm:$0xf0] }
 0x118   :  { %2122 = vmatpush.bf16.msrb.mxu2 %v3969_v48  ;;  %v5056_v48 = vld [vmem:[#allocation7 + $0xa6c] sm:$0xf0] }
 0x119   :  { %2136 = vmatpush.bf16.msrb.mxu3 %v4097_v20  ;;  %2095 = vmatmul.bf16.vlgmr.msrb.gmra.mxu0 %v5335_v25  ;;  %v4421_v25 = vor.u32 %v5032_v27, %v4420_v9  ;;  %v1107_v49 = vadd.f32 %v1106_v39, %v1093_v23  ;;  %v4517_v56 = vor.u32 %v5056_v48, %v4516_v47  ;;  %v4228_v9 = vld [vmem:[#allocation7 + $0x820] sm:$0xf]  ;;  %v5076_v39 = vld [vmem:[#allocation7 + $0xb0c] sm:$0xf0] }
 0x11a   :  { %2923 = vmatpush.bf16.msra.mxu0 %v4325_v52  ;;  %2109 = vmatmul.bf16.vlgmr.msrb.gmra.mxu1 %v5339_v28  ;;  %v1051_v28 = vadd.f32 %v5393_v19, %v1037_v14  ;;  %v5088_v19 = vld [vmem:[#allocation7 + $0xb6c] sm:$0xf0]  ;;  %v1039_v52 = vadd.f32 %v5399_v63, %v269_v2 }
 0x11b   :  { %2937 = vmatpush.bf16.msra.mxu1 %v4453_v53  ;;  %2123 = vmatmul.bf16.vlgmr.msrb.gmra.mxu2 %v5333_v22  ;;  %v4293_v22 = vor.u32 %v5000_v8, %v4292_v17  ;;  %v4261_v53 = vor.u32 %v4992_v41, %v4260_v35  ;;  %v4645_v61 = vor.u32 %v5088_v19, %v4644_v51  ;;  %v5016_v14 = vld [vmem:[#allocation7 + $0x92c] sm:$0xf0]  ;;  %v5006_v35 = vld [vmem:[#allocation7 + $0x8e4] sm:$0xf]  ;;  %v4326_v41 = vld [vmem:[#allocation7 + $0x8f0] sm:$0xf0] }
 0x11c   :  { %2951 = vmatpush.bf16.msra.mxu2 %v4581_v54  ;;  %2137 = vmatmul.bf16.vlgmr.msrb.gmra.mxu3 %v5337_v26  ;;  %v4996_v26 = vld [vmem:[#allocation7 + $0x88c] sm:$0xf0]  ;;  %v1065_v20 = vadd.f32 %v5395_v40, %v1051_v28  ;;  %v4389_v54 = vor.u32 %v5024_v44, %v4388_v42  ;;  %v4500_v40 = vld [vmem:[#allocation7 + $0xa40] sm:$0xf]  ;;  %v1053_v2 = vadd.f32 %v5401_v1, %v1039_v52  ;;  %v5038_v42 = vld [vmem:[#allocation7 + $0x9e4] sm:$0xf] }
 0x11d   :  { %2965 = vmatpush.bf16.msra.mxu3 %v4709_v60  ;;  %v4277_v50 = vor.u32 %v4996_v26, %v4276_v18  ;;  %v4988_v60 = vld [vmem:[#allocation7 + $0x84c] sm:$0xf0]  ;;  %v4612_v1 = vld [vmem:[#allocation7 + $0xb20] sm:$0xf]  ;;  %v4357_v34 = vor.u32 %v5016_v14, %v4356_v3  ;;  %v5070_v44 = vld [vmem:[#allocation7 + $0xae4] sm:$0xf]  ;;  %v4341_v52 = vor.u32 %v5012_v15, %v4340_v33 }
 0x11e   :  { %2924 = vmatpush.bf16.msra.mxu0 %v4309_v4  ;;  %v1120_v57 = vpop.f32.mrf.mxu2  ;;  %v5052_v4 = vld [vmem:[#allocation7 + $0xa4c] sm:$0xf0]  ;;  %v1079_v63 = vadd.f32 %v5397_v46, %v1065_v20  ;;  %v4245_v17 = vor.u32 %v4988_v60, %v4244_v58  ;;  %v1094_v8 = vpop.f32.mrf.mxu0  ;;  %v4484_v46 = vld [vmem:[#allocation7 + $0xa20] sm:$0xf]  ;;  %v1067_v32 = vadd.f32 %v5407_v10, %v1053_v2  ;;  %v4582_v51 = vld [vmem:[#allocation7 + $0xaf0] sm:$0xf0] }
 0x11f   :  { %2938 = vmatpush.bf16.msra.mxu1 %v4437_v5  ;;  %v1121_v62 = vadd.f32 %v1120_v57, %v1107_v49  ;;  %v1134_v0 = vpop.f32.mrf.mxu3  ;;  %v5084_v5 = vld [vmem:[#allocation7 + $0xb4c] sm:$0xf0]  ;;  %v4501_v27 = vor.u32 %v5052_v4, %v4500_v40  ;;  %v1095_v11 = vadd.f32 %v1094_v8, %v270_v30  ;;  %v1108_v12 = vpop.f32.mrf.mxu1  ;;  %v4229_v30 = vor.u32 %v4984_v13, %v4228_v9  ;;  %v5102_v19 = vld [vmem:[#allocation7 + $0xbe4] sm:$0xf]  ;;  %v4710_v20 = vld [vmem:[#allocation7 + $0xbf0] sm:$0xf0] }
 0x120   :  { %2952 = vmatpush.bf16.msra.mxu2 %v4565_v7  ;;  %v4629_v18 = vor.u32 %v5084_v5, %v4628_v55  ;;  %v5080_v26 = vld [vmem:[#allocation7 + $0xb2c] sm:$0xf0]  ;;  %v1081_v47 = vadd.f32 %v5413_v16, %v1067_v32  ;;  %v125_v60 = vld [vmem:[#allocation6] sm:$0xff]  ;;  %v132_v40 = vld [vmem:[#allocation6 + $0x38] sm:$0xff]  ;;  %v4585_v55 = vor.u32 %v5070_v44, %v4582_v51 }
 0x121   :  { %2966 = vmatpush.bf16.msra.mxu3 %v4693_v45  ;;  %v1135_v7 = vadd.f32 %v1134_v0, %v1121_v62  ;;  %v4373_v45 = vor.u32 %v5020_v59, %v4372_v29  ;;  %v127_v57 = vld [vmem:[#allocation6 + $0x10] sm:$0xff]  ;;  %v4329_v62 = vor.u32 %v5006_v35, %v4326_v41  ;;  %v5034_v16 = vld [vmem:[#allocation7 + $0x9c4] sm:$0xf]  ;;  %v128_v59 = vld [vmem:[#allocation6 + $0x18] sm:$0xff] }
 0x122   :  { %2925 = vmatpush.bf16.msra.mxu0 %v4293_v22  ;;  %v131_v58 = vld [vmem:[#allocation6 + $0x30] sm:$0xff]  ;;  %v129_v0 = vld [vmem:[#allocation6 + $0x20] sm:$0xff]  ;;  %v130_v2 = vld [vmem:[#allocation6 + $0x28] sm:$0xff] }
 0x123   :  { %2939 = vmatpush.bf16.msra.mxu1 %v4421_v25  ;;  %v3148_v22 = vpack.c.bf16 %v1135_v7, %v1079_v63  ;;  %v5048_v25 = vld [vmem:[#allocation7 + $0xa2c] sm:$0xf0]  ;;  %v4438_v5 = vld [vmem:[#allocation7 + $0x9d0] sm:$0xf0]  ;;  %v126_v63 = vld [vmem:[#allocation6 + $0x8] sm:$0xff]  ;;  %v4713_v7 = vor.u32 %v5102_v19, %v4710_v20  ;;  %v5431_v9 = vpack.c.bf16 %v131_v58, %v127_v57 }
 0x124   :  { %2953 = vmatpush.bf16.msra.mxu2 %v4549_v21  ;;  %v1109_v21 = vadd.f32 %v1108_v12, %v1095_v11  ;;  %v4485_v36 = vor.u32 %v5048_v25, %v4484_v46  ;;  %v4566_v8 = vld [vmem:[#allocation7 + $0xad0] sm:$0xf0]  ;;  %v5433_v11 = vpack.c.bf16 %v129_v0, %v125_v60  ;;  %v5435_v12 = vpack.c.bf16 %v132_v40, %v128_v59  ;;  %v5030_v25 = vld [vmem:[#allocation7 + $0x9a4] sm:$0xf] }
 0x125   :  { %2967 = vmatpush.bf16.msra.mxu3 %v4677_v31  ;;  %v4980_v31 = vld [vmem:[#allocation7 + $0x80c] sm:$0xf0]  ;;  %3152 = vst [vmem:[%s5518_s5 + $0x8] sm:$0xff] %v3148_v22  ;;  %v5437_v3 = vpack.c.bf16 %v130_v2, %v126_v63  ;;  %v4441_v14 = vor.u32 %v5034_v16, %v4438_v5  ;;  %v4294_v46 = vld [vmem:[#allocation7 + $0x8b0] sm:$0xf0] }
 0x126   :  { %2926 = vmatpush.bf16.msra.mxu0 %v4277_v50  ;;  %v1122_v28 = vpop.f32.mrf.mxu2  ;;  %v4468_v50 = vld [vmem:[#allocation7 + $0xa00] sm:$0xf]  ;;  %v4213_v49 = vor.u32 %v4980_v31, %v4212_v24  ;;  %v4550_v24 = vld [vmem:[#allocation7 + $0xab0] sm:$0xf0]  ;;  %v5094_v31 = vld [vmem:[#allocation7 + $0xba4] sm:$0xf] }
 0x127   :  { %2940 = vmatpush.bf16.msra.mxu1 %v4405_v6  ;;  %v4596_v6 = vld [vmem:[#allocation7 + $0xb00] sm:$0xf]  ;;  %v1123_v23 = vadd.f32 %v1122_v28, %v1109_v21  ;;  %v1136_v10 = vpop.f32.mrf.mxu3  ;;  %v4422_v21 = vld [vmem:[#allocation7 + $0x9b0] sm:$0xf0]  ;;  %v5026_v28 = vld [vmem:[#allocation7 + $0x984] sm:$0xf] }
 0x128   :  { %2954 = vmatpush.bf16.msra.mxu2 %v4533_v38  ;;  %v4613_v38 = vor.u32 %v5080_v26, %v4612_v1  ;;  %v5062_v26 = vld [vmem:[#allocation7 + $0xaa4] sm:$0xf]  ;;  %v4678_v32 = vld [vmem:[#allocation7 + $0xbb0] sm:$0xf0]  ;;  %v4425_v33 = vor.u32 %v5030_v25, %v4422_v21 }
 0x129   :  { %2968 = vmatpush.bf16.msra.mxu3 %v4661_v43  ;;  %v4454_v43 = vld [vmem:[#allocation7 + $0x9f0] sm:$0xf0]  ;;  %v1137_v48 = vadd.f32 %v1136_v10, %v1123_v23  ;;  %v4553_v15 = vor.u32 %v5062_v26, %v4550_v24  ;;  %v5090_v23 = vld [vmem:[#allocation7 + $0xb84] sm:$0xf] }
 0x12a   :  { %2927 = vmatpush.bf16.msra.mxu0 %v4261_v53  ;;  %v4469_v53 = vor.u32 %v5044_v37, %v4468_v50  ;;  %v4457_v4 = vor.u32 %v5038_v42, %v4454_v43  ;;  %v4681_v50 = vor.u32 %v5094_v31, %v4678_v32  ;;  %v4406_v37 = vld [vmem:[#allocation7 + $0x990] sm:$0xf0]  ;;  %v4990_v42 = vld [vmem:[#allocation7 + $0x864] sm:$0xf] }
 0x12b   :  { %2941 = vmatpush.bf16.msra.mxu1 %v4389_v54  ;;  %v5002_v54 = vld [vmem:[#allocation7 + $0x8c4] sm:$0xf]  ;;  %v3150_v29 = vpack.c.bf16 %v1137_v48, %v1081_v47  ;;  %v4662_v10 = vld [vmem:[#allocation7 + $0xb90] sm:$0xf0]  ;;  %v4409_v35 = vor.u32 %v5026_v28, %v4406_v37  ;;  %v5041_v37 = vld [vmem:[#allocation7 + $0x9f4] sm:$0xf0] }
 0x12c   :  { %2955 = vmatpush.bf16.msra.mxu2 %v4517_v56  ;;  %v4310_v56 = vld [vmem:[#allocation7 + $0x8d0] sm:$0xf0]  ;;  %v5022_v44 = vld [vmem:[#allocation7 + $0x964] sm:$0xf]  ;;  %v4665_v47 = vor.u32 %v5090_v23, %v4662_v10 }
 0x12d   :  { %2969 = vmatpush.bf16.msra.mxu3 %v4645_v61  ;;  %v4597_v61 = vor.u32 %v5076_v39, %v4596_v6  ;;  %3154 = vst [vmem:[%s5518_s5 + $0x18] sm:$0xff] %v3150_v29  ;;  %v4313_v13 = vor.u32 %v5002_v54, %v4310_v56  ;;  %v5058_v6 = vld [vmem:[#allocation7 + $0xa84] sm:$0xf]  ;;  %v4262_v43 = vld [vmem:[#allocation7 + $0x870] sm:$0xf0] }
 0x12e   :  { %2928 = vmatpush.bf16.msra.mxu0 %v4245_v17  ;;  %v5066_v17 = vld [vmem:[#allocation7 + $0xac4] sm:$0xf]  ;;  %v4390_v48 = vld [vmem:[#allocation7 + $0x970] sm:$0xf0] }
 0x12f   :  { %2942 = vmatpush.bf16.msra.mxu1 %v4373_v45  ;;  %v5098_v45 = vld [vmem:[#allocation7 + $0xbc4] sm:$0xf]  ;;  %v4569_v22 = vor.u32 %v5066_v17, %v4566_v8  ;;  %v4518_v51 = vld [vmem:[#allocation7 + $0xa70] sm:$0xf0] }
 0x130   :  { %2956 = vmatpush.bf16.msra.mxu2 %v4501_v27  ;;  %v4694_v27 = vld [vmem:[#allocation7 + $0xbd0] sm:$0xf0]  ;;  %v5086_v19 = vld [vmem:[#allocation7 + $0xb64] sm:$0xf] }
 0x131   :  { %2970 = vmatpush.bf16.msra.mxu3 %v4629_v18  ;;  %v4998_v18 = vld [vmem:[#allocation7 + $0x8a4] sm:$0xf]  ;;  %v4697_v1 = vor.u32 %v5098_v45, %v4694_v27  ;;  %v4646_v20 = vld [vmem:[#allocation7 + $0xb70] sm:$0xf0] }
 0x132   :  { %2929 = vmatpush.bf16.msra.mxu0 %v4229_v30  ;;  %v4297_v30 = vor.u32 %v4998_v18, %v4294_v46  ;;  %v4986_v56 = vld [vmem:[#allocation7 + $0x844] sm:$0xf]  ;;  %v4246_v57 = vld [vmem:[#allocation7 + $0x850] sm:$0xf0]  ;;  %v4649_v60 = vor.u32 %v5086_v19, %v4646_v20  ;;  %v4444_v19 = vld [vmem:[#allocation7 + $0x9c8] sm:$0xf] }
 0x133   :  { %2943 = vmatpush.bf16.msra.mxu1 %v4357_v34  ;;  %v4994_v34 = vld [vmem:[#allocation7 + $0x884] sm:$0xf]  ;;  %v4374_v29 = vld [vmem:[#allocation7 + $0x950] sm:$0xf0]  ;;  %v4249_v59 = vor.u32 %v4986_v56, %v4246_v57  ;;  %v4700_v57 = vld [vmem:[#allocation7 + $0xbc8] sm:$0xf] }
 0x134   :  { %2957 = vmatpush.bf16.msra.mxu2 %v4485_v36  ;;  %v4278_v36 = vld [vmem:[#allocation7 + $0x890] sm:$0xf0]  ;;  %v5018_v58 = vld [vmem:[#allocation7 + $0x944] sm:$0xf] }
 0x135   :  { %2971 = vmatpush.bf16.msra.mxu3 %v4613_v38  ;;  %v4534_v38 = vld [vmem:[#allocation7 + $0xa90] sm:$0xf0]  ;;  %v4281_v39 = vor.u32 %v4994_v34, %v4278_v36  ;;  %v5082_v16 = vld [vmem:[#allocation7 + $0xb44] sm:$0xf]  ;;  %v4377_v40 = vor.u32 %v5018_v58, %v4374_v29  ;;  %v5009_v34 = vld [vmem:[#allocation7 + $0x8f4] sm:$0xf0] }
 0x136   :  { %2930 = vmatpush.bf16.msra.mxu0 %v4213_v49  ;;  %v4537_v41 = vor.u32 %v5058_v6, %v4534_v38  ;;  %v5054_v49 = vld [vmem:[#allocation7 + $0xa64] sm:$0xf]  ;;  %v4630_v0 = vld [vmem:[#allocation7 + $0xb50] sm:$0xf0]  ;;  %v5443_v45 = vpop.f32.mrf.mxu0  ;;  %v4460_v36 = vld [vmem:[#allocation7 + $0x9e8] sm:$0xf] }
 0x137   :  { %2944 = vmatpush.bf16.msra.mxu1 %v4341_v52  ;;  %v4265_v52 = vor.u32 %v4990_v42, %v4262_v43  ;;  %v4521_v54 = vor.u32 %v5054_v49, %v4518_v51  ;;  %v4230_v5 = vld [vmem:[#allocation7 + $0x830] sm:$0xf0]  ;;  %v5014_v63 = vld [vmem:[#allocation7 + $0x924] sm:$0xf]  ;;  %v4633_v2 = vor.u32 %v5082_v16, %v4630_v0  ;;  %v4588_v6 = vld [vmem:[#allocation7 + $0xae8] sm:$0xf] }
 0x138   :  { %2958 = vmatpush.bf16.msra.mxu2 %v4469_v53  ;;  %v4393_v53 = vor.u32 %v5022_v44, %v4390_v48  ;;  %v5046_v17 = vld [vmem:[#allocation7 + $0xa24] sm:$0xf]  ;;  %v4486_v8 = vld [vmem:[#allocation7 + $0xa30] sm:$0xf0]  ;;  %v5073_v38 = vld [vmem:[#allocation7 + $0xaf4] sm:$0xf0] }
 0x139   :  { %2972 = vmatpush.bf16.msra.mxu3 %v4597_v61  ;;  %2931 = vmatmul.bf16.vlgmr.msra.gmra.mxu0 %v5433_v11  ;;  %v5050_v61 = vld [vmem:[#allocation7 + $0xa44] sm:$0xf]  ;;  %v4214_v46 = vld [vmem:[#allocation7 + $0x810] sm:$0xf0]  ;;  %v4589_v48 = vor.u32 %v5073_v38, %v4588_v6  ;;  %v4316_v49 = vld [vmem:[#allocation7 + $0x8c8] sm:$0xf] }
 0x13a   :  { %2979 = vmatpush.bf16.msrb.mxu0 %v4329_v62  ;;  %2945 = vmatmul.bf16.vlgmr.msra.gmra.mxu1 %v5437_v3  ;;  %v4502_v62 = vld [vmem:[#allocation7 + $0xa50] sm:$0xf0]  ;;  %v5078_v27 = vld [vmem:[#allocation7 + $0xb24] sm:$0xf]  ;;  %v5005_v51 = vld [vmem:[#allocation7 + $0x8d4] sm:$0xf0] }
 0x13b   :  { %2993 = vmatpush.bf16.msrb.mxu1 %v4457_v4  ;;  %2959 = vmatmul.bf16.vlgmr.msra.gmra.mxu2 %v5431_v9  ;;  %v4505_v4 = vor.u32 %v5050_v61, %v4502_v62  ;;  %v4978_v18 = vld [vmem:[#allocation7 + $0x804] sm:$0xf]  ;;  %v4342_v26 = vld [vmem:[#allocation7 + $0x910] sm:$0xf0]  ;;  %v5101_v58 = vld [vmem:[#allocation7 + $0xbd4] sm:$0xf0]  ;;  %v4317_v61 = vor.u32 %v5005_v51, %v4316_v49 }
 0x13c   :  { %3007 = vmatpush.bf16.msrb.mxu2 %v4585_v55  ;;  %2973 = vmatmul.bf16.vlgmr.msra.gmra.mxu3 %v5435_v12  ;;  %v4982_v55 = vld [vmem:[#allocation7 + $0x824] sm:$0xf]  ;;  %v4470_v32 = vld [vmem:[#allocation7 + $0xa10] sm:$0xf0]  ;;  %v4300_v0 = vld [vmem:[#allocation7 + $0x8a8] sm:$0xf] }
 0x13d   :  { %3021 = vmatpush.bf16.msrb.mxu3 %v4713_v7  ;;  %v4358_v7 = vld [vmem:[#allocation7 + $0x930] sm:$0xf0]  ;;  %v5010_v21 = vld [vmem:[#allocation7 + $0x904] sm:$0xf]  ;;  %v4268_v38 = vld [vmem:[#allocation7 + $0x868] sm:$0xf] }
 0x13e   :  { %2980 = vmatpush.bf16.msrb.mxu0 %v4313_v13  ;;  %v4614_v13 = vld [vmem:[#allocation7 + $0xb30] sm:$0xf0]  ;;  %v4361_v25 = vor.u32 %v5014_v63, %v4358_v7  ;;  %v5042_v24 = vld [vmem:[#allocation7 + $0xa04] sm:$0xf]  ;;  %v5447_v28 = vpop.f32.mrf.mxu2  ;;  %v4345_v10 = vor.u32 %v5010_v21, %v4342_v26  ;;  %v5453_v56 = vpop.f32.mrf.mxu0  ;;  %v5065_v63 = vld [vmem:[#allocation7 + $0xab4] sm:$0xf0] }
 0x13f   :  { %2994 = vmatpush.bf16.msrb.mxu1 %v4441_v14  ;;  %v5445_v14 = vpop.f32.mrf.mxu1  ;;  %v4617_v31 = vor.u32 %v5078_v27, %v4614_v13  ;;  %v5449_v23 = vpop.f32.mrf.mxu3  ;;  %v5451_v42 = vld [vmem:[#allocation9 + $0x4] sm:$0xf]  ;;  %v5097_v7 = vld [vmem:[#allocation7 + $0xbb4] sm:$0xf0] }
 0x140   :  { %3008 = vmatpush.bf16.msrb.mxu2 %v4569_v22  ;;  %v4233_v22 = vor.u32 %v4982_v55, %v4230_v5  ;;  %v1271_v29 = vperm.slane %v5451_v42, 0  ;;  %v5033_v55 = vld [vmem:[#allocation7 + $0x9b4] sm:$0xf0]  ;;  %v4556_v5 = vld [vmem:[#allocation7 + $0xaa8] sm:$0xf]  ;;  %v1272_v21 = vperm.slane %v5451_v42, 1 }
 0x141   :  { %3022 = vmatpush.bf16.msrb.mxu3 %v4697_v1  ;;  %v4489_v1 = vor.u32 %v5046_v17, %v4486_v8 }
 0x142   :  { %2981 = vmatpush.bf16.msrb.mxu0 %v4297_v30  ;;  %v5074_v30 = vld [vmem:[#allocation7 + $0xb04] sm:$0xf]  ;;  %v1929_v8 = vadd.f32 %v5443_v45, %v1271_v29  ;;  %v5061_v45 = vld [vmem:[#allocation7 + $0xa94] sm:$0xf0]  ;;  %v1931_v51 = vadd.f32 %v5453_v56, %v1271_v29 }
 0x143   :  { %2995 = vmatpush.bf16.msrb.mxu1 %v4425_v33  ;;  %v4598_v33 = vld [vmem:[#allocation7 + $0xb10] sm:$0xf0] }
 0x144   :  { %3009 = vmatpush.bf16.msrb.mxu2 %v4553_v15  ;;  %v4332_v15 = vld [vmem:[#allocation7 + $0x8e8] sm:$0xf]  ;;  %v4601_v43 = vor.u32 %v5074_v30, %v4598_v33  ;;  %v5093_v30 = vld [vmem:[#allocation7 + $0xb94] sm:$0xf0]  ;;  %v1943_v33 = vadd.f32 %v5445_v14, %v1929_v8 }
 0x145   :  { %3023 = vmatpush.bf16.msrb.mxu3 %v4681_v50  ;;  %v4217_v50 = vor.u32 %v4978_v18, %v4214_v46  ;;  %v4333_v44 = vor.u32 %v5009_v34, %v4332_v15  ;;  %v4557_v46 = vor.u32 %v5065_v63, %v4556_v5  ;;  %v5089_v14 = vld [vmem:[#allocation7 + $0xb74] sm:$0xf0] }
 0x146   :  { %2982 = vmatpush.bf16.msrb.mxu0 %v4281_v39  ;;  %v4473_v39 = vor.u32 %v5042_v24, %v4470_v32  ;;  %v5461_v17 = vpop.f32.mrf.mxu2  ;;  %v5029_v24 = vld [vmem:[#allocation7 + $0x994] sm:$0xf0]  ;;  %v4668_v32 = vld [vmem:[#allocation7 + $0xb88] sm:$0xf]  ;;  %v1957_v49 = vadd.f32 %v5447_v28, %v1943_v33 }
 0x147   :  { %2996 = vmatpush.bf16.msrb.mxu1 %v4409_v35  ;;  %v4716_v35 = vld [vmem:[#allocation7 + $0xbe8] sm:$0xf]  ;;  %v5467_v13 = vpop.f32.mrf.mxu3  ;;  %v4981_v33 = vld [vmem:[#allocation7 + $0x814] sm:$0xf0] }
 0x148   :  { %3010 = vmatpush.bf16.msrb.mxu2 %v4537_v41  ;;  %v5105_v41 = vld [vmem:[#allocation7 + $0xbf4] sm:$0xf0]  ;;  %v4508_v28 = vld [vmem:[#allocation7 + $0xa48] sm:$0xf]  ;;  %v1971_v56 = vadd.f32 %v5449_v23, %v1957_v49 }
 0x149   :  { %3024 = vmatpush.bf16.msrb.mxu3 %v4665_v47  ;;  %v4461_v47 = vor.u32 %v5041_v37, %v4460_v36  ;;  %v4717_v20 = vor.u32 %v5105_v41, %v4716_v35  ;;  %v4669_v35 = vor.u32 %v5093_v30, %v4668_v32  ;;  %v5025_v41 = vld [vmem:[#allocation7 + $0x974] sm:$0xf0]  ;;  %v4492_v23 = vld [vmem:[#allocation7 + $0xa28] sm:$0xf] }
 0x14a   :  { %2983 = vmatpush.bf16.msrb.mxu0 %v4265_v52  ;;  %v5037_v52 = vld [vmem:[#allocation7 + $0x9d4] sm:$0xf0]  ;;  %v4220_v30 = vld [vmem:[#allocation7 + $0x808] sm:$0xf] }
 0x14b   :  { %2997 = vmatpush.bf16.msrb.mxu1 %v4393_v53  ;;  %v4572_v53 = vld [vmem:[#allocation7 + $0xac8] sm:$0xf]  ;;  %v4445_v62 = vor.u32 %v5037_v52, %v4444_v19  ;;  %v4221_v49 = vor.u32 %v4981_v33, %v4220_v30  ;;  %v4414_v33 = vld [vmem:[#allocation7 + $0x998] sm:$0xf0] }
 0x14c   :  { %3011 = vmatpush.bf16.msrb.mxu2 %v4521_v54  ;;  %v5069_v54 = vld [vmem:[#allocation7 + $0xad4] sm:$0xf0] }
 0x14d   :  { %3025 = vmatpush.bf16.msrb.mxu3 %v4649_v60  ;;  %v5455_v60 = vpop.f32.mrf.mxu1  ;;  %v4573_v16 = vor.u32 %v5069_v54, %v4572_v53  ;;  %v4252_v54 = vld [vmem:[#allocation7 + $0x848] sm:$0xf] }
 0x14e   :  { %2984 = vmatpush.bf16.msrb.mxu0 %v4249_v59  ;;  %v5001_v59 = vld [vmem:[#allocation7 + $0x8b4] sm:$0xf0]  ;;  %v1945_v29 = vadd.f32 %v5455_v60, %v1931_v51  ;;  %v4462_v51 = vld [vmem:[#allocation7 + $0x9f8] sm:$0xf0] }
 0x14f   :  { %2998 = vmatpush.bf16.msrb.mxu1 %v4377_v40  ;;  %v4428_v40 = vld [vmem:[#allocation7 + $0x9a8] sm:$0xf]  ;;  %v4301_v27 = vor.u32 %v5001_v59, %v4300_v0  ;;  %v5021_v0 = vld [vmem:[#allocation7 + $0x954] sm:$0xf0] }
 0x150   :  { %3012 = vmatpush.bf16.msrb.mxu2 %v4505_v4  ;;  %v4701_v4 = vor.u32 %v5101_v58, %v4700_v57  ;;  %v4429_v18 = vor.u32 %v5033_v55, %v4428_v40  ;;  %v4989_v57 = vld [vmem:[#allocation7 + $0x854] sm:$0xf0]  ;;  %v4380_v58 = vld [vmem:[#allocation7 + $0x948] sm:$0xf]  ;;  %v1959_v32 = vadd.f32 %v5461_v17, %v1945_v29  ;;  %v4574_v29 = vld [vmem:[#allocation7 + $0xad8] sm:$0xf0] }
 0x151   :  { %3026 = vmatpush.bf16.msrb.mxu3 %v4633_v2  ;;  %v4684_v2 = vld [vmem:[#allocation7 + $0xba8] sm:$0xf]  ;;  %v5053_v59 = vld [vmem:[#allocation7 + $0xa54] sm:$0xf0]  ;;  %v4253_v5 = vor.u32 %v4989_v57, %v4252_v54  ;;  %v5103_v54 = vld [vmem:[#allocation7 + $0xbec] sm:$0xf] }
 0x152   :  { %2985 = vmatpush.bf16.msrb.mxu0 %v4233_v22  ;;  %v4284_v22 = vld [vmem:[#allocation7 + $0x888] sm:$0xf]  ;;  %v4685_v26 = vor.u32 %v5097_v7, %v4684_v2  ;;  %v4381_v2 = vor.u32 %v5021_v0, %v4380_v58  ;;  %v4509_v7 = vor.u32 %v5053_v59, %v4508_v28  ;;  %v4718_v57 = vld [vmem:[#allocation7 + $0xbf8] sm:$0xf0]  ;;  %v5035_v59 = vld [vmem:[#allocation7 + $0x9cc] sm:$0xf] }
 0x153   :  { %2999 = vmatpush.bf16.msrb.mxu1 %v4361_v25  ;;  %v4997_v25 = vld [vmem:[#allocation7 + $0x894] sm:$0xf0]  ;;  %v4636_v40 = vld [vmem:[#allocation7 + $0xb48] sm:$0xf] }
 0x154   :  { %3013 = vmatpush.bf16.msrb.mxu2 %v4489_v1  ;;  %v4412_v1 = vld [vmem:[#allocation7 + $0x988] sm:$0xf]  ;;  %v4285_v15 = vor.u32 %v4997_v25, %v4284_v22 }
 0x155   :  { %3027 = vmatpush.bf16.msrb.mxu3 %v4617_v31  ;;  %v4540_v31 = vld [vmem:[#allocation7 + $0xa88] sm:$0xf]  ;;  %v4413_v36 = vor.u32 %v5029_v24, %v4412_v1  ;;  %v5049_v24 = vld [vmem:[#allocation7 + $0xa34] sm:$0xf0] }
 0x156   :  { %2986 = vmatpush.bf16.msrb.mxu0 %v4217_v50  ;;  %v1984_v34 = vpop.f32.mrf.mxu0  ;;  %v4541_v50 = vor.u32 %v5061_v45, %v4540_v31  ;;  %v4236_v22 = vld [vmem:[#allocation7 + $0x828] sm:$0xf]  ;;  %v5081_v45 = vld [vmem:[#allocation7 + $0xb34] sm:$0xf0] }
 0x157   :  { %3000 = vmatpush.bf16.msrb.mxu1 %v4345_v10  ;;  %v1985_v37 = vadd.f32 %v1984_v34, %v1272_v21  ;;  %v1998_v6 = vpop.f32.mrf.mxu1  ;;  %v4993_v10 = vld [vmem:[#allocation7 + $0x874] sm:$0xf0]  ;;  %v4620_v31 = vld [vmem:[#allocation7 + $0xb28] sm:$0xf]  ;;  %v4493_v34 = vor.u32 %v5049_v24, %v4492_v23  ;;  %v4686_v23 = vld [vmem:[#allocation7 + $0xbb8] sm:$0xf0] }
 0x158   :  { %3014 = vmatpush.bf16.msrb.mxu2 %v4473_v39  ;;  %v4396_v39 = vld [vmem:[#allocation7 + $0x968] sm:$0xf]  ;;  %v4269_v19 = vor.u32 %v4993_v10, %v4268_v38  ;;  %v4621_v38 = vor.u32 %v5081_v45, %v4620_v31  ;;  %v4995_v45 = vld [vmem:[#allocation7 + $0x88c] sm:$0xf] }
 0x159   :  { %3028 = vmatpush.bf16.msrb.mxu3 %v4601_v43  ;;  %2987 = vmatmul.bf16.vlgmr.msrb.gmra.mxu0 %v5433_v11  ;;  %v4524_v43 = vld [vmem:[#allocation7 + $0xa68] sm:$0xf] }
 0x15a   :  { %3035 = vmatpush.bf16.msra.mxu0 %v4333_v44  ;;  %3001 = vmatmul.bf16.vlgmr.msrb.gmra.mxu1 %v5437_v3  ;;  %v5057_v44 = vld [vmem:[#allocation7 + $0xa74] sm:$0xf0] }
 0x15b   :  { %3049 = vmatpush.bf16.msra.mxu1 %v4461_v47  ;;  %3015 = vmatmul.bf16.vlgmr.msrb.gmra.mxu2 %v5431_v9  ;;  %v1999_v47 = vadd.f32 %v1998_v6, %v1985_v37  ;;  %v4525_v52 = vor.u32 %v5057_v44, %v4524_v43  ;;  %v5013_v37 = vld [vmem:[#allocation7 + $0x914] sm:$0xf0]  ;;  %v4476_v6 = vld [vmem:[#allocation7 + $0xa08] sm:$0xf]  ;;  %v5007_v43 = vld [vmem:[#allocation7 + $0x8ec] sm:$0xf] }
 0x15c   :  { %3063 = vmatpush.bf16.msra.mxu2 %v4589_v48  ;;  %3029 = vmatmul.bf16.vlgmr.msrb.gmra.mxu3 %v5435_v12  ;;  %v4652_v48 = vld [vmem:[#allocation7 + $0xb68] sm:$0xf]  ;;  %v4334_v44 = vld [vmem:[#allocation7 + $0x8f8] sm:$0xf0] }
 0x15d   :  { %3077 = vmatpush.bf16.msra.mxu3 %v4717_v20  ;;  %v4397_v20 = vor.u32 %v5025_v41, %v4396_v39  ;;  %v5045_v39 = vld [vmem:[#allocation7 + $0xa14] sm:$0xf0] }
 0x15e   :  { %3036 = vmatpush.bf16.msra.mxu0 %v4317_v61  ;;  %v2012_v53 = vpop.f32.mrf.mxu2  ;;  %v4653_v61 = vor.u32 %v5089_v14, %v4652_v48  ;;  %v1986_v63 = vpop.f32.mrf.mxu0  ;;  %v5077_v41 = vld [vmem:[#allocation7 + $0xb14] sm:$0xf0]  ;;  %v1973_v48 = vadd.f32 %v5467_v13, %v1959_v32  ;;  %v4318_v13 = vld [vmem:[#allocation7 + $0x8d8] sm:$0xf0] }
 0x15f   :  { %3050 = vmatpush.bf16.msra.mxu1 %v4445_v62  ;;  %v2013_v62 = vadd.f32 %v2012_v53, %v1999_v47  ;;  %v1987_v8 = vadd.f32 %v1986_v63, %v1272_v21  ;;  %v5039_v47 = vld [vmem:[#allocation7 + $0x9ec] sm:$0xf]  ;;  %v4477_v53 = vor.u32 %v5045_v39, %v4476_v6  ;;  %v4286_v32 = vld [vmem:[#allocation7 + $0x898] sm:$0xf0] }
 0x160   :  { %3064 = vmatpush.bf16.msra.mxu2 %v4573_v16  ;;  %v2026_v16 = vpop.f32.mrf.mxu3  ;;  %v4465_v0 = vor.u32 %v5039_v47, %v4462_v51  ;;  %v5023_v39 = vld [vmem:[#allocation7 + $0x96c] sm:$0xf] }
 0x161   :  { %3078 = vmatpush.bf16.msra.mxu3 %v4701_v4  ;;  %v5085_v4 = vld [vmem:[#allocation7 + $0xb54] sm:$0xf0]  ;;  %v2027_v55 = vadd.f32 %v2026_v16, %v2013_v62  ;;  %v4337_v62 = vor.u32 %v5007_v43, %v4334_v44  ;;  %v5003_v16 = vld [vmem:[#allocation7 + $0x8cc] sm:$0xf]  ;;  %v4526_v44 = vld [vmem:[#allocation7 + $0xa78] sm:$0xf0] }
 0x162   :  { %3037 = vmatpush.bf16.msra.mxu0 %v4301_v27  ;;  %v2000_v27 = vpop.f32.mrf.mxu1  ;;  %v4637_v1 = vor.u32 %v5085_v4, %v4636_v40  ;;  %v4446_v40 = vld [vmem:[#allocation7 + $0x9d8] sm:$0xf0]  ;;  %v4721_v4 = vor.u32 %v5103_v54, %v4718_v57  ;;  %v4321_v63 = vor.u32 %v5003_v16, %v4318_v13  ;;  %v5055_v43 = vld [vmem:[#allocation7 + $0xa6c] sm:$0xf] }
 0x163   :  { %3051 = vmatpush.bf16.msra.mxu1 %v4429_v18  ;;  %v4985_v18 = vld [vmem:[#allocation7 + $0x834] sm:$0xf0]  ;;  %v3155_v25 = vpack.c.bf16 %v2027_v55, %v1971_v56  ;;  %v2001_v60 = vadd.f32 %v2000_v27, %v1987_v8  ;;  %v5067_v56 = vld [vmem:[#allocation7 + $0xacc] sm:$0xf]  ;;  %v4302_v27 = vld [vmem:[#allocation7 + $0x8b8] sm:$0xf0]  ;;  %v4529_v51 = vor.u32 %v5055_v43, %v4526_v44 }
 0x164   :  { %3065 = vmatpush.bf16.msra.mxu2 %v4557_v46  ;;  %v4364_v46 = vld [vmem:[#allocation7 + $0x928] sm:$0xf]  ;;  %v4237_v21 = vor.u32 %v4985_v18, %v4236_v22  ;;  %v5099_v55 = vld [vmem:[#allocation7 + $0xbcc] sm:$0xf]  ;;  %v4382_v54 = vld [vmem:[#allocation7 + $0x958] sm:$0xf0] }
 0x165   :  { %3079 = vmatpush.bf16.msra.mxu3 %v4685_v26  ;;  %v5017_v26 = vld [vmem:[#allocation7 + $0x934] sm:$0xf0]  ;;  %3159 = vst [vmem:[%s5519_s6] sm:$0xff] %v3155_v25  ;;  %v4999_v8 = vld [vmem:[#allocation7 + $0x8ac] sm:$0xf] }
 0x166   :  { %3038 = vmatpush.bf16.msra.mxu0 %v4285_v15  ;;  %v4365_v15 = vor.u32 %v5017_v26, %v4364_v46  ;;  %v5031_v22 = vld [vmem:[#allocation7 + $0x9ac] sm:$0xf]  ;;  %v4430_v46 = vld [vmem:[#allocation7 + $0x9b8] sm:$0xf0]  ;;  %v4305_v24 = vor.u32 %v4999_v8, %v4302_v27 }
 0x167   :  { %3052 = vmatpush.bf16.msra.mxu1 %v4413_v36  ;;  %v2014_v36 = vpop.f32.mrf.mxu2  ;;  %v5063_v25 = vld [vmem:[#allocation7 + $0xaac] sm:$0xf] }
 0x168   :  { %3066 = vmatpush.bf16.msra.mxu2 %v4541_v50  ;;  %v4348_v50 = vld [vmem:[#allocation7 + $0x908] sm:$0xf]  ;;  %v2015_v10 = vadd.f32 %v2014_v36, %v2001_v60  ;;  %v2028_v17 = vpop.f32.mrf.mxu3  ;;  %v5095_v26 = vld [vmem:[#allocation7 + $0xbac] sm:$0xf]  ;;  %v4433_v60 = vor.u32 %v5031_v22, %v4430_v46  ;;  %v4222_v46 = vld [vmem:[#allocation7 + $0x818] sm:$0xf0] }
 0x169   :  { %3080 = vmatpush.bf16.msra.mxu3 %v4669_v35  ;;  %v4604_v35 = vld [vmem:[#allocation7 + $0xb08] sm:$0xf]  ;;  %v4689_v30 = vor.u32 %v5095_v26, %v4686_v23  ;;  %v5091_v36 = vld [vmem:[#allocation7 + $0xb8c] sm:$0xf]  ;;  %v4350_v26 = vld [vmem:[#allocation7 + $0x918] sm:$0xf0] }
 0x16a   :  { %3039 = vmatpush.bf16.msra.mxu0 %v4269_v19  ;;  %v2029_v14 = vadd.f32 %v2028_v17, %v2015_v10  ;;  %v5071_v19 = vld [vmem:[#allocation7 + $0xaec] sm:$0xf]  ;;  %v4270_v17 = vld [vmem:[#allocation7 + $0x878] sm:$0xf0] }
 0x16b   :  { %3053 = vmatpush.bf16.msra.mxu1 %v4397_v20  ;;  %v4590_v20 = vld [vmem:[#allocation7 + $0xaf8] sm:$0xf0]  ;;  %v4991_v10 = vld [vmem:[#allocation7 + $0x86c] sm:$0xf] }
 0x16c   :  { %3067 = vmatpush.bf16.msra.mxu2 %v4525_v52  ;;  %v4349_v52 = vor.u32 %v5013_v37, %v4348_v50  ;;  %v3157_v58 = vpack.c.bf16 %v2029_v14, %v1973_v48  ;;  %v4593_v28 = vor.u32 %v5071_v19, %v4590_v20  ;;  %v4670_v50 = vld [vmem:[#allocation7 + $0xb98] sm:$0xf0]  ;;  %v4289_v37 = vor.u32 %v4995_v45, %v4286_v32  ;;  %v5087_v47 = vld [vmem:[#allocation7 + $0xb6c] sm:$0xf] }
 0x16d   :  { %3081 = vmatpush.bf16.msra.mxu3 %v4653_v61  ;;  %v4605_v61 = vor.u32 %v5077_v41, %v4604_v35  ;;  %v4673_v35 = vor.u32 %v5091_v36, %v4670_v50  ;;  %v4398_v41 = vld [vmem:[#allocation7 + $0x978] sm:$0xf0]  ;;  %v4273_v14 = vor.u32 %v4991_v10, %v4270_v17  ;;  %v4987_v19 = vld [vmem:[#allocation7 + $0x84c] sm:$0xf]  ;;  %v1273_v50 = vperm.slane %v5451_v42, 2 }
 0x16e   :  { %3040 = vmatpush.bf16.msra.mxu0 %v4253_v5  ;;  %3161 = vst [vmem:[%s5519_s6 + $0x10] sm:$0xff] %v3157_v58  ;;  %v4702_v5 = vld [vmem:[#allocation7 + $0xbd8] sm:$0xf0]  ;;  %v5051_v57 = vld [vmem:[#allocation7 + $0xa4c] sm:$0xf]  ;;  %v1274_v10 = vperm.slane %v5451_v42, 3 }
 0x16f   :  { %3054 = vmatpush.bf16.msra.mxu1 %v4381_v2  ;;  %v4449_v2 = vor.u32 %v5035_v59, %v4446_v40  ;;  %v4705_v18 = vor.u32 %v5099_v55, %v4702_v5  ;;  %v4654_v48 = vld [vmem:[#allocation7 + $0xb78] sm:$0xf0]  ;;  %v4983_v13 = vld [vmem:[#allocation7 + $0x82c] sm:$0xf] }
 0x170   :  { %3068 = vmatpush.bf16.msra.mxu2 %v4509_v7  ;;  %v4577_v7 = vor.u32 %v5067_v56, %v4574_v29  ;;  %v4254_v20 = vld [vmem:[#allocation7 + $0x858] sm:$0xf0]  ;;  %v5015_v40 = vld [vmem:[#allocation7 + $0x92c] sm:$0xf] }
 0x171   :  { %3082 = vmatpush.bf16.msra.mxu3 %v4637_v1  ;;  %v4558_v1 = vld [vmem:[#allocation7 + $0xab8] sm:$0xf0]  ;;  %v4257_v16 = vor.u32 %v4987_v19, %v4254_v20  ;;  %v5047_v29 = vld [vmem:[#allocation7 + $0xa2c] sm:$0xf] }
 0x172   :  { %3041 = vmatpush.bf16.msra.mxu0 %v4237_v21  ;;  %v4561_v31 = vor.u32 %v5063_v25, %v4558_v1  ;;  %v5027_v21 = vld [vmem:[#allocation7 + $0x98c] sm:$0xf]  ;;  %v4510_v58 = vld [vmem:[#allocation7 + $0xa58] sm:$0xf0] }
 0x173   :  { %3055 = vmatpush.bf16.msra.mxu1 %v4365_v15  ;;  %v5059_v15 = vld [vmem:[#allocation7 + $0xa8c] sm:$0xf]  ;;  %v4417_v6 = vor.u32 %v5027_v21, %v4414_v33  ;;  %v4238_v59 = vld [vmem:[#allocation7 + $0x838] sm:$0xf0] }
 0x174   :  { %3069 = vmatpush.bf16.msra.mxu2 %v4493_v34  ;;  %v4542_v34 = vld [vmem:[#allocation7 + $0xa98] sm:$0xf0]  ;;  %v4241_v8 = vor.u32 %v4983_v13, %v4238_v59  ;;  %v5011_v25 = vld [vmem:[#allocation7 + $0x90c] sm:$0xf]  ;;  %v2273_v59 = vld [vmem:[#allocation9 + $0x8] sm:$0xf] }
 0x175   :  { %3083 = vmatpush.bf16.msra.mxu3 %v4621_v38  ;;  %v4545_v38 = vor.u32 %v5059_v15, %v4542_v34  ;;  %v4366_v56 = vld [vmem:[#allocation7 + $0x938] sm:$0xf0]  ;;  %v5043_v23 = vld [vmem:[#allocation7 + $0xa0c] sm:$0xf] }
 0x176   :  { %3042 = vmatpush.bf16.msra.mxu0 %v4221_v49  ;;  %v4401_v49 = vor.u32 %v5023_v39, %v4398_v41  ;;  %v4494_v55 = vld [vmem:[#allocation7 + $0xa38] sm:$0xf0]  ;;  %v2040_v5 = vpop.f32.mrf.mxu0  ;;  %v4369_v27 = vor.u32 %v5015_v40, %v4366_v56  ;;  %v2275_v56 = vperm.slane %v2273_v59, 0 }
 0x177   :  { %3056 = vmatpush.bf16.msra.mxu1 %v4349_v52  ;;  %v5019_v52 = vld [vmem:[#allocation7 + $0x94c] sm:$0xf]  ;;  %v4497_v22 = vor.u32 %v5047_v29, %v4494_v55 }
 0x178   :  { %3070 = vmatpush.bf16.msra.mxu2 %v4477_v53  ;;  %v4657_v53 = vor.u32 %v5087_v47, %v4654_v48 }
 0x179   :  { %3084 = vmatpush.bf16.msra.mxu3 %v4605_v61  ;;  %3043 = vmatmul.bf16.vlgmr.msra.gmra.mxu0 %v5433_v11  ;;  %v5083_v61 = vld [vmem:[#allocation7 + $0xb4c] sm:$0xf] }
 0x17a   :  { %3091 = vmatpush.bf16.msrb.mxu0 %v4337_v62  ;;  %3057 = vmatmul.bf16.vlgmr.msra.gmra.mxu1 %v5437_v3  ;;  %v4638_v62 = vld [vmem:[#allocation7 + $0xb58] sm:$0xf0] }
 0x17b   :  { %3105 = vmatpush.bf16.msrb.mxu1 %v4465_v0  ;;  %3071 = vmatmul.bf16.vlgmr.msra.gmra.mxu2 %v5431_v9  ;;  %v4385_v0 = vor.u32 %v5019_v52, %v4382_v54 }
 0x17c   :  { %3119 = vmatpush.bf16.msrb.mxu2 %v4593_v28  ;;  %3085 = vmatmul.bf16.vlgmr.msra.gmra.mxu3 %v5435_v12  ;;  %v4513_v28 = vor.u32 %v5051_v57, %v4510_v58 }
 0x17d   :  { %3133 = vmatpush.bf16.msrb.mxu3 %v4721_v4  ;;  %v4641_v4 = vor.u32 %v5083_v61, %v4638_v62 }
 0x17e   :  { %3092 = vmatpush.bf16.msrb.mxu0 %v4321_v63  ;;  %v5079_v63 = vld [vmem:[#allocation7 + $0xb2c] sm:$0xf]  ;;  %v2068_v45 = vpop.f32.mrf.mxu2  ;;  %v2042_v34 = vpop.f32.mrf.mxu0 }
 0x17f   :  { %3106 = vmatpush.bf16.msrb.mxu1 %v4449_v2  ;;  %v4622_v2 = vld [vmem:[#allocation7 + $0xb38] sm:$0xf0]  ;;  %v2082_v21 = vpop.f32.mrf.mxu3  ;;  %v2043_v47 = vadd.f32 %v2042_v34, %v1273_v50 }
 0x180   :  { %3120 = vmatpush.bf16.msrb.mxu2 %v4577_v7  ;;  %v2054_v7 = vpop.f32.mrf.mxu1  ;;  %v4625_v1 = vor.u32 %v5079_v63, %v4622_v2  ;;  %v2276_v63 = vperm.slane %v2273_v59, 1 }
 0x181   :  { %3134 = vmatpush.bf16.msrb.mxu3 %v4705_v18  ;;  %v4979_v18 = vld [vmem:[#allocation7 + $0x80c] sm:$0xf] }
 0x182   :  { %3093 = vmatpush.bf16.msrb.mxu0 %v4305_v24  ;;  %v4478_v24 = vld [vmem:[#allocation7 + $0xa18] sm:$0xf0]  ;;  %v4225_v32 = vor.u32 %v4979_v18, %v4222_v46 }
 0x183   :  { %3107 = vmatpush.bf16.msrb.mxu1 %v4433_v60  ;;  %v5075_v60 = vld [vmem:[#allocation7 + $0xb0c] sm:$0xf]  ;;  %v4481_v33 = vor.u32 %v5043_v23, %v4478_v24 }
 0x184   :  { %3121 = vmatpush.bf16.msrb.mxu2 %v4561_v31  ;;  %v4606_v31 = vld [vmem:[#allocation7 + $0xb18] sm:$0xf0] }
 0x185   :  { %3135 = vmatpush.bf16.msrb.mxu3 %v4689_v30  ;;  %v4353_v30 = vor.u32 %v5011_v25, %v4350_v26  ;;  %v4609_v15 = vor.u32 %v5075_v60, %v4606_v31 }
 0x186   :  { %3094 = vmatpush.bf16.msrb.mxu0 %v4289_v37  ;;  %v2070_v37 = vpop.f32.mrf.mxu2 }
 0x187   :  { %3108 = vmatpush.bf16.msrb.mxu1 %v4417_v6  ;;  %v2041_v6 = vadd.f32 %v2040_v5, %v1273_v50 }
 0x188   :  { %3122 = vmatpush.bf16.msrb.mxu2 %v4545_v38  ;;  %v2056_v36 = vpop.f32.mrf.mxu1  ;;  %v2084_v38 = vpop.f32.mrf.mxu3 }
 0x189   :  { %3136 = vmatpush.bf16.msrb.mxu3 %v4673_v35  ;;  %v2055_v17 = vadd.f32 %v2054_v7, %v2041_v6 }
 0x18a   :  { %3095 = vmatpush.bf16.msrb.mxu0 %v4273_v14 }
 0x18b   :  { %3109 = vmatpush.bf16.msrb.mxu1 %v4401_v49  ;;  %v2069_v44 = vadd.f32 %v2068_v45, %v2055_v17  ;;  %v2057_v49 = vadd.f32 %v2056_v36, %v2043_v47 }
 0x18c   :  { %3123 = vmatpush.bf16.msrb.mxu2 %v4529_v51 }
 0x18d   :  { %3137 = vmatpush.bf16.msrb.mxu3 %v4657_v53  ;;  %v2071_v53 = vadd.f32 %v2070_v37, %v2057_v49 }
 0x18e   :  { %3096 = vmatpush.bf16.msrb.mxu0 %v4257_v16 }
 0x18f   :  { %3110 = vmatpush.bf16.msrb.mxu1 %v4385_v0  ;;  %v2085_v58 = vadd.f32 %v2084_v38, %v2071_v53 }
 0x190   :  { %3124 = vmatpush.bf16.msrb.mxu2 %v4513_v28 }
 0x191   :  { %3138 = vmatpush.bf16.msrb.mxu3 %v4641_v4 }
 0x192   :  { %3097 = vmatpush.bf16.msrb.mxu0 %v4241_v8 }
 0x193   :  { %3111 = vmatpush.bf16.msrb.mxu1 %v4369_v27 }
 0x194   :  { %3125 = vmatpush.bf16.msrb.mxu2 %v4497_v22 }
 0x195   :  { %3139 = vmatpush.bf16.msrb.mxu3 %v4625_v1 }
 0x196   :  { %3098 = vmatpush.bf16.msrb.mxu0 %v4225_v32  ;;  %v2096_v39 = vpop.f32.mrf.mxu0 }
 0x197   :  { %3112 = vmatpush.bf16.msrb.mxu1 %v4353_v30  ;;  %v2097_v35 = vadd.f32 %v2096_v39, %v1274_v10  ;;  %v2110_v41 = vpop.f32.mrf.mxu1 }
 0x198   :  { %3126 = vmatpush.bf16.msrb.mxu2 %v4481_v33 }
 0x199   :  { %3140 = vmatpush.bf16.msrb.mxu3 %v4609_v15  ;;  %3099 = vmatmul.bf16.vlgmr.msrb.gmra.mxu0 %v5433_v11  ;;  %v2111_v43 = vadd.f32 %v2110_v41, %v2097_v35  ;;  %v2277_v41 = vperm.slane %v2273_v59, 2 }
 0x19a   :  { %3113 = vmatmul.bf16.vlgmr.msrb.gmra.mxu1 %v5437_v3  ;;  %v2083_v3 = vadd.f32 %v2082_v21, %v2069_v44  ;;  %v2278_v44 = vperm.slane %v2273_v59, 3 }
 0x19b   :  { %3127 = vmatmul.bf16.vlgmr.msrb.gmra.mxu2 %v5431_v9 }
 0x19c   :  { %3141 = vmatmul.bf16.vlgmr.msrb.gmra.mxu3 %v5435_v12 }
 0x19e   :  { %v2124_v48 = vpop.f32.mrf.mxu2  ;;  %v2098_v51 = vpop.f32.mrf.mxu0 }
 0x19f   :  { %v2125_v11 = vadd.f32 %v2124_v48, %v2111_v43  ;;  %v2138_v14 = vpop.f32.mrf.mxu3  ;;  %v2099_v12 = vadd.f32 %v2098_v51, %v1274_v10  ;;  %v2112_v19 = vpop.f32.mrf.mxu1 }
 0x1a1   :  { %v2139_v9 = vadd.f32 %v2138_v14, %v2125_v11  ;;  %v2113_v52 = vadd.f32 %v2112_v19, %v2099_v12 }
 0x1a3   :  { %v3156_v20 = vpack.c.bf16 %v2139_v9, %v2083_v3 }
 0x1a5   :  { %3160 = vst [vmem:[%s5519_s6 + $0x8] sm:$0xff] %v3156_v20 }
 0x1a6   :  { %v2126_v42 = vpop.f32.mrf.mxu2 }
 0x1a7   :  { %v2127_v54 = vadd.f32 %v2126_v42, %v2113_v52  ;;  %v2140_v57 = vpop.f32.mrf.mxu3 }
 0x1a9   :  { %v2141_v61 = vadd.f32 %v2140_v57, %v2127_v54 }
 0x1ab   :  { %v3158_v62 = vpack.c.bf16 %v2141_v61, %v2085_v58 }
 0x1ad   :  { %3162 = vst [vmem:[%s5519_s6 + $0x18] sm:$0xff] %v3158_v62 }
 0x1b6   :  { %v2932_v16 = vpop.f32.mrf.mxu0 }
 0x1b7   :  { %v2946_v0 = vpop.f32.mrf.mxu1  ;;  %v2933_v55 = vadd.f32 %v2932_v16, %v2275_v56 }
 0x1b9   :  { %v2947_v2 = vadd.f32 %v2946_v0, %v2933_v55 }
 0x1be   :  { %v2960_v28 = vpop.f32.mrf.mxu2  ;;  %v2934_v40 = vpop.f32.mrf.mxu0 }
 0x1bf   :  { %v2974_v13 = vpop.f32.mrf.mxu3  ;;  %v2948_v4 = vpop.f32.mrf.mxu1  ;;  %v2961_v18 = vadd.f32 %v2960_v28, %v2947_v2  ;;  %v2935_v46 = vadd.f32 %v2934_v40, %v2275_v56 }
 0x1c1   :  { %v2975_v23 = vadd.f32 %v2974_v13, %v2961_v18  ;;  %v2949_v24 = vadd.f32 %v2948_v4, %v2935_v46 }
 0x1c6   :  { %v2962_v29 = vpop.f32.mrf.mxu2 }
 0x1c7   :  { %v2976_v5 = vpop.f32.mrf.mxu3  ;;  %v2963_v33 = vadd.f32 %v2962_v29, %v2949_v24 }
 0x1c9   :  { %v2977_v50 = vadd.f32 %v2976_v5, %v2963_v33 }
 0x1d6   :  { %v2988_v7 = vpop.f32.mrf.mxu0 }
 0x1d7   :  { %v2989_v8 = vadd.f32 %v2988_v7, %v2276_v63  ;;  %v3002_v27 = vpop.f32.mrf.mxu1 }
 0x1d9   :  { %v3003_v22 = vadd.f32 %v3002_v27, %v2989_v8 }
 0x1de   :  { %v3016_v25 = vpop.f32.mrf.mxu2  ;;  %v2990_v31 = vpop.f32.mrf.mxu0 }
 0x1df   :  { %v3017_v1 = vadd.f32 %v3016_v25, %v3003_v22  ;;  %v3030_v26 = vpop.f32.mrf.mxu3  ;;  %v2991_v45 = vadd.f32 %v2990_v31, %v2276_v63  ;;  %v3004_v32 = vpop.f32.mrf.mxu1 }
 0x1e1   :  { %v3031_v60 = vadd.f32 %v3030_v26, %v3017_v1  ;;  %v3005_v30 = vadd.f32 %v3004_v32, %v2991_v45 }
 0x1e3   :  { %v3163_v21 = vpack.c.bf16 %v3031_v60, %v2975_v23 }
 0x1e5   :  { %3167 = vst [vmem:[%s5520_s7] sm:$0xff] %v3163_v21 }
 0x1e6   :  { %v3018_v15 = vpop.f32.mrf.mxu2 }
 0x1e7   :  { %v3019_v34 = vadd.f32 %v3018_v15, %v3005_v30  ;;  %v3032_v36 = vpop.f32.mrf.mxu3 }
 0x1e9   :  { %v3033_v37 = vadd.f32 %v3032_v36, %v3019_v34 }
 0x1eb   :  { %v3165_v6 = vpack.c.bf16 %v3033_v37, %v2977_v50 }
 0x1ed   :  { %3169 = vst [vmem:[%s5520_s7 + $0x10] sm:$0xff] %v3165_v6 }
 0x1f6   :  { %v3044_v38 = vpop.f32.mrf.mxu0 }
 0x1f7   :  { %v3058_v10 = vpop.f32.mrf.mxu1  ;;  %v3045_v47 = vadd.f32 %v3044_v38, %v2277_v41 }
 0x1f9   :  { %v3059_v49 = vadd.f32 %v3058_v10, %v3045_v47 }
 0x1fe   :  { %v3072_v17 = vpop.f32.mrf.mxu2  ;;  %v3046_v35 = vpop.f32.mrf.mxu0 }
 0x1ff   :  { %v3086_v39 = vpop.f32.mrf.mxu3  ;;  %v3060_v43 = vpop.f32.mrf.mxu1  ;;  %v3073_v12 = vadd.f32 %v3072_v17, %v3059_v49  ;;  %v3047_v19 = vadd.f32 %v3046_v35, %v2277_v41 }
 0x201   :  { %v3087_v54 = vadd.f32 %v3086_v39, %v3073_v12  ;;  %v3061_v57 = vadd.f32 %v3060_v43, %v3047_v19 }
 0x206   :  { %v3074_v48 = vpop.f32.mrf.mxu2 }
 0x207   :  { %v3088_v11 = vpop.f32.mrf.mxu3  ;;  %v3075_v0 = vadd.f32 %v3074_v48, %v3061_v57 }
 0x209   :  { %v3089_v4 = vadd.f32 %v3088_v11, %v3075_v0 }
 0x216   :  { %v3100_v14 = vpop.f32.mrf.mxu0 }
 0x217   :  { %v3101_v3 = vadd.f32 %v3100_v14, %v2278_v44  ;;  %v3114_v9 = vpop.f32.mrf.mxu1 }
 0x219   :  { %v3115_v51 = vadd.f32 %v3114_v9, %v3101_v3 }
 0x21e   :  { %v3128_v20 = vpop.f32.mrf.mxu2  ;;  %v3102_v42 = vpop.f32.mrf.mxu0 }
 0x21f   :  { %v3129_v52 = vadd.f32 %v3128_v20, %v3115_v51  ;;  %v3142_v53 = vpop.f32.mrf.mxu3  ;;  %v3103_v61 = vadd.f32 %v3102_v42, %v2278_v44  ;;  %v3116_v16 = vpop.f32.mrf.mxu1 }
 0x221   :  { %v3143_v58 = vadd.f32 %v3142_v53, %v3129_v52  ;;  %v3117_v28 = vadd.f32 %v3116_v16, %v3103_v61 }
 0x223   :  { %v3164_v62 = vpack.c.bf16 %v3143_v58, %v3087_v54 }
 0x225   :  { %3168 = vst [vmem:[%s5520_s7 + $0x8] sm:$0xff] %v3164_v62 }
 0x226   :  { %v3130_v13 = vpop.f32.mrf.mxu2 }
 0x227   :  { %v3131_v59 = vadd.f32 %v3130_v13, %v3117_v28  ;;  %v3144_v40 = vpop.f32.mrf.mxu3 }
 0x229   :  { %v3145_v56 = vadd.f32 %v3144_v40, %v3131_v59 }
 0x22b   :  { %v3166_v29 = vpack.c.bf16 %v3145_v56, %v3089_v4 }
 0x22d   :  { %3170 = vst [vmem:[%s5520_s7 + $0x18] sm:$0xff] %v3166_v29 }
 0x22e   :  { %3183 = vsyncpa [#allocation3], 1 }
 0x22f   :  { %3184 = vsyncpa [#allocation5], 1 }
 0x230   :  { %3185 = vsyncpa [#allocation8], 1 }

</bundles_post_ra>
